<compile_context>
chip_gen: v7x
topology: tpu7x:2x2x1
jax: 0.10.0
libtpu: 0.0.40
codegen_flags: <defaults>
</compile_context>

<pallas_src>
import functools

import jax
import jax.numpy as jnp
from jax.experimental import pallas as pl
from jax.experimental.pallas import tpu as pltpu


# Architecture constants fixed by the PyTorch module.
K1, S1 = 8, 4      # conv1 kernel / stride
K2, S2 = 4, 2      # conv2 kernel / stride


# ----------------------------------------------------------------------------
# Fused Pallas kernel: conv1 + conv2 + fc1 + fc2 (+softmax) for both heads
# ----------------------------------------------------------------------------

def _fused_forward_kernel(p1_ref, w1_ref, b1_ref, w2_ref, b2_ref,
                          w3_ref, b3_ref, w4_ref, b4_ref,
                          out_ref, h1_ref,
                          *, oh1, ow1, oh2, ow2, num_actions):
    """Pre-packed weights (see prepare_fused_params):

      w1: (Cin*K1*K1, 16)   conv1, actor|critic channels, /255 folded in (f32)
      w2: (K2*K2*16, 32)    conv2, block-diagonal per head, rows (kh,kw,c) (f32)
      w3: (OH2*OW2*32, 256) fc1, block-diagonal, rows (spatial, channel) (bf16)
      w4: (256, A+1)        fc2, [actor logits | critic value] (f32)

    p1 rows are ordered (ow, oh, n), columns (c, kh, kw).
    h1 scratch layout: rows (oh1, n), lanes (ow1, c1)  -> lane-dense (64, 128).
    """
    f32 = jnp.float32
    n = out_ref.shape[0]                 # padded batch (multiple of 8)
    c1 = w1_ref.shape[1]                 # 16 = 8 actor + 8 critic conv1 ch
    c2 = w2_ref.shape[1]                 # 32 = 16 actor + 16 critic conv2 ch
    rblk = oh1 * n                       # rows per conv1 output-column band

    # ---- conv1: one matmul per output column s0, stored into its 16-lane
    #      band of the lane-dense scratch (static, tile-aligned slices only).
    w1 = w1_ref[...]
    b1 = b1_ref[...]
    for s0 in range(ow1):
        blk = jnp.dot(p1_ref[s0 * rblk:(s0 + 1) * rblk, :], w1,
                      preferred_element_type=f32)
        h1_ref[:, s0 * c1:(s0 + 1) * c1] = jnp.maximum(blk + b1, 0.0)

    # ---- conv2 + fc1, fully accumulated on-chip ----
    # For output (r, s): the kw loop is folded into one contiguous 64-lane
    # slice per kh, contracted against the matching 64-row block of w2
    # (rows ordered (kh, kw, c)).  36 matmuls of (n,64)x(64,32) total.
    b2 = b2_ref[...]
    fc1_acc = jnp.zeros((n, w3_ref.shape[1]), f32)
    for r in range(oh2):
        for s in range(ow2):
            acc = jnp.zeros((n, c2), f32)
            for kh in range(K2):
                piece = h1_ref[(S2 * r + kh) * n:(S2 * r + kh) * n + n,
                               S2 * s * c1:(S2 * s + K2) * c1]       # (n, 64)
                acc = acc + jnp.dot(
                    piece, w2_ref[kh * K2 * c1:(kh + 1) * K2 * c1, :],
                    preferred_element_type=f32)
            h2 = jnp.maximum(acc + b2, 0.0)                          # (n, 32)
            sidx = r * ow2 + s
            w3blk = w3_ref[sidx * c2:(sidx + 1) * c2, :].astype(f32)  # bf16->f32
            fc1_acc = fc1_acc + jnp.dot(h2, w3blk,
                                        preferred_element_type=f32)
    h3 = jnp.maximum(fc1_acc + b3_ref[...], 0.0)                     # (n, 256)

    # ---- fc2 (actor logits | critic value) + masked-softmax epilogue,
    #      emitted as ONE (n, A+1) output [probs | value].
    z = jnp.dot(h3, w4_ref[...], preferred_element_type=f32) + b4_ref[...]
    col = jax.lax.broadcasted_iota(jnp.int32, z.shape, 1)
    is_logit = col < num_actions
    zm = jnp.where(is_logit, z, -jnp.inf)
    zmax = jnp.max(zm, axis=-1, keepdims=True)
    e = jnp.exp(zm - zmax)                       # masked cols -> exp(-inf)=0
    denom = jnp.sum(e, axis=-1, keepdims=True)
    out_ref[...] = jnp.where(is_logit,
                             e * pl.reciprocal(denom, approx=True), z)


# ----------------------------------------------------------------------------
# Plain-JAX glue: conv1 im2col (pure data movement on the raw input).
# Rows ordered (ow, oh, n) so the kernel only ever takes static tile-aligned
# slices; columns ordered (c, kh, kw) to match PyTorch Conv2d flattening.
# ----------------------------------------------------------------------------

def im2col(x, k, stride):
    n, c, h, w = x.shape
    oh = (h - k) // stride + 1
    ow = (w - k) // stride + 1
    cols = []
    for kh in range(k):
        for kw in range(k):
            cols.append(x[:, :, kh:kh + stride * oh:stride,
                             kw:kw + stride * ow:stride])
    p = jnp.stack(cols, axis=0).reshape(k, k, n, c, oh, ow)
    p = p.transpose(5, 4, 2, 3, 0, 1)          # (OW, OH, N, C, kh, kw)
    return p.reshape(ow * oh * n, c * k * k), oh, ow


# ----------------------------------------------------------------------------
# Parameter init (PyTorch layout) + one-time packing for the fused kernel
# ----------------------------------------------------------------------------

def conv_shape(x, kernel_size, stride, padding=0):
    return (x + 2 * padding - kernel_size) // stride + 1


def _kaiming_normal(key, shape, fan_in):
    std = (2.0 / fan_in) ** 0.5
    return std * jax.random.normal(key, shape, dtype=jnp.float32)


def _xavier_uniform(key, shape):
    fan_out, fan_in = shape
    limit = (6.0 / (fan_in + fan_out)) ** 0.5
    return jax.random.uniform(key, shape, minval=-limit, maxval=limit,
                              dtype=jnp.float32)


def init_params(key, input_shape, num_actions):
    # NOTE: the PyTorch module unpacks input_shape as (c, w, h); the test input
    # is square so H/W ordering is consistent (same quirk as the original).
    c, w, h = input_shape
    c1w, c1h = conv_shape(w, K1, S1), conv_shape(h, K1, S1)
    c2w, c2h = conv_shape(c1w, K2, S2), conv_shape(c1h, K2, S2)
    flatten_size = c2w * c2h * 16

    def head(key, out_features):
        ks = jax.random.split(key, 4)
        p = {
            "conv1_w": _kaiming_normal(ks[0], (8, c, K1, K1), c * K1 * K1),
            "conv1_b": jnp.zeros((8,), jnp.float32),
            "conv2_w": _kaiming_normal(ks[1], (16, 8, K2, K2), 8 * K2 * K2),
            "conv2_b": jnp.zeros((16,), jnp.float32),
            "fc1_w": _kaiming_normal(ks[2], (128, flatten_size), flatten_size),
            "fc1_b": jnp.zeros((128,), jnp.float32),
            "fc2_b": jnp.zeros((out_features,), jnp.float32),
        }
        if out_features == 128:        # matches the PyTorch init rule
            p["fc2_w"] = _kaiming_normal(ks[3], (out_features, 128), 128)
        else:
            p["fc2_w"] = _xavier_uniform(ks[3], (out_features, 128))
        return p

    ka, kc = jax.random.split(key)
    return {"actor": head(ka, num_actions), "critic": head(kc, 1)}


def prepare_fused_params(params, num_actions):
    """One-time (outside jit) packing into the fused-kernel weight layout."""
    a, c = params["actor"], params["critic"]
    c1h = a["conv1_w"].shape[0]            # 8 conv1 channels per head
    c2h = a["conv2_w"].shape[0]            # 16 conv2 channels per head
    n1, n2 = 2 * c1h, 2 * c2h              # 16, 32 combined channels
    hid = a["fc1_w"].shape[0]              # 128
    flat = a["fc1_w"].shape[1]             # c2h * OH2 * OW2
    sp2 = flat // c2h                      # conv2 spatial positions

    # conv1: actor|critic filters concatenated along Cout; /255 folded in.
    w1 = jnp.concatenate([a["conv1_w"].reshape(c1h, -1).T,
                          c["conv1_w"].reshape(c1h, -1).T], axis=1) / 255.0
    b1 = jnp.concatenate([a["conv1_b"], c["conv1_b"]]).reshape(1, n1)

    # conv2: block-diagonal over heads, rows ordered (kh, kw, channel).
    w2 = jnp.zeros((K2, K2, n1, n2), jnp.float32)
    w2 = w2.at[:, :, :c1h, :c2h].set(a["conv2_w"].transpose(2, 3, 1, 0))
    w2 = w2.at[:, :, c1h:, c2h:].set(c["conv2_w"].transpose(2, 3, 1, 0))
    w2 = w2.reshape(K2 * K2 * n1, n2)
    b2 = jnp.concatenate([a["conv2_b"], c["conv2_b"]]).reshape(1, n2)

    # fc1: block-diagonal, rows ordered (spatial, channel); stored bf16 to
    # halve the dominant per-call input DMA (upcast per-slice in the kernel).
    w3 = jnp.zeros((sp2, n2, 2 * hid), jnp.float32)
    w3 = w3.at[:, :c2h, :hid].set(
        a["fc1_w"].reshape(hid, c2h, sp2).transpose(2, 1, 0))
    w3 = w3.at[:, c2h:, hid:].set(
        c["fc1_w"].reshape(hid, c2h, sp2).transpose(2, 1, 0))
    w3 = w3.reshape(sp2 * n2, 2 * hid).astype(jnp.bfloat16)
    b3 = jnp.concatenate([a["fc1_b"], c["fc1_b"]]).reshape(1, 2 * hid)

    # fc2: one matmul producing [actor logits | critic value].
    w4 = jnp.zeros((2 * hid, num_actions + 1), jnp.float32)
    w4 = w4.at[:hid, :num_actions].set(a["fc2_w"].T)
    w4 = w4.at[hid:, num_actions].set(c["fc2_w"][0])
    b4 = jnp.concatenate([a["fc2_b"], c["fc2_b"]]).reshape(1, num_actions + 1)

    return {"w1": w1, "b1": b1, "w2": w2, "b2": b2,
            "w3": w3, "b3": b3, "w4": w4, "b4": b4}


# ----------------------------------------------------------------------------
# Forward pass (matches CNNModel.forward; Categorical ~ probs)
# ----------------------------------------------------------------------------

@jax.jit
def cnn_model_forward(packed, x):
    num_actions = packed["w4"].shape[1] - 1
    c1 = packed["w1"].shape[1]

    # Pad batch to a multiple of 8 (sublane alignment); padded rows are
    # computed on zeros and sliced off below.
    n0 = x.shape[0]
    n = ((n0 + 7) // 8) * 8
    if n != n0:
        x = jnp.pad(x, ((0, n - n0), (0, 0), (0, 0), (0, 0)))

    p1, oh1, ow1 = im2col(x, K1, S1)                # XLA data movement only
    oh2 = (oh1 - K2) // S2 + 1
    ow2 = (ow1 - K2) // S2 + 1

    kern = functools.partial(_fused_forward_kernel, oh1=oh1, ow1=ow1,
                             oh2=oh2, ow2=ow2, num_actions=num_actions)
    vmem = lambda: pl.BlockSpec(memory_space=pltpu.MemorySpace.VMEM)
    out = pl.pallas_call(
        kern,
        out_shape=jax.ShapeDtypeStruct((n, num_actions + 1), jnp.float32),
        in_specs=[vmem() for _ in range(9)],
        out_specs=vmem(),
        scratch_shapes=[pltpu.VMEM((oh1 * n, ow1 * c1), jnp.float32)],
        compiler_params=pltpu.CompilerParams(
            # Let XLA fuse the im2col into the pallas-call input (no HBM
            # round trip for p1); weights stay plain operands.
            allow_input_fusion=[True] + [False] * 8),
    )(p1, packed["w1"], packed["b1"], packed["w2"], packed["b2"],
      packed["w3"], packed["b3"], packed["w4"], packed["b4"])

    probs = out[:n0, :num_actions]
    value = out[:n0, num_actions:]
    # TODO(synk): torch.distributions.Categorical has no Pallas equivalent;
    # `probs` fully parameterizes it, so (probs, value, probs) ~ (dist, value, probs).
    return probs, value, probs


# ----------------------------------------------------------------------------
# Pure-JAX reference (independent path: lax.conv, original PyTorch layout)
# ----------------------------------------------------------------------------

def _reference_head(p, x):
    h = x / 255.0
    h = jax.lax.conv_general_dilated(h, p["conv1_w"], (S1, S1), "VALID",
                                     dimension_numbers=("NCHW", "OIHW", "NCHW"))
    h = jnp.maximum(h + p["conv1_b"][None, :, None, None], 0.0)
    h = jax.lax.conv_general_dilated(h, p["conv2_w"], (S2, S2), "VALID",
                                     dimension_numbers=("NCHW", "OIHW", "NCHW"))
    h = jnp.maximum(h + p["conv2_b"][None, :, None, None], 0.0)
    h = h.reshape(h.shape[0], -1)
    h = jnp.maximum(h @ p["fc1_w"].T + p["fc1_b"], 0.0)
    return h @ p["fc2_w"].T + p["fc2_b"]


def reference_forward(params, x):
    value = _reference_head(params["critic"], x)
    logits = _reference_head(params["actor"], x)
    return jax.nn.softmax(logits, axis=-1), value


if __name__ == "__main__":
    key = jax.random.PRNGKey(0)
    k_param, k_input = jax.random.split(key)

    input_shape = (4, 36, 36)   # (c, w, h): conv1 -> 8x8, conv2 -> 3x3, flat=144
    num_actions = 6
    batch = 8                   # multiple of 8 per perf review (sublane pad)

    params = init_params(k_param, input_shape, num_actions)
    packed = prepare_fused_params(params, num_actions)   # once, outside jit
    x = jax.random.uniform(k_input, (batch,) + input_shape,
                           minval=0.0, maxval=255.0, dtype=jnp.float32)

    probs, value, probs2 = cnn_model_forward(packed, x)
    jax.block_until_ready((probs, value, probs2))

    assert probs.shape == (batch, num_actions)
    assert value.shape == (batch, 1)
    # approx-reciprocal softmax: sums are 1 to within the EUP approximation.
    assert jnp.allclose(jnp.sum(probs, axis=1), 1.0, atol=5e-3)

    # Cross-check against an independent plain-JAX/XLA implementation.
    # Tolerances cover default-precision MXU passes + bf16 fc1 weights +
    # block-diagonal summation-order differences.
    probs_ref, value_ref = reference_forward(params, x)
    assert jnp.allclose(probs, probs_ref, atol=3e-2, rtol=3e-2)
    assert jnp.allclose(value, value_ref, atol=5e-2, rtol=5e-2)

    print("KERNEL_OK")
</pallas_src>

<mosaic_0001>
module attributes {stable_mosaic.version = 11 : i64} {
  func.func @_fused_forward_kernel(%arg0: memref<512x256xf32, #tpu.memory_space<vmem>>, %arg1: memref<256x16xf32, #tpu.memory_space<vmem>>, %arg2: memref<1x16xf32, #tpu.memory_space<vmem>>, %arg3: memref<256x32xf32, #tpu.memory_space<vmem>>, %arg4: memref<1x32xf32, #tpu.memory_space<vmem>>, %arg5: memref<288x256xbf16, #tpu.memory_space<vmem>>, %arg6: memref<1x256xf32, #tpu.memory_space<vmem>>, %arg7: memref<256x7xf32, #tpu.memory_space<vmem>>, %arg8: memref<1x7xf32, #tpu.memory_space<vmem>>, %arg9: memref<8x7xf32, #tpu.memory_space<vmem>>, %arg10: memref<64x128xf32, #tpu.memory_space<vmem>>) attributes {dimension_semantics = [], scalar_prefetch = 0 : i64, scratch_operands = 1 : i64, tpu.core_type = #tpu.core_type<tc>} {
    %c0 = arith.constant 0 : index
    %c0_0 = arith.constant 0 : index
    %0 = vector.load %arg1[%c0, %c0_0] : memref<256x16xf32, #tpu.memory_space<vmem>>, vector<256x16xf32>
    %c0_1 = arith.constant 0 : index
    %c0_2 = arith.constant 0 : index
    %1 = vector.load %arg2[%c0_1, %c0_2] : memref<1x16xf32, #tpu.memory_space<vmem>>, vector<1x16xf32>
    %c0_3 = arith.constant 0 : index
    %c0_4 = arith.constant 0 : index
    %2 = vector.load %arg0[%c0_3, %c0_4] : memref<512x256xf32, #tpu.memory_space<vmem>>, vector<64x256xf32>
    %cst = arith.constant dense<0.000000e+00> : vector<64x16xf32>
    %3 = tpu.matmul %2, %0, %cst {dimension_numbers = #tpu.dot_dimension_numbers<[1], [0], [0], [1], [0, 0, 1, 1], [], []>} : vector<64x256xf32>, vector<256x16xf32>, vector<64x16xf32> -> vector<64x16xf32>
    %4 = vector.broadcast %1 : vector<1x16xf32> to vector<64x16xf32>
    %5 = arith.addf %3, %4 : vector<64x16xf32>
    %cst_5 = arith.constant 0.000000e+00 : f32
    %6 = vector.broadcast %cst_5 : f32 to vector<64x16xf32>
    %7 = arith.maximumf %5, %6 : vector<64x16xf32>
    %c0_6 = arith.constant 0 : index
    %c0_7 = arith.constant 0 : index
    %8 = vector.load %arg10[%c0_6, %c0_7] : memref<64x128xf32, #tpu.memory_space<vmem>>, vector<64x16xf32>
    tpu.vector_store %arg10[%c0_6, %c0_7], %7 {strides = array<i32>} : memref<64x128xf32, #tpu.memory_space<vmem>>, vector<64x16xf32>,
    %c64 = arith.constant 64 : index
    %c0_8 = arith.constant 0 : index
    %9 = vector.load %arg0[%c64, %c0_8] : memref<512x256xf32, #tpu.memory_space<vmem>>, vector<64x256xf32>
    %cst_9 = arith.constant dense<0.000000e+00> : vector<64x16xf32>
    %10 = tpu.matmul %9, %0, %cst_9 {dimension_numbers = #tpu.dot_dimension_numbers<[1], [0], [0], [1], [0, 0, 1, 1], [], []>} : vector<64x256xf32>, vector<256x16xf32>, vector<64x16xf32> -> vector<64x16xf32>
    %11 = vector.broadcast %1 : vector<1x16xf32> to vector<64x16xf32>
    %12 = arith.addf %10, %11 : vector<64x16xf32>
    %cst_10 = arith.constant 0.000000e+00 : f32
    %13 = vector.broadcast %cst_10 : f32 to vector<64x16xf32>
    %14 = arith.maximumf %12, %13 : vector<64x16xf32>
    %c0_11 = arith.constant 0 : index
    %c16 = arith.constant 16 : index
    %15 = vector.load %arg10[%c0_11, %c16] : memref<64x128xf32, #tpu.memory_space<vmem>>, vector<64x16xf32>
    tpu.vector_store %arg10[%c0_11, %c16], %14 {strides = array<i32>} : memref<64x128xf32, #tpu.memory_space<vmem>>, vector<64x16xf32>,
    %c128 = arith.constant 128 : index
    %c0_12 = arith.constant 0 : index
    %16 = vector.load %arg0[%c128, %c0_12] : memref<512x256xf32, #tpu.memory_space<vmem>>, vector<64x256xf32>
    %cst_13 = arith.constant dense<0.000000e+00> : vector<64x16xf32>
    %17 = tpu.matmul %16, %0, %cst_13 {dimension_numbers = #tpu.dot_dimension_numbers<[1], [0], [0], [1], [0, 0, 1, 1], [], []>} : vector<64x256xf32>, vector<256x16xf32>, vector<64x16xf32> -> vector<64x16xf32>
    %18 = vector.broadcast %1 : vector<1x16xf32> to vector<64x16xf32>
    %19 = arith.addf %17, %18 : vector<64x16xf32>
    %cst_14 = arith.constant 0.000000e+00 : f32
    %20 = vector.broadcast %cst_14 : f32 to vector<64x16xf32>
    %21 = arith.maximumf %19, %20 : vector<64x16xf32>
    %c0_15 = arith.constant 0 : index
    %c32 = arith.constant 32 : index
    %22 = vector.load %arg10[%c0_15, %c32] : memref<64x128xf32, #tpu.memory_space<vmem>>, vector<64x16xf32>
    tpu.vector_store %arg10[%c0_15, %c32], %21 {strides = array<i32>} : memref<64x128xf32, #tpu.memory_space<vmem>>, vector<64x16xf32>,
    %c192 = arith.constant 192 : index
    %c0_16 = arith.constant 0 : index
    %23 = vector.load %arg0[%c192, %c0_16] : memref<512x256xf32, #tpu.memory_space<vmem>>, vector<64x256xf32>
    %cst_17 = arith.constant dense<0.000000e+00> : vector<64x16xf32>
    %24 = tpu.matmul %23, %0, %cst_17 {dimension_numbers = #tpu.dot_dimension_numbers<[1], [0], [0], [1], [0, 0, 1, 1], [], []>} : vector<64x256xf32>, vector<256x16xf32>, vector<64x16xf32> -> vector<64x16xf32>
    %25 = vector.broadcast %1 : vector<1x16xf32> to vector<64x16xf32>
    %26 = arith.addf %24, %25 : vector<64x16xf32>
    %cst_18 = arith.constant 0.000000e+00 : f32
    %27 = vector.broadcast %cst_18 : f32 to vector<64x16xf32>
    %28 = arith.maximumf %26, %27 : vector<64x16xf32>
    %c0_19 = arith.constant 0 : index
    %c48 = arith.constant 48 : index
    %29 = vector.load %arg10[%c0_19, %c48] : memref<64x128xf32, #tpu.memory_space<vmem>>, vector<64x16xf32>
    tpu.vector_store %arg10[%c0_19, %c48], %28 {strides = array<i32>} : memref<64x128xf32, #tpu.memory_space<vmem>>, vector<64x16xf32>,
    %c256 = arith.constant 256 : index
    %c0_20 = arith.constant 0 : index
    %30 = vector.load %arg0[%c256, %c0_20] : memref<512x256xf32, #tpu.memory_space<vmem>>, vector<64x256xf32>
    %cst_21 = arith.constant dense<0.000000e+00> : vector<64x16xf32>
    %31 = tpu.matmul %30, %0, %cst_21 {dimension_numbers = #tpu.dot_dimension_numbers<[1], [0], [0], [1], [0, 0, 1, 1], [], []>} : vector<64x256xf32>, vector<256x16xf32>, vector<64x16xf32> -> vector<64x16xf32>
    %32 = vector.broadcast %1 : vector<1x16xf32> to vector<64x16xf32>
    %33 = arith.addf %31, %32 : vector<64x16xf32>
    %cst_22 = arith.constant 0.000000e+00 : f32
    %34 = vector.broadcast %cst_22 : f32 to vector<64x16xf32>
    %35 = arith.maximumf %33, %34 : vector<64x16xf32>
    %c0_23 = arith.constant 0 : index
    %c64_24 = arith.constant 64 : index
    %36 = vector.load %arg10[%c0_23, %c64_24] : memref<64x128xf32, #tpu.memory_space<vmem>>, vector<64x16xf32>
    tpu.vector_store %arg10[%c0_23, %c64_24], %35 {strides = array<i32>} : memref<64x128xf32, #tpu.memory_space<vmem>>, vector<64x16xf32>,
    %c320 = arith.constant 320 : index
    %c0_25 = arith.constant 0 : index
    %37 = vector.load %arg0[%c320, %c0_25] : memref<512x256xf32, #tpu.memory_space<vmem>>, vector<64x256xf32>
    %cst_26 = arith.constant dense<0.000000e+00> : vector<64x16xf32>
    %38 = tpu.matmul %37, %0, %cst_26 {dimension_numbers = #tpu.dot_dimension_numbers<[1], [0], [0], [1], [0, 0, 1, 1], [], []>} : vector<64x256xf32>, vector<256x16xf32>, vector<64x16xf32> -> vector<64x16xf32>
    %39 = vector.broadcast %1 : vector<1x16xf32> to vector<64x16xf32>
    %40 = arith.addf %38, %39 : vector<64x16xf32>
    %cst_27 = arith.constant 0.000000e+00 : f32
    %41 = vector.broadcast %cst_27 : f32 to vector<64x16xf32>
    %42 = arith.maximumf %40, %41 : vector<64x16xf32>
    %c0_28 = arith.constant 0 : index
    %c80 = arith.constant 80 : index
    %43 = vector.load %arg10[%c0_28, %c80] : memref<64x128xf32, #tpu.memory_space<vmem>>, vector<64x16xf32>
    tpu.vector_store %arg10[%c0_28, %c80], %42 {strides = array<i32>} : memref<64x128xf32, #tpu.memory_space<vmem>>, vector<64x16xf32>,
    %c384 = arith.constant 384 : index
    %c0_29 = arith.constant 0 : index
    %44 = vector.load %arg0[%c384, %c0_29] : memref<512x256xf32, #tpu.memory_space<vmem>>, vector<64x256xf32>
    %cst_30 = arith.constant dense<0.000000e+00> : vector<64x16xf32>
    %45 = tpu.matmul %44, %0, %cst_30 {dimension_numbers = #tpu.dot_dimension_numbers<[1], [0], [0], [1], [0, 0, 1, 1], [], []>} : vector<64x256xf32>, vector<256x16xf32>, vector<64x16xf32> -> vector<64x16xf32>
    %46 = vector.broadcast %1 : vector<1x16xf32> to vector<64x16xf32>
    %47 = arith.addf %45, %46 : vector<64x16xf32>
    %cst_31 = arith.constant 0.000000e+00 : f32
    %48 = vector.broadcast %cst_31 : f32 to vector<64x16xf32>
    %49 = arith.maximumf %47, %48 : vector<64x16xf32>
    %c0_32 = arith.constant 0 : index
    %c96 = arith.constant 96 : index
    %50 = vector.load %arg10[%c0_32, %c96] : memref<64x128xf32, #tpu.memory_space<vmem>>, vector<64x16xf32>
    tpu.vector_store %arg10[%c0_32, %c96], %49 {strides = array<i32>} : memref<64x128xf32, #tpu.memory_space<vmem>>, vector<64x16xf32>,
    %c448 = arith.constant 448 : index
    %c0_33 = arith.constant 0 : index
    %51 = vector.load %arg0[%c448, %c0_33] : memref<512x256xf32, #tpu.memory_space<vmem>>, vector<64x256xf32>
    %cst_34 = arith.constant dense<0.000000e+00> : vector<64x16xf32>
    %52 = tpu.matmul %51, %0, %cst_34 {dimension_numbers = #tpu.dot_dimension_numbers<[1], [0], [0], [1], [0, 0, 1, 1], [], []>} : vector<64x256xf32>, vector<256x16xf32>, vector<64x16xf32> -> vector<64x16xf32>
    %53 = vector.broadcast %1 : vector<1x16xf32> to vector<64x16xf32>
    %54 = arith.addf %52, %53 : vector<64x16xf32>
    %cst_35 = arith.constant 0.000000e+00 : f32
    %55 = vector.broadcast %cst_35 : f32 to vector<64x16xf32>
    %56 = arith.maximumf %54, %55 : vector<64x16xf32>
    %c0_36 = arith.constant 0 : index
    %c112 = arith.constant 112 : index
    %57 = vector.load %arg10[%c0_36, %c112] : memref<64x128xf32, #tpu.memory_space<vmem>>, vector<64x16xf32>
    tpu.vector_store %arg10[%c0_36, %c112], %56 {strides = array<i32>} : memref<64x128xf32, #tpu.memory_space<vmem>>, vector<64x16xf32>,
    %c0_37 = arith.constant 0 : index
    %c0_38 = arith.constant 0 : index
    %58 = vector.load %arg4[%c0_37, %c0_38] : memref<1x32xf32, #tpu.memory_space<vmem>>, vector<1x32xf32>
    %cst_39 = arith.constant 0.000000e+00 : f32
    %59 = vector.broadcast %cst_39 : f32 to vector<8x256xf32>
    %cst_40 = arith.constant 0.000000e+00 : f32
    %60 = vector.broadcast %cst_40 : f32 to vector<8x32xf32>
    %c0_41 = arith.constant 0 : index
    %c0_42 = arith.constant 0 : index
    %61 = vector.load %arg10[%c0_41, %c0_42] : memref<64x128xf32, #tpu.memory_space<vmem>>, vector<8x64xf32>
    %c0_43 = arith.constant 0 : index
    %c0_44 = arith.constant 0 : index
    %62 = vector.load %arg3[%c0_43, %c0_44] : memref<256x32xf32, #tpu.memory_space<vmem>>, vector<64x32xf32>
    %cst_45 = arith.constant dense<0.000000e+00> : vector<8x32xf32>
    %63 = tpu.matmul %61, %62, %cst_45 {dimension_numbers = #tpu.dot_dimension_numbers<[1], [0], [0], [1], [0, 0, 1, 1], [], []>} : vector<8x64xf32>, vector<64x32xf32>, vector<8x32xf32> -> vector<8x32xf32>
    %64 = arith.addf %60, %63 : vector<8x32xf32>
    %c8 = arith.constant 8 : index
    %c0_46 = arith.constant 0 : index
    %65 = vector.load %arg10[%c8, %c0_46] : memref<64x128xf32, #tpu.memory_space<vmem>>, vector<8x64xf32>
    %c64_47 = arith.constant 64 : index
    %c0_48 = arith.constant 0 : index
    %66 = vector.load %arg3[%c64_47, %c0_48] : memref<256x32xf32, #tpu.memory_space<vmem>>, vector<64x32xf32>
    %cst_49 = arith.constant dense<0.000000e+00> : vector<8x32xf32>
    %67 = tpu.matmul %65, %66, %cst_49 {dimension_numbers = #tpu.dot_dimension_numbers<[1], [0], [0], [1], [0, 0, 1, 1], [], []>} : vector<8x64xf32>, vector<64x32xf32>, vector<8x32xf32> -> vector<8x32xf32>
    %68 = arith.addf %64, %67 : vector<8x32xf32>
    %c16_50 = arith.constant 16 : index
    %c0_51 = arith.constant 0 : index
    %69 = vector.load %arg10[%c16_50, %c0_51] : memref<64x128xf32, #tpu.memory_space<vmem>>, vector<8x64xf32>
    %c128_52 = arith.constant 128 : index
    %c0_53 = arith.constant 0 : index
    %70 = vector.load %arg3[%c128_52, %c0_53] : memref<256x32xf32, #tpu.memory_space<vmem>>, vector<64x32xf32>
    %cst_54 = arith.constant dense<0.000000e+00> : vector<8x32xf32>
    %71 = tpu.matmul %69, %70, %cst_54 {dimension_numbers = #tpu.dot_dimension_numbers<[1], [0], [0], [1], [0, 0, 1, 1], [], []>} : vector<8x64xf32>, vector<64x32xf32>, vector<8x32xf32> -> vector<8x32xf32>
    %72 = arith.addf %68, %71 : vector<8x32xf32>
    %c24 = arith.constant 24 : index
    %c0_55 = arith.constant 0 : index
    %73 = vector.load %arg10[%c24, %c0_55] : memref<64x128xf32, #tpu.memory_space<vmem>>, vector<8x64xf32>
    %c192_56 = arith.constant 192 : index
    %c0_57 = arith.constant 0 : index
    %74 = vector.load %arg3[%c192_56, %c0_57] : memref<256x32xf32, #tpu.memory_space<vmem>>, vector<64x32xf32>
    %cst_58 = arith.constant dense<0.000000e+00> : vector<8x32xf32>
    %75 = tpu.matmul %73, %74, %cst_58 {dimension_numbers = #tpu.dot_dimension_numbers<[1], [0], [0], [1], [0, 0, 1, 1], [], []>} : vector<8x64xf32>, vector<64x32xf32>, vector<8x32xf32> -> vector<8x32xf32>
    %76 = arith.addf %72, %75 : vector<8x32xf32>
    %77 = vector.broadcast %58 : vector<1x32xf32> to vector<8x32xf32>
    %78 = arith.addf %76, %77 : vector<8x32xf32>
    %cst_59 = arith.constant 0.000000e+00 : f32
    %79 = vector.broadcast %cst_59 : f32 to vector<8x32xf32>
    %80 = arith.maximumf %78, %79 : vector<8x32xf32>
    %c0_60 = arith.constant 0 : index
    %c0_61 = arith.constant 0 : index
    %81 = vector.load %arg5[%c0_60, %c0_61] : memref<288x256xbf16, #tpu.memory_space<vmem>>, vector<32x256xbf16>
    %82 = arith.extf %81 : vector<32x256xbf16> to vector<32x256xf32>
    %cst_62 = arith.constant dense<0.000000e+00> : vector<8x256xf32>
    %83 = tpu.matmul %80, %82, %cst_62 {dimension_numbers = #tpu.dot_dimension_numbers<[1], [0], [0], [1], [0, 0, 1, 1], [], []>} : vector<8x32xf32>, vector<32x256xf32>, vector<8x256xf32> -> vector<8x256xf32>
    %84 = arith.addf %59, %83 : vector<8x256xf32>
    %cst_63 = arith.constant 0.000000e+00 : f32
    %85 = vector.broadcast %cst_63 : f32 to vector<8x32xf32>
    %c0_64 = arith.constant 0 : index
    %c32_65 = arith.constant 32 : index
    %86 = vector.load %arg10[%c0_64, %c32_65] : memref<64x128xf32, #tpu.memory_space<vmem>>, vector<8x64xf32>
    %c0_66 = arith.constant 0 : index
    %c0_67 = arith.constant 0 : index
    %87 = vector.load %arg3[%c0_66, %c0_67] : memref<256x32xf32, #tpu.memory_space<vmem>>, vector<64x32xf32>
    %cst_68 = arith.constant dense<0.000000e+00> : vector<8x32xf32>
    %88 = tpu.matmul %86, %87, %cst_68 {dimension_numbers = #tpu.dot_dimension_numbers<[1], [0], [0], [1], [0, 0, 1, 1], [], []>} : vector<8x64xf32>, vector<64x32xf32>, vector<8x32xf32> -> vector<8x32xf32>
    %89 = arith.addf %85, %88 : vector<8x32xf32>
    %c8_69 = arith.constant 8 : index
    %c32_70 = arith.constant 32 : index
    %90 = vector.load %arg10[%c8_69, %c32_70] : memref<64x128xf32, #tpu.memory_space<vmem>>, vector<8x64xf32>
    %c64_71 = arith.constant 64 : index
    %c0_72 = arith.constant 0 : index
    %91 = vector.load %arg3[%c64_71, %c0_72] : memref<256x32xf32, #tpu.memory_space<vmem>>, vector<64x32xf32>
    %cst_73 = arith.constant dense<0.000000e+00> : vector<8x32xf32>
    %92 = tpu.matmul %90, %91, %cst_73 {dimension_numbers = #tpu.dot_dimension_numbers<[1], [0], [0], [1], [0, 0, 1, 1], [], []>} : vector<8x64xf32>, vector<64x32xf32>, vector<8x32xf32> -> vector<8x32xf32>
    %93 = arith.addf %89, %92 : vector<8x32xf32>
    %c16_74 = arith.constant 16 : index
    %c32_75 = arith.constant 32 : index
    %94 = vector.load %arg10[%c16_74, %c32_75] : memref<64x128xf32, #tpu.memory_space<vmem>>, vector<8x64xf32>
    %c128_76 = arith.constant 128 : index
    %c0_77 = arith.constant 0 : index
    %95 = vector.load %arg3[%c128_76, %c0_77] : memref<256x32xf32, #tpu.memory_space<vmem>>, vector<64x32xf32>
    %cst_78 = arith.constant dense<0.000000e+00> : vector<8x32xf32>
    %96 = tpu.matmul %94, %95, %cst_78 {dimension_numbers = #tpu.dot_dimension_numbers<[1], [0], [0], [1], [0, 0, 1, 1], [], []>} : vector<8x64xf32>, vector<64x32xf32>, vector<8x32xf32> -> vector<8x32xf32>
    %97 = arith.addf %93, %96 : vector<8x32xf32>
    %c24_79 = arith.constant 24 : index
    %c32_80 = arith.constant 32 : index
    %98 = vector.load %arg10[%c24_79, %c32_80] : memref<64x128xf32, #tpu.memory_space<vmem>>, vector<8x64xf32>
    %c192_81 = arith.constant 192 : index
    %c0_82 = arith.constant 0 : index
    %99 = vector.load %arg3[%c192_81, %c0_82] : memref<256x32xf32, #tpu.memory_space<vmem>>, vector<64x32xf32>
    %cst_83 = arith.constant dense<0.000000e+00> : vector<8x32xf32>
    %100 = tpu.matmul %98, %99, %cst_83 {dimension_numbers = #tpu.dot_dimension_numbers<[1], [0], [0], [1], [0, 0, 1, 1], [], []>} : vector<8x64xf32>, vector<64x32xf32>, vector<8x32xf32> -> vector<8x32xf32>
    %101 = arith.addf %97, %100 : vector<8x32xf32>
    %102 = vector.broadcast %58 : vector<1x32xf32> to vector<8x32xf32>
    %103 = arith.addf %101, %102 : vector<8x32xf32>
    %cst_84 = arith.constant 0.000000e+00 : f32
    %104 = vector.broadcast %cst_84 : f32 to vector<8x32xf32>
    %105 = arith.maximumf %103, %104 : vector<8x32xf32>
    %c32_85 = arith.constant 32 : index
    %c0_86 = arith.constant 0 : index
    %106 = vector.load %arg5[%c32_85, %c0_86] : memref<288x256xbf16, #tpu.memory_space<vmem>>, vector<32x256xbf16>
    %107 = arith.extf %106 : vector<32x256xbf16> to vector<32x256xf32>
    %cst_87 = arith.constant dense<0.000000e+00> : vector<8x256xf32>
    %108 = tpu.matmul %105, %107, %cst_87 {dimension_numbers = #tpu.dot_dimension_numbers<[1], [0], [0], [1], [0, 0, 1, 1], [], []>} : vector<8x32xf32>, vector<32x256xf32>, vector<8x256xf32> -> vector<8x256xf32>
    %109 = arith.addf %84, %108 : vector<8x256xf32>
    %cst_88 = arith.constant 0.000000e+00 : f32
    %110 = vector.broadcast %cst_88 : f32 to vector<8x32xf32>
    %c0_89 = arith.constant 0 : index
    %c64_90 = arith.constant 64 : index
    %111 = vector.load %arg10[%c0_89, %c64_90] : memref<64x128xf32, #tpu.memory_space<vmem>>, vector<8x64xf32>
    %c0_91 = arith.constant 0 : index
    %c0_92 = arith.constant 0 : index
    %112 = vector.load %arg3[%c0_91, %c0_92] : memref<256x32xf32, #tpu.memory_space<vmem>>, vector<64x32xf32>
    %cst_93 = arith.constant dense<0.000000e+00> : vector<8x32xf32>
    %113 = tpu.matmul %111, %112, %cst_93 {dimension_numbers = #tpu.dot_dimension_numbers<[1], [0], [0], [1], [0, 0, 1, 1], [], []>} : vector<8x64xf32>, vector<64x32xf32>, vector<8x32xf32> -> vector<8x32xf32>
    %114 = arith.addf %110, %113 : vector<8x32xf32>
    %c8_94 = arith.constant 8 : index
    %c64_95 = arith.constant 64 : index
    %115 = vector.load %arg10[%c8_94, %c64_95] : memref<64x128xf32, #tpu.memory_space<vmem>>, vector<8x64xf32>
    %c64_96 = arith.constant 64 : index
    %c0_97 = arith.constant 0 : index
    %116 = vector.load %arg3[%c64_96, %c0_97] : memref<256x32xf32, #tpu.memory_space<vmem>>, vector<64x32xf32>
    %cst_98 = arith.constant dense<0.000000e+00> : vector<8x32xf32>
    %117 = tpu.matmul %115, %116, %cst_98 {dimension_numbers = #tpu.dot_dimension_numbers<[1], [0], [0], [1], [0, 0, 1, 1], [], []>} : vector<8x64xf32>, vector<64x32xf32>, vector<8x32xf32> -> vector<8x32xf32>
    %118 = arith.addf %114, %117 : vector<8x32xf32>
    %c16_99 = arith.constant 16 : index
    %c64_100 = arith.constant 64 : index
    %119 = vector.load %arg10[%c16_99, %c64_100] : memref<64x128xf32, #tpu.memory_space<vmem>>, vector<8x64xf32>
    %c128_101 = arith.constant 128 : index
    %c0_102 = arith.constant 0 : index
    %120 = vector.load %arg3[%c128_101, %c0_102] : memref<256x32xf32, #tpu.memory_space<vmem>>, vector<64x32xf32>
    %cst_103 = arith.constant dense<0.000000e+00> : vector<8x32xf32>
    %121 = tpu.matmul %119, %120, %cst_103 {dimension_numbers = #tpu.dot_dimension_numbers<[1], [0], [0], [1], [0, 0, 1, 1], [], []>} : vector<8x64xf32>, vector<64x32xf32>, vector<8x32xf32> -> vector<8x32xf32>
    %122 = arith.addf %118, %121 : vector<8x32xf32>
    %c24_104 = arith.constant 24 : index
    %c64_105 = arith.constant 64 : index
    %123 = vector.load %arg10[%c24_104, %c64_105] : memref<64x128xf32, #tpu.memory_space<vmem>>, vector<8x64xf32>
    %c192_106 = arith.constant 192 : index
    %c0_107 = arith.constant 0 : index
    %124 = vector.load %arg3[%c192_106, %c0_107] : memref<256x32xf32, #tpu.memory_space<vmem>>, vector<64x32xf32>
    %cst_108 = arith.constant dense<0.000000e+00> : vector<8x32xf32>
    %125 = tpu.matmul %123, %124, %cst_108 {dimension_numbers = #tpu.dot_dimension_numbers<[1], [0], [0], [1], [0, 0, 1, 1], [], []>} : vector<8x64xf32>, vector<64x32xf32>, vector<8x32xf32> -> vector<8x32xf32>
    %126 = arith.addf %122, %125 : vector<8x32xf32>
    %127 = vector.broadcast %58 : vector<1x32xf32> to vector<8x32xf32>
    %128 = arith.addf %126, %127 : vector<8x32xf32>
    %cst_109 = arith.constant 0.000000e+00 : f32
    %129 = vector.broadcast %cst_109 : f32 to vector<8x32xf32>
    %130 = arith.maximumf %128, %129 : vector<8x32xf32>
    %c64_110 = arith.constant 64 : index
    %c0_111 = arith.constant 0 : index
    %131 = vector.load %arg5[%c64_110, %c0_111] : memref<288x256xbf16, #tpu.memory_space<vmem>>, vector<32x256xbf16>
    %132 = arith.extf %131 : vector<32x256xbf16> to vector<32x256xf32>
    %cst_112 = arith.constant dense<0.000000e+00> : vector<8x256xf32>
    %133 = tpu.matmul %130, %132, %cst_112 {dimension_numbers = #tpu.dot_dimension_numbers<[1], [0], [0], [1], [0, 0, 1, 1], [], []>} : vector<8x32xf32>, vector<32x256xf32>, vector<8x256xf32> -> vector<8x256xf32>
    %134 = arith.addf %109, %133 : vector<8x256xf32>
    %cst_113 = arith.constant 0.000000e+00 : f32
    %135 = vector.broadcast %cst_113 : f32 to vector<8x32xf32>
    %c16_114 = arith.constant 16 : index
    %c0_115 = arith.constant 0 : index
    %136 = vector.load %arg10[%c16_114, %c0_115] : memref<64x128xf32, #tpu.memory_space<vmem>>, vector<8x64xf32>
    %c0_116 = arith.constant 0 : index
    %c0_117 = arith.constant 0 : index
    %137 = vector.load %arg3[%c0_116, %c0_117] : memref<256x32xf32, #tpu.memory_space<vmem>>, vector<64x32xf32>
    %cst_118 = arith.constant dense<0.000000e+00> : vector<8x32xf32>
    %138 = tpu.matmul %136, %137, %cst_118 {dimension_numbers = #tpu.dot_dimension_numbers<[1], [0], [0], [1], [0, 0, 1, 1], [], []>} : vector<8x64xf32>, vector<64x32xf32>, vector<8x32xf32> -> vector<8x32xf32>
    %139 = arith.addf %135, %138 : vector<8x32xf32>
    %c24_119 = arith.constant 24 : index
    %c0_120 = arith.constant 0 : index
    %140 = vector.load %arg10[%c24_119, %c0_120] : memref<64x128xf32, #tpu.memory_space<vmem>>, vector<8x64xf32>
    %c64_121 = arith.constant 64 : index
    %c0_122 = arith.constant 0 : index
    %141 = vector.load %arg3[%c64_121, %c0_122] : memref<256x32xf32, #tpu.memory_space<vmem>>, vector<64x32xf32>
    %cst_123 = arith.constant dense<0.000000e+00> : vector<8x32xf32>
    %142 = tpu.matmul %140, %141, %cst_123 {dimension_numbers = #tpu.dot_dimension_numbers<[1], [0], [0], [1], [0, 0, 1, 1], [], []>} : vector<8x64xf32>, vector<64x32xf32>, vector<8x32xf32> -> vector<8x32xf32>
    %143 = arith.addf %139, %142 : vector<8x32xf32>
    %c32_124 = arith.constant 32 : index
    %c0_125 = arith.constant 0 : index
    %144 = vector.load %arg10[%c32_124, %c0_125] : memref<64x128xf32, #tpu.memory_space<vmem>>, vector<8x64xf32>
    %c128_126 = arith.constant 128 : index
    %c0_127 = arith.constant 0 : index
    %145 = vector.load %arg3[%c128_126, %c0_127] : memref<256x32xf32, #tpu.memory_space<vmem>>, vector<64x32xf32>
    %cst_128 = arith.constant dense<0.000000e+00> : vector<8x32xf32>
    %146 = tpu.matmul %144, %145, %cst_128 {dimension_numbers = #tpu.dot_dimension_numbers<[1], [0], [0], [1], [0, 0, 1, 1], [], []>} : vector<8x64xf32>, vector<64x32xf32>, vector<8x32xf32> -> vector<8x32xf32>
    %147 = arith.addf %143, %146 : vector<8x32xf32>
    %c40 = arith.constant 40 : index
    %c0_129 = arith.constant 0 : index
    %148 = vector.load %arg10[%c40, %c0_129] : memref<64x128xf32, #tpu.memory_space<vmem>>, vector<8x64xf32>
    %c192_130 = arith.constant 192 : index
    %c0_131 = arith.constant 0 : index
    %149 = vector.load %arg3[%c192_130, %c0_131] : memref<256x32xf32, #tpu.memory_space<vmem>>, vector<64x32xf32>
    %cst_132 = arith.constant dense<0.000000e+00> : vector<8x32xf32>
    %150 = tpu.matmul %148, %149, %cst_132 {dimension_numbers = #tpu.dot_dimension_numbers<[1], [0], [0], [1], [0, 0, 1, 1], [], []>} : vector<8x64xf32>, vector<64x32xf32>, vector<8x32xf32> -> vector<8x32xf32>
    %151 = arith.addf %147, %150 : vector<8x32xf32>
    %152 = vector.broadcast %58 : vector<1x32xf32> to vector<8x32xf32>
    %153 = arith.addf %151, %152 : vector<8x32xf32>
    %cst_133 = arith.constant 0.000000e+00 : f32
    %154 = vector.broadcast %cst_133 : f32 to vector<8x32xf32>
    %155 = arith.maximumf %153, %154 : vector<8x32xf32>
    %c96_134 = arith.constant 96 : index
    %c0_135 = arith.constant 0 : index
    %156 = vector.load %arg5[%c96_134, %c0_135] : memref<288x256xbf16, #tpu.memory_space<vmem>>, vector<32x256xbf16>
    %157 = arith.extf %156 : vector<32x256xbf16> to vector<32x256xf32>
    %cst_136 = arith.constant dense<0.000000e+00> : vector<8x256xf32>
    %158 = tpu.matmul %155, %157, %cst_136 {dimension_numbers = #tpu.dot_dimension_numbers<[1], [0], [0], [1], [0, 0, 1, 1], [], []>} : vector<8x32xf32>, vector<32x256xf32>, vector<8x256xf32> -> vector<8x256xf32>
    %159 = arith.addf %134, %158 : vector<8x256xf32>
    %cst_137 = arith.constant 0.000000e+00 : f32
    %160 = vector.broadcast %cst_137 : f32 to vector<8x32xf32>
    %c16_138 = arith.constant 16 : index
    %c32_139 = arith.constant 32 : index
    %161 = vector.load %arg10[%c16_138, %c32_139] : memref<64x128xf32, #tpu.memory_space<vmem>>, vector<8x64xf32>
    %c0_140 = arith.constant 0 : index
    %c0_141 = arith.constant 0 : index
    %162 = vector.load %arg3[%c0_140, %c0_141] : memref<256x32xf32, #tpu.memory_space<vmem>>, vector<64x32xf32>
    %cst_142 = arith.constant dense<0.000000e+00> : vector<8x32xf32>
    %163 = tpu.matmul %161, %162, %cst_142 {dimension_numbers = #tpu.dot_dimension_numbers<[1], [0], [0], [1], [0, 0, 1, 1], [], []>} : vector<8x64xf32>, vector<64x32xf32>, vector<8x32xf32> -> vector<8x32xf32>
    %164 = arith.addf %160, %163 : vector<8x32xf32>
    %c24_143 = arith.constant 24 : index
    %c32_144 = arith.constant 32 : index
    %165 = vector.load %arg10[%c24_143, %c32_144] : memref<64x128xf32, #tpu.memory_space<vmem>>, vector<8x64xf32>
    %c64_145 = arith.constant 64 : index
    %c0_146 = arith.constant 0 : index
    %166 = vector.load %arg3[%c64_145, %c0_146] : memref<256x32xf32, #tpu.memory_space<vmem>>, vector<64x32xf32>
    %cst_147 = arith.constant dense<0.000000e+00> : vector<8x32xf32>
    %167 = tpu.matmul %165, %166, %cst_147 {dimension_numbers = #tpu.dot_dimension_numbers<[1], [0], [0], [1], [0, 0, 1, 1], [], []>} : vector<8x64xf32>, vector<64x32xf32>, vector<8x32xf32> -> vector<8x32xf32>
    %168 = arith.addf %164, %167 : vector<8x32xf32>
    %c32_148 = arith.constant 32 : index
    %c32_149 = arith.constant 32 : index
    %169 = vector.load %arg10[%c32_148, %c32_149] : memref<64x128xf32, #tpu.memory_space<vmem>>, vector<8x64xf32>
    %c128_150 = arith.constant 128 : index
    %c0_151 = arith.constant 0 : index
    %170 = vector.load %arg3[%c128_150, %c0_151] : memref<256x32xf32, #tpu.memory_space<vmem>>, vector<64x32xf32>
    %cst_152 = arith.constant dense<0.000000e+00> : vector<8x32xf32>
    %171 = tpu.matmul %169, %170, %cst_152 {dimension_numbers = #tpu.dot_dimension_numbers<[1], [0], [0], [1], [0, 0, 1, 1], [], []>} : vector<8x64xf32>, vector<64x32xf32>, vector<8x32xf32> -> vector<8x32xf32>
    %172 = arith.addf %168, %171 : vector<8x32xf32>
    %c40_153 = arith.constant 40 : index
    %c32_154 = arith.constant 32 : index
    %173 = vector.load %arg10[%c40_153, %c32_154] : memref<64x128xf32, #tpu.memory_space<vmem>>, vector<8x64xf32>
    %c192_155 = arith.constant 192 : index
    %c0_156 = arith.constant 0 : index
    %174 = vector.load %arg3[%c192_155, %c0_156] : memref<256x32xf32, #tpu.memory_space<vmem>>, vector<64x32xf32>
    %cst_157 = arith.constant dense<0.000000e+00> : vector<8x32xf32>
    %175 = tpu.matmul %173, %174, %cst_157 {dimension_numbers = #tpu.dot_dimension_numbers<[1], [0], [0], [1], [0, 0, 1, 1], [], []>} : vector<8x64xf32>, vector<64x32xf32>, vector<8x32xf32> -> vector<8x32xf32>
    %176 = arith.addf %172, %175 : vector<8x32xf32>
    %177 = vector.broadcast %58 : vector<1x32xf32> to vector<8x32xf32>
    %178 = arith.addf %176, %177 : vector<8x32xf32>
    %cst_158 = arith.constant 0.000000e+00 : f32
    %179 = vector.broadcast %cst_158 : f32 to vector<8x32xf32>
    %180 = arith.maximumf %178, %179 : vector<8x32xf32>
    %c128_159 = arith.constant 128 : index
    %c0_160 = arith.constant 0 : index
    %181 = vector.load %arg5[%c128_159, %c0_160] : memref<288x256xbf16, #tpu.memory_space<vmem>>, vector<32x256xbf16>
    %182 = arith.extf %181 : vector<32x256xbf16> to vector<32x256xf32>
    %cst_161 = arith.constant dense<0.000000e+00> : vector<8x256xf32>
    %183 = tpu.matmul %180, %182, %cst_161 {dimension_numbers = #tpu.dot_dimension_numbers<[1], [0], [0], [1], [0, 0, 1, 1], [], []>} : vector<8x32xf32>, vector<32x256xf32>, vector<8x256xf32> -> vector<8x256xf32>
    %184 = arith.addf %159, %183 : vector<8x256xf32>
    %cst_162 = arith.constant 0.000000e+00 : f32
    %185 = vector.broadcast %cst_162 : f32 to vector<8x32xf32>
    %c16_163 = arith.constant 16 : index
    %c64_164 = arith.constant 64 : index
    %186 = vector.load %arg10[%c16_163, %c64_164] : memref<64x128xf32, #tpu.memory_space<vmem>>, vector<8x64xf32>
    %c0_165 = arith.constant 0 : index
    %c0_166 = arith.constant 0 : index
    %187 = vector.load %arg3[%c0_165, %c0_166] : memref<256x32xf32, #tpu.memory_space<vmem>>, vector<64x32xf32>
    %cst_167 = arith.constant dense<0.000000e+00> : vector<8x32xf32>
    %188 = tpu.matmul %186, %187, %cst_167 {dimension_numbers = #tpu.dot_dimension_numbers<[1], [0], [0], [1], [0, 0, 1, 1], [], []>} : vector<8x64xf32>, vector<64x32xf32>, vector<8x32xf32> -> vector<8x32xf32>
    %189 = arith.addf %185, %188 : vector<8x32xf32>
    %c24_168 = arith.constant 24 : index
    %c64_169 = arith.constant 64 : index
    %190 = vector.load %arg10[%c24_168, %c64_169] : memref<64x128xf32, #tpu.memory_space<vmem>>, vector<8x64xf32>
    %c64_170 = arith.constant 64 : index
    %c0_171 = arith.constant 0 : index
    %191 = vector.load %arg3[%c64_170, %c0_171] : memref<256x32xf32, #tpu.memory_space<vmem>>, vector<64x32xf32>
    %cst_172 = arith.constant dense<0.000000e+00> : vector<8x32xf32>
    %192 = tpu.matmul %190, %191, %cst_172 {dimension_numbers = #tpu.dot_dimension_numbers<[1], [0], [0], [1], [0, 0, 1, 1], [], []>} : vector<8x64xf32>, vector<64x32xf32>, vector<8x32xf32> -> vector<8x32xf32>
    %193 = arith.addf %189, %192 : vector<8x32xf32>
    %c32_173 = arith.constant 32 : index
    %c64_174 = arith.constant 64 : index
    %194 = vector.load %arg10[%c32_173, %c64_174] : memref<64x128xf32, #tpu.memory_space<vmem>>, vector<8x64xf32>
    %c128_175 = arith.constant 128 : index
    %c0_176 = arith.constant 0 : index
    %195 = vector.load %arg3[%c128_175, %c0_176] : memref<256x32xf32, #tpu.memory_space<vmem>>, vector<64x32xf32>
    %cst_177 = arith.constant dense<0.000000e+00> : vector<8x32xf32>
    %196 = tpu.matmul %194, %195, %cst_177 {dimension_numbers = #tpu.dot_dimension_numbers<[1], [0], [0], [1], [0, 0, 1, 1], [], []>} : vector<8x64xf32>, vector<64x32xf32>, vector<8x32xf32> -> vector<8x32xf32>
    %197 = arith.addf %193, %196 : vector<8x32xf32>
    %c40_178 = arith.constant 40 : index
    %c64_179 = arith.constant 64 : index
    %198 = vector.load %arg10[%c40_178, %c64_179] : memref<64x128xf32, #tpu.memory_space<vmem>>, vector<8x64xf32>
    %c192_180 = arith.constant 192 : index
    %c0_181 = arith.constant 0 : index
    %199 = vector.load %arg3[%c192_180, %c0_181] : memref<256x32xf32, #tpu.memory_space<vmem>>, vector<64x32xf32>
    %cst_182 = arith.constant dense<0.000000e+00> : vector<8x32xf32>
    %200 = tpu.matmul %198, %199, %cst_182 {dimension_numbers = #tpu.dot_dimension_numbers<[1], [0], [0], [1], [0, 0, 1, 1], [], []>} : vector<8x64xf32>, vector<64x32xf32>, vector<8x32xf32> -> vector<8x32xf32>
    %201 = arith.addf %197, %200 : vector<8x32xf32>
    %202 = vector.broadcast %58 : vector<1x32xf32> to vector<8x32xf32>
    %203 = arith.addf %201, %202 : vector<8x32xf32>
    %cst_183 = arith.constant 0.000000e+00 : f32
    %204 = vector.broadcast %cst_183 : f32 to vector<8x32xf32>
    %205 = arith.maximumf %203, %204 : vector<8x32xf32>
    %c160 = arith.constant 160 : index
    %c0_184 = arith.constant 0 : index
    %206 = vector.load %arg5[%c160, %c0_184] : memref<288x256xbf16, #tpu.memory_space<vmem>>, vector<32x256xbf16>
    %207 = arith.extf %206 : vector<32x256xbf16> to vector<32x256xf32>
    %cst_185 = arith.constant dense<0.000000e+00> : vector<8x256xf32>
    %208 = tpu.matmul %205, %207, %cst_185 {dimension_numbers = #tpu.dot_dimension_numbers<[1], [0], [0], [1], [0, 0, 1, 1], [], []>} : vector<8x32xf32>, vector<32x256xf32>, vector<8x256xf32> -> vector<8x256xf32>
    %209 = arith.addf %184, %208 : vector<8x256xf32>
    %cst_186 = arith.constant 0.000000e+00 : f32
    %210 = vector.broadcast %cst_186 : f32 to vector<8x32xf32>
    %c32_187 = arith.constant 32 : index
    %c0_188 = arith.constant 0 : index
    %211 = vector.load %arg10[%c32_187, %c0_188] : memref<64x128xf32, #tpu.memory_space<vmem>>, vector<8x64xf32>
    %c0_189 = arith.constant 0 : index
    %c0_190 = arith.constant 0 : index
    %212 = vector.load %arg3[%c0_189, %c0_190] : memref<256x32xf32, #tpu.memory_space<vmem>>, vector<64x32xf32>
    %cst_191 = arith.constant dense<0.000000e+00> : vector<8x32xf32>
    %213 = tpu.matmul %211, %212, %cst_191 {dimension_numbers = #tpu.dot_dimension_numbers<[1], [0], [0], [1], [0, 0, 1, 1], [], []>} : vector<8x64xf32>, vector<64x32xf32>, vector<8x32xf32> -> vector<8x32xf32>
    %214 = arith.addf %210, %213 : vector<8x32xf32>
    %c40_192 = arith.constant 40 : index
    %c0_193 = arith.constant 0 : index
    %215 = vector.load %arg10[%c40_192, %c0_193] : memref<64x128xf32, #tpu.memory_space<vmem>>, vector<8x64xf32>
    %c64_194 = arith.constant 64 : index
    %c0_195 = arith.constant 0 : index
    %216 = vector.load %arg3[%c64_194, %c0_195] : memref<256x32xf32, #tpu.memory_space<vmem>>, vector<64x32xf32>
    %cst_196 = arith.constant dense<0.000000e+00> : vector<8x32xf32>
    %217 = tpu.matmul %215, %216, %cst_196 {dimension_numbers = #tpu.dot_dimension_numbers<[1], [0], [0], [1], [0, 0, 1, 1], [], []>} : vector<8x64xf32>, vector<64x32xf32>, vector<8x32xf32> -> vector<8x32xf32>
    %218 = arith.addf %214, %217 : vector<8x32xf32>
    %c48_197 = arith.constant 48 : index
    %c0_198 = arith.constant 0 : index
    %219 = vector.load %arg10[%c48_197, %c0_198] : memref<64x128xf32, #tpu.memory_space<vmem>>, vector<8x64xf32>
    %c128_199 = arith.constant 128 : index
    %c0_200 = arith.constant 0 : index
    %220 = vector.load %arg3[%c128_199, %c0_200] : memref<256x32xf32, #tpu.memory_space<vmem>>, vector<64x32xf32>
    %cst_201 = arith.constant dense<0.000000e+00> : vector<8x32xf32>
    %221 = tpu.matmul %219, %220, %cst_201 {dimension_numbers = #tpu.dot_dimension_numbers<[1], [0], [0], [1], [0, 0, 1, 1], [], []>} : vector<8x64xf32>, vector<64x32xf32>, vector<8x32xf32> -> vector<8x32xf32>
    %222 = arith.addf %218, %221 : vector<8x32xf32>
    %c56 = arith.constant 56 : index
    %c0_202 = arith.constant 0 : index
    %223 = vector.load %arg10[%c56, %c0_202] : memref<64x128xf32, #tpu.memory_space<vmem>>, vector<8x64xf32>
    %c192_203 = arith.constant 192 : index
    %c0_204 = arith.constant 0 : index
    %224 = vector.load %arg3[%c192_203, %c0_204] : memref<256x32xf32, #tpu.memory_space<vmem>>, vector<64x32xf32>
    %cst_205 = arith.constant dense<0.000000e+00> : vector<8x32xf32>
    %225 = tpu.matmul %223, %224, %cst_205 {dimension_numbers = #tpu.dot_dimension_numbers<[1], [0], [0], [1], [0, 0, 1, 1], [], []>} : vector<8x64xf32>, vector<64x32xf32>, vector<8x32xf32> -> vector<8x32xf32>
    %226 = arith.addf %222, %225 : vector<8x32xf32>
    %227 = vector.broadcast %58 : vector<1x32xf32> to vector<8x32xf32>
    %228 = arith.addf %226, %227 : vector<8x32xf32>
    %cst_206 = arith.constant 0.000000e+00 : f32
    %229 = vector.broadcast %cst_206 : f32 to vector<8x32xf32>
    %230 = arith.maximumf %228, %229 : vector<8x32xf32>
    %c192_207 = arith.constant 192 : index
    %c0_208 = arith.constant 0 : index
    %231 = vector.load %arg5[%c192_207, %c0_208] : memref<288x256xbf16, #tpu.memory_space<vmem>>, vector<32x256xbf16>
    %232 = arith.extf %231 : vector<32x256xbf16> to vector<32x256xf32>
    %cst_209 = arith.constant dense<0.000000e+00> : vector<8x256xf32>
    %233 = tpu.matmul %230, %232, %cst_209 {dimension_numbers = #tpu.dot_dimension_numbers<[1], [0], [0], [1], [0, 0, 1, 1], [], []>} : vector<8x32xf32>, vector<32x256xf32>, vector<8x256xf32> -> vector<8x256xf32>
    %234 = arith.addf %209, %233 : vector<8x256xf32>
    %cst_210 = arith.constant 0.000000e+00 : f32
    %235 = vector.broadcast %cst_210 : f32 to vector<8x32xf32>
    %c32_211 = arith.constant 32 : index
    %c32_212 = arith.constant 32 : index
    %236 = vector.load %arg10[%c32_211, %c32_212] : memref<64x128xf32, #tpu.memory_space<vmem>>, vector<8x64xf32>
    %c0_213 = arith.constant 0 : index
    %c0_214 = arith.constant 0 : index
    %237 = vector.load %arg3[%c0_213, %c0_214] : memref<256x32xf32, #tpu.memory_space<vmem>>, vector<64x32xf32>
    %cst_215 = arith.constant dense<0.000000e+00> : vector<8x32xf32>
    %238 = tpu.matmul %236, %237, %cst_215 {dimension_numbers = #tpu.dot_dimension_numbers<[1], [0], [0], [1], [0, 0, 1, 1], [], []>} : vector<8x64xf32>, vector<64x32xf32>, vector<8x32xf32> -> vector<8x32xf32>
    %239 = arith.addf %235, %238 : vector<8x32xf32>
    %c40_216 = arith.constant 40 : index
    %c32_217 = arith.constant 32 : index
    %240 = vector.load %arg10[%c40_216, %c32_217] : memref<64x128xf32, #tpu.memory_space<vmem>>, vector<8x64xf32>
    %c64_218 = arith.constant 64 : index
    %c0_219 = arith.constant 0 : index
    %241 = vector.load %arg3[%c64_218, %c0_219] : memref<256x32xf32, #tpu.memory_space<vmem>>, vector<64x32xf32>
    %cst_220 = arith.constant dense<0.000000e+00> : vector<8x32xf32>
    %242 = tpu.matmul %240, %241, %cst_220 {dimension_numbers = #tpu.dot_dimension_numbers<[1], [0], [0], [1], [0, 0, 1, 1], [], []>} : vector<8x64xf32>, vector<64x32xf32>, vector<8x32xf32> -> vector<8x32xf32>
    %243 = arith.addf %239, %242 : vector<8x32xf32>
    %c48_221 = arith.constant 48 : index
    %c32_222 = arith.constant 32 : index
    %244 = vector.load %arg10[%c48_221, %c32_222] : memref<64x128xf32, #tpu.memory_space<vmem>>, vector<8x64xf32>
    %c128_223 = arith.constant 128 : index
    %c0_224 = arith.constant 0 : index
    %245 = vector.load %arg3[%c128_223, %c0_224] : memref<256x32xf32, #tpu.memory_space<vmem>>, vector<64x32xf32>
    %cst_225 = arith.constant dense<0.000000e+00> : vector<8x32xf32>
    %246 = tpu.matmul %244, %245, %cst_225 {dimension_numbers = #tpu.dot_dimension_numbers<[1], [0], [0], [1], [0, 0, 1, 1], [], []>} : vector<8x64xf32>, vector<64x32xf32>, vector<8x32xf32> -> vector<8x32xf32>
    %247 = arith.addf %243, %246 : vector<8x32xf32>
    %c56_226 = arith.constant 56 : index
    %c32_227 = arith.constant 32 : index
    %248 = vector.load %arg10[%c56_226, %c32_227] : memref<64x128xf32, #tpu.memory_space<vmem>>, vector<8x64xf32>
    %c192_228 = arith.constant 192 : index
    %c0_229 = arith.constant 0 : index
    %249 = vector.load %arg3[%c192_228, %c0_229] : memref<256x32xf32, #tpu.memory_space<vmem>>, vector<64x32xf32>
    %cst_230 = arith.constant dense<0.000000e+00> : vector<8x32xf32>
    %250 = tpu.matmul %248, %249, %cst_230 {dimension_numbers = #tpu.dot_dimension_numbers<[1], [0], [0], [1], [0, 0, 1, 1], [], []>} : vector<8x64xf32>, vector<64x32xf32>, vector<8x32xf32> -> vector<8x32xf32>
    %251 = arith.addf %247, %250 : vector<8x32xf32>
    %252 = vector.broadcast %58 : vector<1x32xf32> to vector<8x32xf32>
    %253 = arith.addf %251, %252 : vector<8x32xf32>
    %cst_231 = arith.constant 0.000000e+00 : f32
    %254 = vector.broadcast %cst_231 : f32 to vector<8x32xf32>
    %255 = arith.maximumf %253, %254 : vector<8x32xf32>
    %c224 = arith.constant 224 : index
    %c0_232 = arith.constant 0 : index
    %256 = vector.load %arg5[%c224, %c0_232] : memref<288x256xbf16, #tpu.memory_space<vmem>>, vector<32x256xbf16>
    %257 = arith.extf %256 : vector<32x256xbf16> to vector<32x256xf32>
    %cst_233 = arith.constant dense<0.000000e+00> : vector<8x256xf32>
    %258 = tpu.matmul %255, %257, %cst_233 {dimension_numbers = #tpu.dot_dimension_numbers<[1], [0], [0], [1], [0, 0, 1, 1], [], []>} : vector<8x32xf32>, vector<32x256xf32>, vector<8x256xf32> -> vector<8x256xf32>
    %259 = arith.addf %234, %258 : vector<8x256xf32>
    %cst_234 = arith.constant 0.000000e+00 : f32
    %260 = vector.broadcast %cst_234 : f32 to vector<8x32xf32>
    %c32_235 = arith.constant 32 : index
    %c64_236 = arith.constant 64 : index
    %261 = vector.load %arg10[%c32_235, %c64_236] : memref<64x128xf32, #tpu.memory_space<vmem>>, vector<8x64xf32>
    %c0_237 = arith.constant 0 : index
    %c0_238 = arith.constant 0 : index
    %262 = vector.load %arg3[%c0_237, %c0_238] : memref<256x32xf32, #tpu.memory_space<vmem>>, vector<64x32xf32>
    %cst_239 = arith.constant dense<0.000000e+00> : vector<8x32xf32>
    %263 = tpu.matmul %261, %262, %cst_239 {dimension_numbers = #tpu.dot_dimension_numbers<[1], [0], [0], [1], [0, 0, 1, 1], [], []>} : vector<8x64xf32>, vector<64x32xf32>, vector<8x32xf32> -> vector<8x32xf32>
    %264 = arith.addf %260, %263 : vector<8x32xf32>
    %c40_240 = arith.constant 40 : index
    %c64_241 = arith.constant 64 : index
    %265 = vector.load %arg10[%c40_240, %c64_241] : memref<64x128xf32, #tpu.memory_space<vmem>>, vector<8x64xf32>
    %c64_242 = arith.constant 64 : index
    %c0_243 = arith.constant 0 : index
    %266 = vector.load %arg3[%c64_242, %c0_243] : memref<256x32xf32, #tpu.memory_space<vmem>>, vector<64x32xf32>
    %cst_244 = arith.constant dense<0.000000e+00> : vector<8x32xf32>
    %267 = tpu.matmul %265, %266, %cst_244 {dimension_numbers = #tpu.dot_dimension_numbers<[1], [0], [0], [1], [0, 0, 1, 1], [], []>} : vector<8x64xf32>, vector<64x32xf32>, vector<8x32xf32> -> vector<8x32xf32>
    %268 = arith.addf %264, %267 : vector<8x32xf32>
    %c48_245 = arith.constant 48 : index
    %c64_246 = arith.constant 64 : index
    %269 = vector.load %arg10[%c48_245, %c64_246] : memref<64x128xf32, #tpu.memory_space<vmem>>, vector<8x64xf32>
    %c128_247 = arith.constant 128 : index
    %c0_248 = arith.constant 0 : index
    %270 = vector.load %arg3[%c128_247, %c0_248] : memref<256x32xf32, #tpu.memory_space<vmem>>, vector<64x32xf32>
    %cst_249 = arith.constant dense<0.000000e+00> : vector<8x32xf32>
    %271 = tpu.matmul %269, %270, %cst_249 {dimension_numbers = #tpu.dot_dimension_numbers<[1], [0], [0], [1], [0, 0, 1, 1], [], []>} : vector<8x64xf32>, vector<64x32xf32>, vector<8x32xf32> -> vector<8x32xf32>
    %272 = arith.addf %268, %271 : vector<8x32xf32>
    %c56_250 = arith.constant 56 : index
    %c64_251 = arith.constant 64 : index
    %273 = vector.load %arg10[%c56_250, %c64_251] : memref<64x128xf32, #tpu.memory_space<vmem>>, vector<8x64xf32>
    %c192_252 = arith.constant 192 : index
    %c0_253 = arith.constant 0 : index
    %274 = vector.load %arg3[%c192_252, %c0_253] : memref<256x32xf32, #tpu.memory_space<vmem>>, vector<64x32xf32>
    %cst_254 = arith.constant dense<0.000000e+00> : vector<8x32xf32>
    %275 = tpu.matmul %273, %274, %cst_254 {dimension_numbers = #tpu.dot_dimension_numbers<[1], [0], [0], [1], [0, 0, 1, 1], [], []>} : vector<8x64xf32>, vector<64x32xf32>, vector<8x32xf32> -> vector<8x32xf32>
    %276 = arith.addf %272, %275 : vector<8x32xf32>
    %277 = vector.broadcast %58 : vector<1x32xf32> to vector<8x32xf32>
    %278 = arith.addf %276, %277 : vector<8x32xf32>
    %cst_255 = arith.constant 0.000000e+00 : f32
    %279 = vector.broadcast %cst_255 : f32 to vector<8x32xf32>
    %280 = arith.maximumf %278, %279 : vector<8x32xf32>
    %c256_256 = arith.constant 256 : index
    %c0_257 = arith.constant 0 : index
    %281 = vector.load %arg5[%c256_256, %c0_257] : memref<288x256xbf16, #tpu.memory_space<vmem>>, vector<32x256xbf16>
    %282 = arith.extf %281 : vector<32x256xbf16> to vector<32x256xf32>
    %cst_258 = arith.constant dense<0.000000e+00> : vector<8x256xf32>
    %283 = tpu.matmul %280, %282, %cst_258 {dimension_numbers = #tpu.dot_dimension_numbers<[1], [0], [0], [1], [0, 0, 1, 1], [], []>} : vector<8x32xf32>, vector<32x256xf32>, vector<8x256xf32> -> vector<8x256xf32>
    %284 = arith.addf %259, %283 : vector<8x256xf32>
    %c0_259 = arith.constant 0 : index
    %c0_260 = arith.constant 0 : index
    %285 = vector.load %arg6[%c0_259, %c0_260] : memref<1x256xf32, #tpu.memory_space<vmem>>, vector<1x256xf32>
    %286 = vector.broadcast %285 : vector<1x256xf32> to vector<8x256xf32>
    %287 = arith.addf %284, %286 : vector<8x256xf32>
    %cst_261 = arith.constant 0.000000e+00 : f32
    %288 = vector.broadcast %cst_261 : f32 to vector<8x256xf32>
    %289 = arith.maximumf %287, %288 : vector<8x256xf32>
    %c0_262 = arith.constant 0 : index
    %c0_263 = arith.constant 0 : index
    %290 = vector.load %arg7[%c0_262, %c0_263] : memref<256x7xf32, #tpu.memory_space<vmem>>, vector<256x7xf32>
    %cst_264 = arith.constant dense<0.000000e+00> : vector<8x7xf32>
    %291 = tpu.matmul %289, %290, %cst_264 {dimension_numbers = #tpu.dot_dimension_numbers<[1], [0], [0], [1], [0, 0, 1, 1], [], []>} : vector<8x256xf32>, vector<256x7xf32>, vector<8x7xf32> -> vector<8x7xf32>
    %c0_265 = arith.constant 0 : index
    %c0_266 = arith.constant 0 : index
    %292 = vector.load %arg8[%c0_265, %c0_266] : memref<1x7xf32, #tpu.memory_space<vmem>>, vector<1x7xf32>
    %293 = vector.broadcast %292 : vector<1x7xf32> to vector<8x7xf32>
    %294 = arith.addf %291, %293 : vector<8x7xf32>
    %295 = tpu.iota {dimensions = array<i32: 1>} : vector<8x7xi32>
    %c6_i32 = arith.constant 6 : i32
    %296 = vector.broadcast %c6_i32 : i32 to vector<8x7xi32>
    %297 = arith.cmpi slt, %295, %296 : vector<8x7xi32>
    %cst_267 = arith.constant 0xFF800000 : f32
    %298 = vector.broadcast %cst_267 : f32 to vector<8x7xf32>
    %299 = arith.select %297, %294, %298 : vector<8x7xi1>, vector<8x7xf32>
    %cst_268 = arith.constant dense<0xFF800000> : vector<8xf32>
    %300 = vector.multi_reduction <maximumf>, %299, %cst_268 [1] : vector<8x7xf32> to vector<8xf32>
    %301 = vector.shape_cast %300 : vector<8xf32> to vector<8x1xf32>
    %302 = vector.broadcast %301 : vector<8x1xf32> to vector<8x7xf32>
    %303 = arith.subf %299, %302 : vector<8x7xf32>
    %304 = math.exp %303 : vector<8x7xf32>
    %cst_269 = arith.constant dense<0.000000e+00> : vector<8xf32>
    %305 = vector.multi_reduction <add>, %304, %cst_269 [1] : vector<8x7xf32> to vector<8xf32>
    %306 = vector.shape_cast %305 : vector<8xf32> to vector<8x1xf32>
    %307 = tpu.reciprocal %306 {approx = true} : vector<8x1xf32> -> vector<8x1xf32>
    %308 = vector.broadcast %307 : vector<8x1xf32> to vector<8x7xf32>
    %309 = arith.mulf %304, %308 : vector<8x7xf32>
    %310 = arith.select %297, %309, %294 : vector<8x7xi1>, vector<8x7xf32>
    %c0_270 = arith.constant 0 : index
    %c0_271 = arith.constant 0 : index
    %311 = vector.load %arg9[%c0_270, %c0_271] : memref<8x7xf32, #tpu.memory_space<vmem>>, vector<8x7xf32>
    tpu.vector_store %arg9[%c0_270, %c0_271], %310 {strides = array<i32>} : memref<8x7xf32, #tpu.memory_space<vmem>>, vector<8x7xf32>,
    return
  }
}

</mosaic_0001>

<bundles_post_ra>
// kernel: cnn_model_forward.1
= control target key start
LH: loop header
LB: loop body
LE: loop exit
PB: predicated region body
PF: predicated region fallthrough
CT: control target
= control target key end

     0   :  { %vm200_vm0 = vcmask 130048   ;;  %s7495_s17 = smov 16   ;;  %s7496_s18 = smov 32   ;;  %vm370_vm1 = vcmask 261248   ;;  %vm7502_vm2 = vmmov 0   ;;  %vm540_vm3 = vcmask 392448   ;;  %s9405_s1 = inlined_call_operand.vmem [shape: f32[256,16], index: 1, kind: input, shape index: {}]   ;;  %s9406_s0 = inlined_call_operand.vmem [shape: f32[512,256], index: 0, kind: input, shape index: {}]   ;;  %s9407_s2 = inlined_call_operand.vmem [shape: f32[1,16], index: 2, kind: input, shape index: {}]   ;;  %s9408_s3 = inlined_call_operand.vmem [shape: f32[256,32], index: 3, kind: input, shape index: {}]   ;;  %s9409_s5 = inlined_call_operand.vmem [shape: bf16[288,256], index: 5, kind: input, shape index: {}]   ;;  %s9410_s4 = inlined_call_operand.vmem [shape: f32[1,32], index: 4, kind: input, shape index: {}]   ;;  %s9411_s7 = inlined_call_operand.vmem [shape: f32[256,7], index: 7, kind: input, shape index: {}]   ;;  %s9412_s6 = inlined_call_operand.vmem [shape: f32[1,256], index: 6, kind: input, shape index: {}]   ;;  %s9413_s8 = inlined_call_operand.vmem [shape: f32[1,7], index: 8, kind: input, shape index: {}]   ;;  %s9414_s9 = inlined_call_operand.vmem [shape: f32[8,7], index: 9, kind: output, shape index: {}]  }
   0x1   :  { %v48_v0 = vld [vmem:[%s9405_s1 + $0x80] sm:$0xff]  ;;  %v49_v1 = vld [vmem:[%s9405_s1 + $0x88] sm:$0xff]  ;;  %v50_v5 = vld [vmem:[%s9405_s1 + $0x90] sm:$0xff]  ;;  %s7497_s19 = smov 48   ;;  %s7498_s20 = smov 64   ;;  %vm710_vm4 = vcmask 523648  }
   0x2   :  { %v32_v2 = vld [vmem:[%s9405_s1] sm:$0xff]  ;;  %v7564_v3 = vpack.c.bf16 %v49_v1, %v48_v0  ;;  %v33_v4 = vld [vmem:[%s9405_s1 + $0x8] sm:$0xff]  ;;  %v51_v6 = vld [vmem:[%s9405_s1 + $0x98] sm:$0xff]  ;;  %s7499_s21 = smov 80   ;;  %s7500_s22 = smov 96   ;;  %vm880_vm5 = vcmask 654848  }
   0x3   :  { %v7575_v7 = vpack.c.bf16 %v33_v4, %v32_v2  ;;  %v7577_v8 = vpack.c.bf16 %v51_v6, %v50_v5  ;;  %v34_v9 = vld [vmem:[%s9405_s1 + $0x10] sm:$0xff]  ;;  %v35_v10 = vld [vmem:[%s9405_s1 + $0x18] sm:$0xff]  ;;  %v52_v11 = vld [vmem:[%s9405_s1 + $0xa0] sm:$0xff]  ;;  %s7504_s30 = smov 112   ;;  %vm1050_vm6 = vcmask 786048   ;;  %vm1220_vm7 = vcmask 917248  }
   0x4   :  { %6567 = vmatprep.subr.bf16.mxu0 %v7564_v3  ;;  %6599 = vmatprep.subr.bf16.mxu1 %v7564_v3  ;;  %v53_v12 = vld [vmem:[%s9405_s1 + $0xa8] sm:$0xff]  ;;  %v7595_v13 = vpack.c.bf16 %v35_v10, %v34_v9  ;;  %v36_v15 = vld [vmem:[%s9405_s1 + $0x20] sm:$0xff]  ;;  %v54_v17 = vld [vmem:[%s9405_s1 + $0xb0] sm:$0xff]  ;;  %vm1390_vm8 = vcmask 1048448   ;;  %vm1418_vm9 = vcmask 523264   ;;  %vm2063_vm10 = vcmask 261120  }
   0x5   :  { %6569 = vmatpush3.bf16.msra.mxu0 %v7575_v7  ;;  %6601 = vmatpush3.bf16.msra.mxu1 %v7575_v7  ;;  %v7599_v14 = vpack.c.bf16 %v53_v12, %v52_v11  ;;  %v37_v16 = vld [vmem:[%s9405_s1 + $0x28] sm:$0xff]  ;;  %v55_v18 = vld [vmem:[%s9405_s1 + $0xb8] sm:$0xff]  ;;  %v38_v21 = vld [vmem:[%s9405_s1 + $0x30] sm:$0xff]  ;;  %vm5009_vm12 = vcmask 56320  }
   0x6   :  { %6571 = vmatprep.subr.bf16.mxu0 %v7577_v8  ;;  %6603 = vmatprep.subr.bf16.mxu1 %v7577_v8  ;;  %v7615_v19 = vpack.c.bf16 %v37_v16, %v36_v15  ;;  %v7619_v20 = vpack.c.bf16 %v55_v18, %v54_v17  ;;  %v39_v22 = vld [vmem:[%s9405_s1 + $0x38] sm:$0xff]  ;;  %v56_v23 = vld [vmem:[%s9405_s1 + $0xc0] sm:$0xff]  ;;  %v57_v24 = vld [vmem:[%s9405_s1 + $0xc8] sm:$0xff] }
   0x7   :  { %v66_v25 = vld [vmem:[%s9406_s0 + $0x8] sm:$0xff]  ;;  %v7641_v27 = vpack.c.bf16 %v39_v22, %v38_v21  ;;  %v7645_v28 = vpack.c.bf16 %v57_v24, %v56_v23  ;;  %v40_v29 = vld [vmem:[%s9405_s1 + $0x40] sm:$0xff]  ;;  %v58_v31 = vld [vmem:[%s9405_s1 + $0xd0] sm:$0xff] }
   0x8   :  { %151 = vmatprep.mubr.f32.mxu0 %v66_v25  ;;  %v210_v26 = vld [vmem:[%s9406_s0 + $0x88] sm:$0xff]  ;;  %v59_v32 = vld [vmem:[%s9405_s1 + $0xd8] sm:$0xff]  ;;  %v42_v35 = vld [vmem:[%s9405_s1 + $0x50] sm:$0xff] }
   0x9   :  { %6573 = vmatpush3.bf16.msra.mxu0 %v7595_v13  ;;  %6605 = vmatpush3.bf16.msra.mxu1 %v7595_v13  ;;  %v41_v30 = vld [vmem:[%s9405_s1 + $0x48] sm:$0xff]  ;;  %v7665_v34 = vpack.c.bf16 %v59_v32, %v58_v31  ;;  %v43_v36 = vld [vmem:[%s9405_s1 + $0x58] sm:$0xff]  ;;  %v60_v37 = vld [vmem:[%s9405_s1 + $0xe0] sm:$0xff] }
   0xa   :  { %6575 = vmatprep.subr.bf16.mxu0 %v7599_v14  ;;  %6607 = vmatprep.subr.bf16.mxu1 %v7599_v14  ;;  %v7661_v33 = vpack.c.bf16 %v41_v30, %v40_v29  ;;  %v61_v38 = vld [vmem:[%s9405_s1 + $0xe8] sm:$0xff]  ;;  %v7681_v39 = vpack.c.bf16 %v43_v36, %v42_v35  ;;  %v44_v41 = vld [vmem:[%s9405_s1 + $0x60] sm:$0xff]  ;;  %v62_v43 = vld [vmem:[%s9405_s1 + $0xf0] sm:$0xff] }
   0xb   :  { %289 = vmatprep.mubr.f32.mxu1 %v210_v26  ;;  %v7685_v40 = vpack.c.bf16 %v61_v38, %v60_v37  ;;  %v45_v42 = vld [vmem:[%s9405_s1 + $0x68] sm:$0xff]  ;;  %v63_v44 = vld [vmem:[%s9405_s1 + $0xf8] sm:$0xff]  ;;  %v46_v47 = vld [vmem:[%s9405_s1 + $0x70] sm:$0xff] }
   0xc   :  { %v7701_v45 = vpack.c.bf16 %v45_v42, %v44_v41  ;;  %v7705_v46 = vpack.c.bf16 %v63_v44, %v62_v43  ;;  %v47_v48 = vld [vmem:[%s9405_s1 + $0x78] sm:$0xff]  ;;  %v65_v50 = vld [vmem:[%s9406_s0] sm:$0xff]  ;;  %v67_v54 = vld [vmem:[%s9406_s0 + $0x10] sm:$0xff] }
   0xd   :  { %6577 = vmatpush3.bf16.msra.mxu0 %v7615_v19  ;;  %6609 = vmatpush3.bf16.msra.mxu1 %v7615_v19  ;;  %v7715_v49 = vpack.c.bf16 %v47_v48, %v46_v47  ;;  %v209_v51 = vld [vmem:[%s9406_s0 + $0x80] sm:$0xff]  ;;  %v68_v52 = vld [vmem:[%s9406_s0 + $0x18] sm:$0xff]  ;;  %v211_v55 = vld [vmem:[%s9406_s0 + $0x90] sm:$0xff] }
   0xe   :  { %6579 = vmatprep.subr.bf16.mxu0 %v7619_v20  ;;  %6611 = vmatprep.subr.bf16.mxu1 %v7619_v20  ;;  %v212_v53 = vld [vmem:[%s9406_s0 + $0x98] sm:$0xff]  ;;  %v70_v56 = vld [vmem:[%s9406_s0 + $0x28] sm:$0xff]  ;;  %v69_v58 = vld [vmem:[%s9406_s0 + $0x20] sm:$0xff] }
   0xf   :  { %v214_v57 = vld [vmem:[%s9406_s0 + $0xa8] sm:$0xff]  ;;  %v213_v59 = vld [vmem:[%s9406_s0 + $0xa0] sm:$0xff]  ;;  %v72_v60 = vld [vmem:[%s9406_s0 + $0x38] sm:$0xff] }
  0x10   :  { %v216_v61 = vld [vmem:[%s9406_s0 + $0xb8] sm:$0xff]  ;;  %v71_v62 = vld [vmem:[%s9406_s0 + $0x30] sm:$0xff]  ;;  %v74_v0 = vld [vmem:[%s9406_s0 + $0x48] sm:$0xff] }
  0x11   :  { %6581 = vmatpush3.bf16.msra.mxu0 %v7641_v27  ;;  %6613 = vmatpush3.bf16.msra.mxu1 %v7641_v27  ;;  %v215_v63 = vld [vmem:[%s9406_s0 + $0xb0] sm:$0xff]  ;;  %v218_v1 = vld [vmem:[%s9406_s0 + $0xc8] sm:$0xff]  ;;  %v73_v2 = vld [vmem:[%s9406_s0 + $0x40] sm:$0xff] }
  0x12   :  { %6583 = vmatprep.subr.bf16.mxu0 %v7645_v28  ;;  %6615 = vmatprep.subr.bf16.mxu1 %v7645_v28  ;;  %v217_v4 = vld [vmem:[%s9406_s0 + $0xc0] sm:$0xff]  ;;  %v76_v5 = vld [vmem:[%s9406_s0 + $0x58] sm:$0xff]  ;;  %v75_v9 = vld [vmem:[%s9406_s0 + $0x50] sm:$0xff] }
  0x13   :  { %v220_v6 = vld [vmem:[%s9406_s0 + $0xd8] sm:$0xff]  ;;  %v219_v10 = vld [vmem:[%s9406_s0 + $0xd0] sm:$0xff]  ;;  %v78_v11 = vld [vmem:[%s9406_s0 + $0x68] sm:$0xff] }
  0x14   :  { %v222_v12 = vld [vmem:[%s9406_s0 + $0xe8] sm:$0xff]  ;;  %v77_v15 = vld [vmem:[%s9406_s0 + $0x60] sm:$0xff]  ;;  %v80_v17 = vld [vmem:[%s9406_s0 + $0x78] sm:$0xff] }
  0x15   :  { %6585 = vmatpush3.bf16.msra.mxu0 %v7661_v33  ;;  %6617 = vmatpush3.bf16.msra.mxu1 %v7661_v33  ;;  %v221_v16 = vld [vmem:[%s9406_s0 + $0xe0] sm:$0xff]  ;;  %v224_v18 = vld [vmem:[%s9406_s0 + $0xf8] sm:$0xff]  ;;  %v79_v21 = vld [vmem:[%s9406_s0 + $0x70] sm:$0xff] }
  0x16   :  { %6587 = vmatprep.subr.bf16.mxu0 %v7665_v34  ;;  %6619 = vmatprep.subr.bf16.mxu1 %v7665_v34  ;;  %v223_v22 = vld [vmem:[%s9406_s0 + $0xf0] sm:$0xff]  ;;  %v380_v23 = vld [vmem:[%s9406_s0 + $0x108] sm:$0xff]  ;;  %v379_v25 = vld [vmem:[%s9406_s0 + $0x100] sm:$0xff] }
  0x17   :  { %v550_v24 = vld [vmem:[%s9406_s0 + $0x188] sm:$0xff]  ;;  %v549_v26 = vld [vmem:[%s9406_s0 + $0x180] sm:$0xff]  ;;  %v382_v29 = vld [vmem:[%s9406_s0 + $0x118] sm:$0xff] }
  0x18   :  { %v552_v30 = vld [vmem:[%s9406_s0 + $0x198] sm:$0xff]  ;;  %v381_v31 = vld [vmem:[%s9406_s0 + $0x110] sm:$0xff]  ;;  %v384_v35 = vld [vmem:[%s9406_s0 + $0x128] sm:$0xff] }
  0x19   :  { %6589 = vmatpush3.bf16.msra.mxu0 %v7681_v39  ;;  %6621 = vmatpush3.bf16.msra.mxu1 %v7681_v39  ;;  %v551_v32 = vld [vmem:[%s9406_s0 + $0x190] sm:$0xff]  ;;  %v554_v36 = vld [vmem:[%s9406_s0 + $0x1a8] sm:$0xff]  ;;  %v383_v37 = vld [vmem:[%s9406_s0 + $0x120] sm:$0xff] }
  0x1a   :  { %6591 = vmatprep.subr.bf16.mxu0 %v7685_v40  ;;  %6623 = vmatprep.subr.bf16.mxu1 %v7685_v40  ;;  %v553_v38 = vld [vmem:[%s9406_s0 + $0x1a0] sm:$0xff]  ;;  %v386_v41 = vld [vmem:[%s9406_s0 + $0x138] sm:$0xff]  ;;  %v385_v43 = vld [vmem:[%s9406_s0 + $0x130] sm:$0xff] }
  0x1b   :  { %v556_v42 = vld [vmem:[%s9406_s0 + $0x1b8] sm:$0xff]  ;;  %v555_v44 = vld [vmem:[%s9406_s0 + $0x1b0] sm:$0xff]  ;;  %v388_v47 = vld [vmem:[%s9406_s0 + $0x148] sm:$0xff] }
  0x1c   :  { %v558_v48 = vld [vmem:[%s9406_s0 + $0x1c8] sm:$0xff] }
  0x1d   :  { %6593 = vmatpush3.bf16.msra.mxu0 %v7701_v45  ;;  %6625 = vmatpush3.bf16.msra.mxu1 %v7701_v45 }
  0x1e   :  { %6595 = vmatprep.subr.bf16.mxu0 %v7705_v46  ;;  %6627 = vmatprep.subr.bf16.mxu1 %v7705_v46 }
  0x21   :  { %6597 = vmatpush3.bf16.msra.mxu0 %v7715_v49  ;;  %6629 = vmatpush3.bf16.msra.mxu1 %v7715_v49 }
  0x22   :  { %6631 = vmatprep.subr.bf16.mxu0 %v7564_v3  ;;  %6663 = vmatprep.subr.bf16.mxu1 %v7564_v3 }
  0x24   :  { %152 = vmatmul.mubr.f32.vlgmr.msra.gmra.mrb[0].mxu0 %v65_v50  ;;  %290 = vmatmul.mubr.f32.vlgmr.msra.gmra.mrb[0].mxu1 %v209_v51  ;;  %v387_v50 = vld [vmem:[%s9406_s0 + $0x140] sm:$0xff] }
  0x25   :  { %6633 = vmatpush3.bf16.msra.mxu0 %v7575_v7  ;;  %6665 = vmatpush3.bf16.msra.mxu1 %v7575_v7  ;;  %v557_v51 = vld [vmem:[%s9406_s0 + $0x1c0] sm:$0xff] }
  0x26   :  { %156 = vmatprep.mubr.f32.mxu0 %v68_v52  ;;  %294 = vmatprep.mubr.f32.mxu1 %v212_v53  ;;  %v390_v52 = vld [vmem:[%s9406_s0 + $0x158] sm:$0xff] }
  0x27   :  { %6635 = vmatprep.subr.bf16.mxu0 %v7577_v8  ;;  %6667 = vmatprep.subr.bf16.mxu1 %v7577_v8  ;;  %v560_v53 = vld [vmem:[%s9406_s0 + $0x1d8] sm:$0xff] }
  0x28   :  { %157 = vmatmul.mubr.f32.gmra.mrb[2].mxu0 %v67_v54  ;;  %295 = vmatmul.mubr.f32.gmra.mrb[2].mxu1 %v211_v55  ;;  %v389_v54 = vld [vmem:[%s9406_s0 + $0x150] sm:$0xff] }
  0x29   :  { %6637 = vmatpush3.bf16.msra.mxu0 %v7595_v13  ;;  %6669 = vmatpush3.bf16.msra.mxu1 %v7595_v13  ;;  %v559_v55 = vld [vmem:[%s9406_s0 + $0x1d0] sm:$0xff] }
  0x2a   :  { %161 = vmatprep.mubr.f32.mxu0 %v70_v56  ;;  %299 = vmatprep.mubr.f32.mxu1 %v214_v57  ;;  %v392_v56 = vld [vmem:[%s9406_s0 + $0x168] sm:$0xff] }
  0x2b   :  { %6639 = vmatprep.subr.bf16.mxu0 %v7599_v14  ;;  %6671 = vmatprep.subr.bf16.mxu1 %v7599_v14  ;;  %v562_v57 = vld [vmem:[%s9406_s0 + $0x1e8] sm:$0xff] }
  0x2c   :  { %162 = vmatmul.mubr.f32.gmra.mrb[4].mxu0 %v69_v58  ;;  %300 = vmatmul.mubr.f32.gmra.mrb[4].mxu1 %v213_v59  ;;  %v391_v58 = vld [vmem:[%s9406_s0 + $0x160] sm:$0xff] }
  0x2d   :  { %6641 = vmatpush3.bf16.msra.mxu0 %v7615_v19  ;;  %6673 = vmatpush3.bf16.msra.mxu1 %v7615_v19  ;;  %v561_v59 = vld [vmem:[%s9406_s0 + $0x1e0] sm:$0xff] }
  0x2e   :  { %166 = vmatprep.mubr.f32.mxu0 %v72_v60  ;;  %304 = vmatprep.mubr.f32.mxu1 %v216_v61  ;;  %v394_v60 = vld [vmem:[%s9406_s0 + $0x178] sm:$0xff] }
  0x2f   :  { %6643 = vmatprep.subr.bf16.mxu0 %v7619_v20  ;;  %6675 = vmatprep.subr.bf16.mxu1 %v7619_v20  ;;  %v564_v61 = vld [vmem:[%s9406_s0 + $0x1f8] sm:$0xff] }
  0x30   :  { %167 = vmatmul.mubr.f32.gmra.mrb[6].mxu0 %v71_v62  ;;  %305 = vmatmul.mubr.f32.gmra.mrb[6].mxu1 %v215_v63  ;;  %v393_v62 = vld [vmem:[%s9406_s0 + $0x170] sm:$0xff] }
  0x31   :  { %6645 = vmatpush3.bf16.msra.mxu0 %v7641_v27  ;;  %6677 = vmatpush3.bf16.msra.mxu1 %v7641_v27  ;;  %v563_v63 = vld [vmem:[%s9406_s0 + $0x1f0] sm:$0xff] }
  0x32   :  { %171 = vmatprep.mubr.f32.mxu0 %v74_v0  ;;  %309 = vmatprep.mubr.f32.mxu1 %v218_v1  ;;  %v720_v0 = vld [vmem:[%s9406_s0 + $0x208] sm:$0xff] }
  0x33   :  { %6647 = vmatprep.subr.bf16.mxu0 %v7645_v28  ;;  %6679 = vmatprep.subr.bf16.mxu1 %v7645_v28  ;;  %v890_v1 = vld [vmem:[%s9406_s0 + $0x288] sm:$0xff] }
  0x34   :  { %172 = vmatmul.mubr.f32.gmra.mrb[8].mxu0 %v73_v2  ;;  %310 = vmatmul.mubr.f32.gmra.mrb[8].mxu1 %v217_v4  ;;  %v719_v2 = vld [vmem:[%s9406_s0 + $0x200] sm:$0xff]  ;;  %v722_v4 = vld [vmem:[%s9406_s0 + $0x218] sm:$0xff] }
  0x35   :  { %6649 = vmatpush3.bf16.msra.mxu0 %v7661_v33  ;;  %6681 = vmatpush3.bf16.msra.mxu1 %v7661_v33 }
  0x36   :  { %176 = vmatprep.mubr.f32.mxu0 %v76_v5  ;;  %314 = vmatprep.mubr.f32.mxu1 %v220_v6  ;;  %v721_v5 = vld [vmem:[%s9406_s0 + $0x210] sm:$0xff]  ;;  %v724_v6 = vld [vmem:[%s9406_s0 + $0x228] sm:$0xff] }
  0x37   :  { %6651 = vmatprep.subr.bf16.mxu0 %v7665_v34  ;;  %6683 = vmatprep.subr.bf16.mxu1 %v7665_v34 }
  0x38   :  { %177 = vmatmul.mubr.f32.gmra.mrb[10].mxu0 %v75_v9  ;;  %315 = vmatmul.mubr.f32.gmra.mrb[10].mxu1 %v219_v10  ;;  %v889_v9 = vld [vmem:[%s9406_s0 + $0x280] sm:$0xff]  ;;  %v892_v10 = vld [vmem:[%s9406_s0 + $0x298] sm:$0xff] }
  0x39   :  { %6653 = vmatpush3.bf16.msra.mxu0 %v7681_v39  ;;  %6685 = vmatpush3.bf16.msra.mxu1 %v7681_v39 }
  0x3a   :  { %181 = vmatprep.mubr.f32.mxu0 %v78_v11  ;;  %319 = vmatprep.mubr.f32.mxu1 %v222_v12  ;;  %v723_v11 = vld [vmem:[%s9406_s0 + $0x220] sm:$0xff]  ;;  %v726_v12 = vld [vmem:[%s9406_s0 + $0x238] sm:$0xff] }
  0x3b   :  { %6655 = vmatprep.subr.bf16.mxu0 %v7685_v40  ;;  %6687 = vmatprep.subr.bf16.mxu1 %v7685_v40 }
  0x3c   :  { %182 = vmatmul.mubr.f32.gmra.mrb[12].mxu0 %v77_v15  ;;  %320 = vmatmul.mubr.f32.gmra.mrb[12].mxu1 %v221_v16  ;;  %v891_v15 = vld [vmem:[%s9406_s0 + $0x290] sm:$0xff]  ;;  %v894_v16 = vld [vmem:[%s9406_s0 + $0x2a8] sm:$0xff] }
  0x3d   :  { %6657 = vmatpush3.bf16.msra.mxu0 %v7701_v45  ;;  %6689 = vmatpush3.bf16.msra.mxu1 %v7701_v45 }
  0x3e   :  { %186 = vmatprep.mubr.f32.mxu0 %v80_v17  ;;  %324 = vmatprep.mubr.f32.mxu1 %v224_v18  ;;  %v725_v17 = vld [vmem:[%s9406_s0 + $0x230] sm:$0xff]  ;;  %v728_v18 = vld [vmem:[%s9406_s0 + $0x248] sm:$0xff] }
  0x3f   :  { %6659 = vmatprep.subr.bf16.mxu0 %v7705_v46  ;;  %6691 = vmatprep.subr.bf16.mxu1 %v7705_v46 }
  0x40   :  { %187 = vmatmul.mubr.f32.gmra.mrb[14].mxu0 %v79_v21  ;;  %325 = vmatmul.mubr.f32.gmra.mrb[14].mxu1 %v223_v22  ;;  %v893_v21 = vld [vmem:[%s9406_s0 + $0x2a0] sm:$0xff]  ;;  %v896_v22 = vld [vmem:[%s9406_s0 + $0x2b8] sm:$0xff] }
  0x41   :  { %6661 = vmatpush3.bf16.msra.mxu0 %v7715_v49  ;;  %6693 = vmatpush3.bf16.msra.mxu1 %v7715_v49 }
  0x42   :  { %459 = vmatprep.mubr.f32.mxu0 %v380_v23  ;;  %629 = vmatprep.mubr.f32.mxu1 %v550_v24  ;;  %v727_v23 = vld [vmem:[%s9406_s0 + $0x240] sm:$0xff]  ;;  %v730_v24 = vld [vmem:[%s9406_s0 + $0x258] sm:$0xff] }
  0x43   :  { %6695 = vmatprep.subr.bf16.mxu0 %v7564_v3  ;;  %6727 = vmatprep.subr.bf16.mxu1 %v7564_v3 }
  0x44   :  { %460 = vmatmul.mubr.f32.vlgmr.msra.gmra.mrb[16].mxu0 %v379_v25  ;;  %630 = vmatmul.mubr.f32.vlgmr.msra.gmra.mrb[16].mxu1 %v549_v26  ;;  %v895_v25 = vld [vmem:[%s9406_s0 + $0x2b0] sm:$0xff] }
  0x45   :  { %6697 = vmatpush3.bf16.msra.mxu0 %v7575_v7  ;;  %464 = vmatprep.mubr.f32.mxu0 %v382_v29  ;;  %v729_v26 = vld [vmem:[%s9406_s0 + $0x250] sm:$0xff]  ;;  %v732_v29 = vld [vmem:[%s9406_s0 + $0x268] sm:$0xff] }
  0x46   :  { %634 = vmatprep.mubr.f32.mxu1 %v552_v30  ;;  %6699 = vmatprep.subr.bf16.mxu0 %v7577_v8  ;;  %v731_v30 = vld [vmem:[%s9406_s0 + $0x260] sm:$0xff] }
  0x47   :  { %6729 = vmatpush3.bf16.msra.mxu1 %v7575_v7 }
  0x48   :  { %465 = vmatmul.mubr.f32.gmra.mrb[18].mxu0 %v381_v31  ;;  %635 = vmatmul.mubr.f32.gmra.mrb[18].mxu1 %v551_v32  ;;  %v734_v31 = vld [vmem:[%s9406_s0 + $0x278] sm:$0xff]  ;;  %v733_v32 = vld [vmem:[%s9406_s0 + $0x270] sm:$0xff] }
  0x49   :  { %6701 = vmatpush3.bf16.msra.mxu0 %v7595_v13  ;;  %469 = vmatprep.mubr.f32.mxu0 %v384_v35  ;;  %v1060_v35 = vld [vmem:[%s9406_s0 + $0x308] sm:$0xff] }
  0x4a   :  { %6703 = vmatprep.subr.bf16.mxu0 %v7599_v14  ;;  %639 = vmatprep.mubr.f32.mxu1 %v554_v36  ;;  %v1059_v36 = vld [vmem:[%s9406_s0 + $0x300] sm:$0xff] }
  0x4b   :  { %6731 = vmatprep.subr.bf16.mxu1 %v7577_v8 }
  0x4c   :  { %470 = vmatmul.mubr.f32.gmra.mrb[20].mxu0 %v383_v37  ;;  %640 = vmatmul.mubr.f32.gmra.mrb[20].mxu1 %v553_v38  ;;  %v1062_v37 = vld [vmem:[%s9406_s0 + $0x318] sm:$0xff]  ;;  %v1061_v38 = vld [vmem:[%s9406_s0 + $0x310] sm:$0xff] }
  0x4d   :  { %6705 = vmatpush3.bf16.msra.mxu0 %v7615_v19  ;;  %474 = vmatprep.mubr.f32.mxu0 %v386_v41  ;;  %v1065_v41 = vld [vmem:[%s9406_s0 + $0x330] sm:$0xff] }
  0x4e   :  { %6707 = vmatprep.subr.bf16.mxu0 %v7619_v20  ;;  %6733 = vmatpush3.bf16.msra.mxu1 %v7595_v13 }
  0x4f   :  { %6735 = vmatprep.subr.bf16.mxu1 %v7599_v14  ;;  %644 = vmatprep.mubr.f32.mxu1 %v556_v42  ;;  %v1234_v42 = vld [vmem:[%s9406_s0 + $0x3a8] sm:$0xff] }
  0x50   :  { %475 = vmatmul.mubr.f32.gmra.mrb[22].mxu0 %v385_v43  ;;  %645 = vmatmul.mubr.f32.gmra.mrb[22].mxu1 %v555_v44  ;;  %v1236_v43 = vld [vmem:[%s9406_s0 + $0x3b8] sm:$0xff]  ;;  %v1235_v44 = vld [vmem:[%s9406_s0 + $0x3b0] sm:$0xff] }
  0x51   :  { %6709 = vmatpush3.bf16.msra.mxu0 %v7641_v27  ;;  %479 = vmatprep.mubr.f32.mxu0 %v388_v47  ;;  %v898_v47 = vld [vmem:[%s9406_s0 + $0x2c8] sm:$0xff] }
  0x52   :  { %6711 = vmatprep.subr.bf16.mxu0 %v7645_v28  ;;  %6737 = vmatpush3.bf16.msra.mxu1 %v7615_v19 }
  0x53   :  { %6739 = vmatprep.subr.bf16.mxu1 %v7619_v20  ;;  %649 = vmatprep.mubr.f32.mxu1 %v558_v48  ;;  %v897_v48 = vld [vmem:[%s9406_s0 + $0x2c0] sm:$0xff] }
  0x54   :  { %480 = vmatmul.mubr.f32.gmra.mrb[24].mxu0 %v387_v50  ;;  %650 = vmatmul.mubr.f32.gmra.mrb[24].mxu1 %v557_v51  ;;  %v900_v50 = vld [vmem:[%s9406_s0 + $0x2d8] sm:$0xff]  ;;  %v899_v51 = vld [vmem:[%s9406_s0 + $0x2d0] sm:$0xff] }
  0x55   :  { %6713 = vmatpush3.bf16.msra.mxu0 %v7661_v33  ;;  %484 = vmatprep.mubr.f32.mxu0 %v390_v52  ;;  %v902_v52 = vld [vmem:[%s9406_s0 + $0x2e8] sm:$0xff] }
  0x56   :  { %6715 = vmatprep.subr.bf16.mxu0 %v7665_v34  ;;  %6741 = vmatpush3.bf16.msra.mxu1 %v7641_v27 }
  0x57   :  { %6743 = vmatprep.subr.bf16.mxu1 %v7645_v28  ;;  %654 = vmatprep.mubr.f32.mxu1 %v560_v53  ;;  %v901_v53 = vld [vmem:[%s9406_s0 + $0x2e0] sm:$0xff] }
  0x58   :  { %485 = vmatmul.mubr.f32.gmra.mrb[26].mxu0 %v389_v54  ;;  %655 = vmatmul.mubr.f32.gmra.mrb[26].mxu1 %v559_v55  ;;  %v904_v54 = vld [vmem:[%s9406_s0 + $0x2f8] sm:$0xff]  ;;  %v903_v55 = vld [vmem:[%s9406_s0 + $0x2f0] sm:$0xff] }
  0x59   :  { %6717 = vmatpush3.bf16.msra.mxu0 %v7681_v39  ;;  %489 = vmatprep.mubr.f32.mxu0 %v392_v56  ;;  %v1238_v56 = vld [vmem:[%s9406_s0 + $0x3c8] sm:$0xff] }
  0x5a   :  { %6719 = vmatprep.subr.bf16.mxu0 %v7685_v40  ;;  %6745 = vmatpush3.bf16.msra.mxu1 %v7661_v33 }
  0x5b   :  { %6747 = vmatprep.subr.bf16.mxu1 %v7665_v34  ;;  %659 = vmatprep.mubr.f32.mxu1 %v562_v57  ;;  %v1237_v57 = vld [vmem:[%s9406_s0 + $0x3c0] sm:$0xff] }
  0x5c   :  { %490 = vmatmul.mubr.f32.gmra.mrb[28].mxu0 %v391_v58  ;;  %660 = vmatmul.mubr.f32.gmra.mrb[28].mxu1 %v561_v59  ;;  %v1240_v58 = vld [vmem:[%s9406_s0 + $0x3d8] sm:$0xff]  ;;  %v1239_v59 = vld [vmem:[%s9406_s0 + $0x3d0] sm:$0xff] }
  0x5d   :  { %6721 = vmatpush3.bf16.msra.mxu0 %v7701_v45  ;;  %494 = vmatprep.mubr.f32.mxu0 %v394_v60 }
  0x5e   :  { %6723 = vmatprep.subr.bf16.mxu0 %v7705_v46  ;;  %6749 = vmatpush3.bf16.msra.mxu1 %v7681_v39 }
  0x5f   :  { %6751 = vmatprep.subr.bf16.mxu1 %v7685_v40  ;;  %664 = vmatprep.mubr.f32.mxu1 %v564_v61 }
  0x60   :  { %495 = vmatmul.mubr.f32.gmra.mrb[30].mxu0 %v393_v62  ;;  %665 = vmatmul.mubr.f32.gmra.mrb[30].mxu1 %v563_v63  ;;  %v8202_v62 = vld [vmem:[%s9407_s2] ss:$0 sm:$0xff] }
  0x61   :  { %6725 = vmatpush3.bf16.msra.mxu0 %v7715_v49  ;;  %799 = vmatprep.mubr.f32.mxu0 %v720_v0 }
  0x62   :  { %6759 = vmatprep.subr.bf16.mxu0 %v7564_v3  ;;  %6753 = vmatpush3.bf16.msra.mxu1 %v7701_v45 }
  0x63   :  { %6755 = vmatprep.subr.bf16.mxu1 %v7705_v46  ;;  %969 = vmatprep.mubr.f32.mxu1 %v890_v1 }
  0x64   :  { %800 = vmatmul.mubr.f32.vlgmr.msra.gmra.mrb[32].mxu0 %v719_v2 }
  0x65   :  { %6761 = vmatpush3.bf16.msra.mxu0 %v7575_v7  ;;  %804 = vmatprep.mubr.f32.mxu0 %v722_v4 }
  0x66   :  { %6763 = vmatprep.subr.bf16.mxu0 %v7577_v8  ;;  %6757 = vmatpush3.bf16.msra.mxu1 %v7715_v49 }
  0x67   :  { %7358 = vmatprep.subr.bf16.mxu1 %v7564_v3 }
  0x68   :  { %805 = vmatmul.mubr.f32.gmra.mrb[34].mxu0 %v721_v5 }
  0x69   :  { %6765 = vmatpush3.bf16.msra.mxu0 %v7595_v13  ;;  %809 = vmatprep.mubr.f32.mxu0 %v724_v6 }
  0x6a   :  { %6767 = vmatprep.subr.bf16.mxu0 %v7599_v14  ;;  %970 = vmatmul.mubr.f32.vlgmr.msra.gmra.mrb[32].mxu1 %v889_v9 }
  0x6b   :  { %974 = vmatprep.mubr.f32.mxu1 %v892_v10  ;;  %7366 = vmatpush3.bf16.msra.mxu1 %v7575_v7 }
  0x6c   :  { %810 = vmatmul.mubr.f32.gmra.mrb[36].mxu0 %v723_v11  ;;  %7359 = vmatprep.subr.bf16.mxu1 %v7577_v8 }
  0x6d   :  { %6769 = vmatpush3.bf16.msra.mxu0 %v7615_v19  ;;  %814 = vmatprep.mubr.f32.mxu0 %v726_v12 }
  0x6e   :  { %6771 = vmatprep.subr.bf16.mxu0 %v7619_v20  ;;  %975 = vmatmul.mubr.f32.gmra.mrb[34].mxu1 %v891_v15 }
  0x6f   :  { %979 = vmatprep.mubr.f32.mxu1 %v894_v16  ;;  %7367 = vmatpush3.bf16.msra.mxu1 %v7595_v13 }
  0x70   :  { %815 = vmatmul.mubr.f32.gmra.mrb[38].mxu0 %v725_v17  ;;  %7360 = vmatprep.subr.bf16.mxu1 %v7599_v14 }
  0x71   :  { %6773 = vmatpush3.bf16.msra.mxu0 %v7641_v27  ;;  %819 = vmatprep.mubr.f32.mxu0 %v728_v18 }
  0x72   :  { %6775 = vmatprep.subr.bf16.mxu0 %v7645_v28  ;;  %980 = vmatmul.mubr.f32.gmra.mrb[36].mxu1 %v893_v21 }
  0x73   :  { %984 = vmatprep.mubr.f32.mxu1 %v896_v22  ;;  %7368 = vmatpush3.bf16.msra.mxu1 %v7615_v19 }
  0x74   :  { %820 = vmatmul.mubr.f32.gmra.mrb[40].mxu0 %v727_v23  ;;  %7361 = vmatprep.subr.bf16.mxu1 %v7619_v20 }
  0x75   :  { %6777 = vmatpush3.bf16.msra.mxu0 %v7661_v33  ;;  %824 = vmatprep.mubr.f32.mxu0 %v730_v24 }
  0x76   :  { %6779 = vmatprep.subr.bf16.mxu0 %v7665_v34  ;;  %985 = vmatmul.mubr.f32.gmra.mrb[38].mxu1 %v895_v25 }
  0x77   :  { %7369 = vmatpush3.bf16.msra.mxu1 %v7641_v27  ;;  %989 = vmatprep.mubr.f32.mxu1 %v898_v47 }
  0x78   :  { %825 = vmatmul.mubr.f32.gmra.mrb[42].mxu0 %v729_v26  ;;  %7362 = vmatprep.subr.bf16.mxu1 %v7645_v28 }
  0x79   :  { %6781 = vmatpush3.bf16.msra.mxu0 %v7681_v39  ;;  %829 = vmatprep.mubr.f32.mxu0 %v732_v29 }
  0x7a   :  { %6783 = vmatprep.subr.bf16.mxu0 %v7685_v40  ;;  %990 = vmatmul.mubr.f32.gmra.mrb[40].mxu1 %v897_v48 }
  0x7b   :  { %7370 = vmatpush3.bf16.msra.mxu1 %v7661_v33  ;;  %994 = vmatprep.mubr.f32.mxu1 %v900_v50 }
  0x7c   :  { %830 = vmatmul.mubr.f32.gmra.mrb[44].mxu0 %v731_v30  ;;  %7363 = vmatprep.subr.bf16.mxu1 %v7665_v34 }
  0x7d   :  { %6785 = vmatpush3.bf16.msra.mxu0 %v7701_v45  ;;  %834 = vmatprep.mubr.f32.mxu0 %v734_v31 }
  0x7e   :  { %6787 = vmatprep.subr.bf16.mxu0 %v7705_v46  ;;  %995 = vmatmul.mubr.f32.gmra.mrb[42].mxu1 %v899_v51 }
  0x7f   :  { %7371 = vmatpush3.bf16.msra.mxu1 %v7681_v39  ;;  %999 = vmatprep.mubr.f32.mxu1 %v902_v52 }
  0x80   :  { %835 = vmatmul.mubr.f32.gmra.mrb[46].mxu0 %v733_v32  ;;  %7364 = vmatprep.subr.bf16.mxu1 %v7685_v40 }
  0x81   :  { %6789 = vmatpush3.bf16.msra.mxu0 %v7715_v49  ;;  %1139 = vmatprep.mubr.f32.mxu0 %v1060_v35 }
  0x82   :  { %6791 = vmatprep.subr.bf16.mxu0 %v7564_v3  ;;  %v1064_v3 = vld [vmem:[%s9406_s0 + $0x328] sm:$0xff]  ;;  %1000 = vmatmul.mubr.f32.gmra.mrb[44].mxu1 %v901_v53 }
  0x83   :  { %7372 = vmatpush3.bf16.msra.mxu1 %v7701_v45  ;;  %1004 = vmatprep.mubr.f32.mxu1 %v904_v54 }
  0x84   :  { %1140 = vmatmul.mubr.f32.vlgmr.msra.gmra.mrb[48].mxu0 %v1059_v36  ;;  %7365 = vmatprep.subr.bf16.mxu1 %v7705_v46 }
  0x85   :  { %6793 = vmatpush3.bf16.msra.mxu0 %v7575_v7  ;;  %1144 = vmatprep.mubr.f32.mxu0 %v1062_v37  ;;  %v1063_v7 = vld [vmem:[%s9406_s0 + $0x320] sm:$0xff] }
  0x86   :  { %6795 = vmatprep.subr.bf16.mxu0 %v7577_v8  ;;  %v1066_v8 = vld [vmem:[%s9406_s0 + $0x338] sm:$0xff]  ;;  %1005 = vmatmul.mubr.f32.gmra.mrb[46].mxu1 %v903_v55 }
  0x87   :  { %7373 = vmatpush3.bf16.msra.mxu1 %v7715_v49  ;;  %1329 = vmatprep.mubr.f32.mxu1 %v1238_v56 }
  0x88   :  { %1145 = vmatmul.mubr.f32.gmra.mrb[50].mxu0 %v1061_v38 }
  0x89   :  { %6797 = vmatpush3.bf16.msra.mxu0 %v7595_v13  ;;  %1149 = vmatprep.mubr.f32.mxu0 %v1064_v3  ;;  %v1068_v13 = vld [vmem:[%s9406_s0 + $0x348] sm:$0xff] }
  0x8a   :  { %6799 = vmatprep.subr.bf16.mxu0 %v7599_v14  ;;  %v1067_v14 = vld [vmem:[%s9406_s0 + $0x340] sm:$0xff]  ;;  %1330 = vmatmul.mubr.f32.vlgmr.msra.gmra.mrb[48].mxu1 %v1237_v57 }
  0x8b   :  { %1334 = vmatprep.mubr.f32.mxu1 %v1240_v58 }
  0x8c   :  { %1150 = vmatmul.mubr.f32.gmra.mrb[52].mxu0 %v1063_v7 }
  0x8d   :  { %6801 = vmatpush3.bf16.msra.mxu0 %v7615_v19  ;;  %1154 = vmatprep.mubr.f32.mxu0 %v1066_v8  ;;  %v1070_v19 = vld [vmem:[%s9406_s0 + $0x358] sm:$0xff] }
  0x8e   :  { %6803 = vmatprep.subr.bf16.mxu0 %v7619_v20  ;;  %v1069_v20 = vld [vmem:[%s9406_s0 + $0x350] sm:$0xff]  ;;  %1335 = vmatmul.mubr.f32.gmra.mrb[50].mxu1 %v1239_v59 }
  0x90   :  { %1155 = vmatmul.mubr.f32.gmra.mrb[54].mxu0 %v1065_v41 }
  0x91   :  { %6805 = vmatpush3.bf16.msra.mxu0 %v7641_v27  ;;  %1159 = vmatprep.mubr.f32.mxu0 %v1068_v13  ;;  %v1072_v27 = vld [vmem:[%s9406_s0 + $0x368] sm:$0xff] }
  0x92   :  { %6807 = vmatprep.subr.bf16.mxu0 %v7645_v28  ;;  %v1071_v28 = vld [vmem:[%s9406_s0 + $0x360] sm:$0xff] }
  0x94   :  { %1160 = vmatmul.mubr.f32.gmra.mrb[56].mxu0 %v1067_v14 }
  0x95   :  { %6809 = vmatpush3.bf16.msra.mxu0 %v7661_v33  ;;  %1164 = vmatprep.mubr.f32.mxu0 %v1070_v19  ;;  %v1074_v33 = vld [vmem:[%s9406_s0 + $0x378] sm:$0xff] }
  0x96   :  { %6811 = vmatprep.subr.bf16.mxu0 %v7665_v34  ;;  %v1073_v34 = vld [vmem:[%s9406_s0 + $0x370] sm:$0xff] }
  0x98   :  { %1165 = vmatmul.mubr.f32.gmra.mrb[58].mxu0 %v1069_v20 }
  0x99   :  { %6813 = vmatpush3.bf16.msra.mxu0 %v7681_v39  ;;  %1169 = vmatprep.mubr.f32.mxu0 %v1072_v27  ;;  %v1230_v39 = vld [vmem:[%s9406_s0 + $0x388] sm:$0xff] }
  0x9a   :  { %6815 = vmatprep.subr.bf16.mxu0 %v7685_v40  ;;  %v1229_v40 = vld [vmem:[%s9406_s0 + $0x380] sm:$0xff] }
  0x9c   :  { %1170 = vmatmul.mubr.f32.gmra.mrb[60].mxu0 %v1071_v28 }
  0x9d   :  { %6817 = vmatpush3.bf16.msra.mxu0 %v7701_v45  ;;  %1174 = vmatprep.mubr.f32.mxu0 %v1074_v33  ;;  %v1232_v45 = vld [vmem:[%s9406_s0 + $0x398] sm:$0xff] }
  0x9e   :  { %6819 = vmatprep.subr.bf16.mxu0 %v7705_v46  ;;  %v1231_v46 = vld [vmem:[%s9406_s0 + $0x390] sm:$0xff] }
  0xa0   :  { %1175 = vmatmul.mubr.f32.gmra.mrb[62].mxu0 %v1073_v34 }
  0xa1   :  { %6821 = vmatpush3.bf16.msra.mxu0 %v7715_v49  ;;  %1309 = vmatprep.mubr.f32.mxu0 %v1230_v39  ;;  %v1233_v49 = vld [vmem:[%s9406_s0 + $0x3a0] sm:$0xff] }
  0xa4   :  { %1310 = vmatmul.mubr.f32.vlgmr.msra.gmra.mrb[64].mxu0 %v1229_v40 }
  0xa5   :  { %1314 = vmatprep.mubr.f32.mxu0 %v1232_v45 }
  0xa8   :  { %1315 = vmatmul.mubr.f32.gmra.mrb[66].mxu0 %v1231_v46 }
  0xa9   :  { %1319 = vmatprep.mubr.f32.mxu0 %v1234_v42 }
  0xac   :  { %1320 = vmatmul.mubr.f32.gmra.mrb[68].mxu0 %v1233_v49 }
  0xad   :  { %1324 = vmatprep.mubr.f32.mxu0 %v1236_v43 }
  0xb0   :  { %1325 = vmatmul.mubr.f32.gmra.mrb[70].mxu0 %v1235_v44 }
  0xf7   :  { %v5107_v60 = vpop.f32.mrb[0].mxu0  ;;  %v5163_v61 = vpop.f32.mrb[0].mxu1 }
  0xf8   :  { %v5108_v63 = vpop.f32.mrb[1].mxu0  ;;  %v5164_v0 = vpop.f32.mrb[1].mxu1 }
  0xf9   :  { %v5109_v1 = vadd.f32 %v5108_v63, %v5107_v60  ;;  %v5165_v2 = vadd.f32 %v5164_v0, %v5163_v61 }
  0xfb   :  { %v154_v4 = vadd.f32 %v5109_v1, %v8202_v62  ;;  %v5110_v5 = vpop.f32.mrb[2].mxu0  ;;  %v5166_v6 = vpop.f32.mrb[2].mxu1  ;;  %v292_v9 = vadd.f32 %v5165_v2, %v8202_v62 }
  0xfc   :  { %v5111_v10 = vpop.f32.mrb[3].mxu0  ;;  %v5167_v11 = vpop.f32.mrb[3].mxu1 }
  0xfd   :  { %v192_v12 = vmax.f32 %v154_v4, 0.0  ;;  %v5112_v15 = vadd.f32 %v5111_v10, %v5110_v5  ;;  %v5168_v16 = vadd.f32 %v5167_v11, %v5166_v6  ;;  %v330_v17 = vmax.f32 %v292_v9, 0.0 }
  0xff   :  { %v159_v18 = vadd.f32 %v5112_v15, %v8202_v62  ;;  %v5113_v21 = vpop.f32.mrb[4].mxu0  ;;  %v5169_v22 = vpop.f32.mrb[4].mxu1  ;;  %v297_v23 = vadd.f32 %v5168_v16, %v8202_v62  ;;  %346 = vrot.lane.b32.xlu1 %v330_v17, %s7495_s17  ;;  %201 = vst.msk [vmem:[#allocation2] sm:$0xff] %vm200_vm0, %v192_v12 }
 0x100   :  { %v5114_v24 = vpop.f32.mrb[5].mxu0  ;;  %v5170_v25 = vpop.f32.mrb[5].mxu1 }
 0x101   :  { %v193_v26 = vmax.f32 %v159_v18, 0.0  ;;  %v5115_v29 = vadd.f32 %v5114_v24, %v5113_v21  ;;  %v5171_v30 = vadd.f32 %v5170_v25, %v5169_v22  ;;  %v331_v31 = vmax.f32 %v297_v23, 0.0 }
 0x103   :  { %v164_v32 = vadd.f32 %v5115_v29, %v8202_v62  ;;  %v5116_v35 = vpop.f32.mrb[6].mxu0  ;;  %v302_v36 = vadd.f32 %v5171_v30, %v8202_v62  ;;  %v5172_v37 = vpop.f32.mrb[6].mxu1  ;;  %348 = vrot.lane.b32.xlu0 %v331_v31, %s7495_s17  ;;  %202 = vst.msk [vmem:[#allocation2 + $0x8] sm:$0xff] %vm200_vm0, %v193_v26 }
 0x104   :  { %v5117_v38 = vpop.f32.mrb[7].mxu0  ;;  %v5173_v3 = vpop.f32.mrb[7].mxu1 }
 0x105   :  { %v194_v7 = vmax.f32 %v164_v32, 0.0  ;;  %v5118_v8 = vadd.f32 %v5117_v38, %v5116_v35  ;;  %v332_v41 = vmax.f32 %v302_v36, 0.0  ;;  %v5174_v13 = vadd.f32 %v5173_v3, %v5172_v37 }
 0x107   :  { %v169_v14 = vadd.f32 %v5118_v8, %v8202_v62  ;;  %v5119_v19 = vpop.f32.mrb[8].mxu0  ;;  %v307_v20 = vadd.f32 %v5174_v13, %v8202_v62  ;;  %v5175_v27 = vpop.f32.mrb[8].mxu1  ;;  %350 = vrot.lane.b32.xlu0 %v332_v41, %s7495_s17  ;;  %203 = vst.msk [vmem:[#allocation2 + $0x10] sm:$0xff] %vm200_vm0, %v194_v7 }
 0x108   :  { %v5120_v28 = vpop.f32.mrb[9].mxu0  ;;  %v5176_v33 = vpop.f32.mrb[9].mxu1 }
 0x109   :  { %v195_v34 = vmax.f32 %v169_v14, 0.0  ;;  %v5121_v39 = vadd.f32 %v5120_v28, %v5119_v19  ;;  %v333_v40 = vmax.f32 %v307_v20, 0.0  ;;  %v8218_v45 = vadd.f32 %v5176_v33, %v5175_v27 }
 0x10b   :  { %v174_v46 = vadd.f32 %v5121_v39, %v8202_v62  ;;  %v5122_v42 = vpop.f32.mrb[10].mxu0  ;;  %v5178_v49 = vpop.f32.mrb[10].mxu1  ;;  %352 = vrot.lane.b32.xlu0 %v333_v40, %s7495_s17  ;;  %204 = vst.msk [vmem:[#allocation2 + $0x18] sm:$0xff] %vm200_vm0, %v195_v34 }
 0x10c   :  { %v5123_v43 = vpop.f32.mrb[11].mxu0  ;;  %v5179_v44 = vpop.f32.mrb[11].mxu1 }
 0x10d   :  { %v196_v47 = vmax.f32 %v174_v46, 0.0  ;;  %v5124_v48 = vadd.f32 %v5123_v43, %v5122_v42  ;;  %v8223_v50 = vadd.f32 %v5179_v44, %v5178_v49 }
 0x10f   :  { %v179_v51 = vadd.f32 %v5124_v48, %v8202_v62  ;;  %v5125_v52 = vpop.f32.mrb[12].mxu0  ;;  %v5181_v53 = vpop.f32.mrb[12].mxu1  ;;  %205 = vst.msk [vmem:[#allocation2 + $0x20] sm:$0xff] %vm200_vm0, %v196_v47 }
 0x110   :  { %v5126_v54 = vpop.f32.mrb[13].mxu0  ;;  %v5182_v55 = vpop.f32.mrb[13].mxu1 }
 0x111   :  { %v197_v56 = vmax.f32 %v179_v51, 0.0  ;;  %v5127_v57 = vadd.f32 %v5126_v54, %v5125_v52  ;;  %v8227_v58 = vadd.f32 %v5182_v55, %v5181_v53 }
 0x113   :  { %v184_v59 = vadd.f32 %v5127_v57, %v8202_v62  ;;  %v5128_v60 = vpop.f32.mrb[14].mxu0  ;;  %v5184_v61 = vpop.f32.mrb[14].mxu1  ;;  %206 = vst.msk [vmem:[#allocation2 + $0x28] sm:$0xff] %vm200_vm0, %v197_v56 }
 0x114   :  { %v5129_v63 = vpop.f32.mrb[15].mxu0  ;;  %v5185_v0 = vpop.f32.mrb[15].mxu1 }
 0x115   :  { %v198_v1 = vmax.f32 %v184_v59, 0.0  ;;  %v5130_v2 = vadd.f32 %v5129_v63, %v5128_v60  ;;  %v8231_v4 = vadd.f32 %v5185_v0, %v5184_v61 }
 0x117   :  { %v189_v5 = vadd.f32 %v5130_v2, %v8202_v62  ;;  %v5219_v6 = vpop.f32.mrb[16].mxu0  ;;  %v5275_v9 = vpop.f32.mrb[16].mxu1  ;;  %207 = vst.msk [vmem:[#allocation2 + $0x30] sm:$0xff] %vm200_vm0, %v198_v1 }
 0x118   :  { %v5220_v10 = vpop.f32.mrb[17].mxu0  ;;  %v5276_v11 = vpop.f32.mrb[17].mxu1 }
 0x119   :  { %v199_v12 = vmax.f32 %v189_v5, 0.0  ;;  %v5221_v15 = vadd.f32 %v5220_v10, %v5219_v6  ;;  %v5277_v16 = vadd.f32 %v5276_v11, %v5275_v9 }
 0x11b   :  { %v462_v17 = vadd.f32 %v5221_v15, %v8202_v62  ;;  %v632_v18 = vadd.f32 %v5277_v16, %v8202_v62  ;;  %v5278_v21 = vpop.f32.mrb[18].mxu1  ;;  %v5222_v22 = vpop.f32.mrb[18].mxu0  ;;  %208 = vst.msk [vmem:[#allocation2 + $0x38] sm:$0xff] %vm200_vm0, %v199_v12 }
 0x11c   :  { %v5223_v23 = vpop.f32.mrb[19].mxu0  ;;  %v5279_v24 = vpop.f32.mrb[19].mxu1 }
 0x11d   :  { %v500_v25 = vmax.f32 %v462_v17, 0.0  ;;  %v5224_v26 = vadd.f32 %v5223_v23, %v5222_v22  ;;  %v5280_v29 = vadd.f32 %v5279_v24, %v5278_v21  ;;  %v670_v30 = vmax.f32 %v632_v18, 0.0 }
 0x11f   :  { %v637_v31 = vadd.f32 %v5280_v29, %v8202_v62  ;;  %v5225_v32 = vpop.f32.mrb[20].mxu0  ;;  %516 = vrot.lane.b32.xlu0 %v500_v25, %s7496_s18  ;;  %v5281_v35 = vpop.f32.mrb[20].mxu1  ;;  %v467_v38 = vadd.f32 %v5224_v26, %v8202_v62 }
 0x120   :  { %v5226_v36 = vpop.f32.mrb[21].mxu0  ;;  %v5282_v37 = vpop.f32.mrb[21].mxu1 }
 0x121   :  { %v671_v3 = vmax.f32 %v637_v31, 0.0  ;;  %v5227_v7 = vadd.f32 %v5226_v36, %v5225_v32  ;;  %v5283_v8 = vadd.f32 %v5282_v37, %v5281_v35  ;;  %v501_v28 = vmax.f32 %v467_v38, 0.0 }
 0x123   :  { %v472_v41 = vadd.f32 %v5227_v7, %v8202_v62  ;;  %688 = vrot.lane.b32.xlu1 %v671_v3, %s7497_s19  ;;  %v5228_v13 = vpop.f32.mrb[22].mxu0  ;;  %686 = vrot.lane.b32.xlu0 %v670_v30, %s7497_s19  ;;  %v642_v14 = vadd.f32 %v5283_v8, %v8202_v62  ;;  %v5284_v19 = vpop.f32.mrb[22].mxu1 }
 0x124   :  { %v5229_v20 = vpop.f32.mrb[23].mxu0  ;;  %v5285_v27 = vpop.f32.mrb[23].mxu1 }
 0x125   :  { %v502_v33 = vmax.f32 %v472_v41, 0.0  ;;  %v5230_v34 = vadd.f32 %v5229_v20, %v5228_v13  ;;  %v8245_v39 = vadd.f32 %v5285_v27, %v5284_v19  ;;  %v672_v42 = vmax.f32 %v642_v14, 0.0 }
 0x127   :  { %v477_v40 = vadd.f32 %v5230_v34, %v8202_v62  ;;  %v5231_v46 = vpop.f32.mrb[24].mxu0  ;;  %520 = vrot.lane.b32.xlu1 %v502_v33, %s7496_s18  ;;  %518 = vrot.lane.b32.xlu0 %v501_v28, %s7496_s18  ;;  %v5287_v49 = vpop.f32.mrb[24].mxu1 }
 0x128   :  { %v5232_v43 = vpop.f32.mrb[25].mxu0  ;;  %v5288_v44 = vpop.f32.mrb[25].mxu1 }
 0x129   :  { %v503_v47 = vmax.f32 %v477_v40, 0.0  ;;  %v8250_v48 = vadd.f32 %v5232_v43, %v5231_v46  ;;  %v8252_v51 = vadd.f32 %v5288_v44, %v5287_v49 }
 0x12b   :  { %v5234_v52 = vpop.f32.mrb[26].mxu0  ;;  %522 = vrot.lane.b32.xlu0 %v503_v47, %s7496_s18  ;;  %690 = vrot.lane.b32.xlu1 %v672_v42, %s7497_s19  ;;  %v5290_v53 = vpop.f32.mrb[26].mxu1 }
 0x12c   :  { %v5235_v54 = vpop.f32.mrb[27].mxu0  ;;  %v5291_v55 = vpop.f32.mrb[27].mxu1 }
 0x12d   :  { %v8256_v56 = vadd.f32 %v5235_v54, %v5234_v52  ;;  %v8258_v57 = vadd.f32 %v5291_v55, %v5290_v53 }
 0x12f   :  { %v5237_v59 = vpop.f32.mrb[28].mxu0  ;;  %v5293_v60 = vpop.f32.mrb[28].mxu1 }
 0x130   :  { %v5238_v61 = vpop.f32.mrb[29].mxu0  ;;  %v5294_v63 = vpop.f32.mrb[29].mxu1 }
 0x131   :  { %v8260_v0 = vadd.f32 %v5238_v61, %v5237_v59  ;;  %v8262_v1 = vadd.f32 %v5294_v63, %v5293_v60 }
 0x133   :  { %v5240_v2 = vpop.f32.mrb[30].mxu0  ;;  %v5296_v5 = vpop.f32.mrb[30].mxu1 }
 0x134   :  { %v5241_v6 = vpop.f32.mrb[31].mxu0  ;;  %v5297_v9 = vpop.f32.mrb[31].mxu1 }
 0x135   :  { %v8264_v10 = vadd.f32 %v5241_v6, %v5240_v2  ;;  %v8266_v11 = vadd.f32 %v5297_v9, %v5296_v5 }
 0x137   :  { %v5331_v12 = vpop.f32.mrb[32].mxu0 }
 0x138   :  { %v5332_v15 = vpop.f32.mrb[33].mxu0 }
 0x139   :  { %v5333_v16 = vadd.f32 %v5332_v15, %v5331_v12  ;;  %v647_v12 = vadd.f32 %v8245_v39, %v8202_v62 }
 0x13b   :  { %v802_v17 = vadd.f32 %v5333_v16, %v8202_v62  ;;  %v5334_v18 = vpop.f32.mrb[34].mxu0 }
 0x13c   :  { %v5335_v21 = vpop.f32.mrb[35].mxu0 }
 0x13d   :  { %v840_v22 = vmax.f32 %v802_v17, 0.0  ;;  %v5336_v23 = vadd.f32 %v5335_v21, %v5334_v18  ;;  %v5387_v24 = vpop.f32.mrb[32].mxu1 }
 0x13e   :  { %v5388_v25 = vpop.f32.mrb[33].mxu1 }
 0x13f   :  { %v807_v26 = vadd.f32 %v5336_v23, %v8202_v62  ;;  %v5337_v29 = vpop.f32.mrb[36].mxu0  ;;  %856 = vrot.lane.b32.xlu0 %v840_v22, %s7498_s20  ;;  %v5389_v30 = vadd.f32 %v5388_v25, %v5387_v24  ;;  %v673_v23 = vmax.f32 %v647_v12, 0.0 }
 0x140   :  { %v5338_v31 = vpop.f32.mrb[37].mxu0 }
 0x141   :  { %v841_v32 = vmax.f32 %v807_v26, 0.0  ;;  %v8271_v35 = vadd.f32 %v5338_v31, %v5337_v29  ;;  %v972_v36 = vadd.f32 %v5389_v30, %v8202_v62  ;;  %v5390_v37 = vpop.f32.mrb[34].mxu1  ;;  %v1242_v26 = vld [vmem:[%s9406_s0 + $0x3e8] sm:$0xff]  ;;  %v1401_v30 = vld [vmem:[%s9408_s3] sm:$0xff] }
 0x142   :  { %v5391_v38 = vpop.f32.mrb[35].mxu1  ;;  %v1402_v31 = vld [vmem:[%s9408_s3 + $0x8] sm:$0xff]  ;;  %1339 = vmatprep.mubr.f32.mxu1 %v1242_v26  ;;  %v1243_v26 = vld [vmem:[%s9406_s0 + $0x3f0] sm:$0xff] }
 0x143   :  { %v5340_v3 = vpop.f32.mrb[38].mxu0  ;;  %858 = vrot.lane.b32.xlu1 %v841_v32, %s7498_s20  ;;  %v1010_v7 = vmax.f32 %v972_v36, 0.0  ;;  %v5392_v8 = vadd.f32 %v5391_v38, %v5390_v37  ;;  %v7501_v36 = vmov 0.0|0.0   ;;  %v8309_v37 = vpack.c.bf16 %v1402_v31, %v1401_v30  ;;  %v1410_v38 = vld [vmem:[%s9408_s3 + $0x40] sm:$0xff] }
 0x144   :  { %v5341_v41 = vpop.f32.mrb[39].mxu0  ;;  %6834 = vmatprep.subr.bf16.mxu1 %v7501_v36  ;;  %6822 = vmatprep.subr.bf16.mxu0 %v7501_v36 }
 0x145   :  { %v5342_v13 = vadd.f32 %v5341_v41, %v5340_v3  ;;  %v977_v14 = vadd.f32 %v5392_v8, %v8202_v62  ;;  %1026 = vrot.lane.b32.xlu0 %v1010_v7, %s7499_s21  ;;  %v5393_v19 = vpop.f32.mrb[36].mxu1  ;;  %v1411_v3 = vld [vmem:[%s9408_s3 + $0x48] sm:$0xff]  ;;  %v1403_v7 = vld [vmem:[%s9408_s3 + $0x10] sm:$0xff]  ;;  %6836 = vmatpush3.bf16.msra.mxu1 %v8309_v37 }
 0x146   :  { %v5394_v20 = vpop.f32.mrb[37].mxu1  ;;  %6837 = vmatprep.subr.bf16.mxu1 %v7501_v36 }
 0x147   :  { %v5343_v27 = vpop.f32.mrb[40].mxu0  ;;  %v1011_v28 = vmax.f32 %v977_v14, 0.0  ;;  %v8277_v33 = vadd.f32 %v5394_v20, %v5393_v19  ;;  %v817_v22 = vadd.f32 %v5342_v13, %v8202_v62  ;;  %v8321_v13 = vpack.c.bf16 %v1411_v3, %v1410_v38  ;;  %v1404_v14 = vld [vmem:[%s9408_s3 + $0x18] sm:$0xff]  ;;  %v1416_v3 = vld [vmem:[%s9408_s3 + $0x70] sm:$0xff] }
 0x148   :  { %v5344_v34 = vpop.f32.mrb[41].mxu0  ;;  %v8327_v19 = vpack.c.bf16 %v1404_v14, %v1403_v7  ;;  %v1417_v7 = vld [vmem:[%s9408_s3 + $0x78] sm:$0xff] }
 0x149   :  { %v8279_v40 = vadd.f32 %v5344_v34, %v5343_v27  ;;  %1028 = vrot.lane.b32.xlu1 %v1011_v28, %s7499_s21  ;;  %v5396_v46 = vpop.f32.mrb[38].mxu1  ;;  %v843_v8 = vmax.f32 %v817_v22, 0.0  ;;  %6824 = vmatpush3.bf16.msra.mxu0 %v8321_v13  ;;  %v1407_v22 = vld [vmem:[%s9408_s3 + $0x30] sm:$0xff]  ;;  %v8404_v14 = vpack.c.bf16 %v1417_v7, %v1416_v3 }
 0x14a   :  { %v5397_v42 = vpop.f32.mrb[39].mxu1  ;;  %6825 = vmatprep.subr.bf16.mxu0 %v7501_v36  ;;  %6839 = vmatpush3.bf16.msra.mxu1 %v8327_v19 }
 0x14b   :  { %v5346_v49 = vpop.f32.mrb[42].mxu0  ;;  %v5398_v43 = vadd.f32 %v5397_v42, %v5396_v46  ;;  %6840 = vmatprep.subr.bf16.mxu1 %v7501_v36 }
 0x14c   :  { %v5347_v44 = vpop.f32.mrb[43].mxu0 }
 0x14d   :  { %v8282_v47 = vadd.f32 %v5347_v44, %v5346_v49  ;;  %v987_v29 = vadd.f32 %v5398_v43, %v8202_v62 }
 0x14f   :  { %v5349_v52 = vpop.f32.mrb[44].mxu0  ;;  %v1013_v20 = vmax.f32 %v987_v29, 0.0  ;;  %v1408_v29 = vld [vmem:[%s9408_s3 + $0x38] sm:$0xff] }
 0x150   :  { %v5350_v53 = vpop.f32.mrb[45].mxu0  ;;  %v8391_v30 = vpack.c.bf16 %v1408_v29, %v1407_v22 }
 0x151   :  { %v8284_v54 = vadd.f32 %v5350_v53, %v5349_v52 }
 0x153   :  { %v5352_v55 = vpop.f32.mrb[46].mxu0 }
 0x154   :  { %v5353_v59 = vpop.f32.mrb[47].mxu0 }
 0x155   :  { %v8286_v60 = vadd.f32 %v5353_v59, %v5352_v55  ;;  %v1412_v55 = vld [vmem:[%s9408_s3 + $0x50] sm:$0xff]  ;;  %v1413_v59 = vld [vmem:[%s9408_s3 + $0x58] sm:$0xff] }
 0x157   :  { %v5443_v61 = vpop.f32.mrb[48].mxu0 }
 0x158   :  { %v5444_v63 = vpop.f32.mrb[49].mxu0 }
 0x159   :  { %v5445_v2 = vadd.f32 %v5444_v63, %v5443_v61  ;;  %v1405_v61 = vld [vmem:[%s9408_s3 + $0x20] sm:$0xff] }
 0x15b   :  { %v1142_v5 = vadd.f32 %v5445_v2, %v8202_v62  ;;  %v5446_v6 = vpop.f32.mrb[50].mxu0 }
 0x15c   :  { %v5447_v9 = vpop.f32.mrb[51].mxu0 }
 0x15d   :  { %v1180_v15 = vmax.f32 %v1142_v5, 0.0  ;;  %v5448_v16 = vadd.f32 %v5447_v9, %v5446_v6  ;;  %v1241_v5 = vld [vmem:[%s9406_s0 + $0x3e0] sm:$0xff]  ;;  %v8356_v6 = vpack.c.bf16 %v1413_v59, %v1412_v55  ;;  %v1406_v9 = vld [vmem:[%s9408_s3 + $0x28] sm:$0xff]  ;;  %v812_v55 = vadd.f32 %v8271_v35, %v8202_v62 }
 0x15e   :  { %1340 = vmatmul.mubr.f32.gmra.mrb[52].mxu1 %v1241_v5  ;;  %v8362_v12 = vpack.c.bf16 %v1406_v9, %v1405_v61 }
 0x15f   :  { %v1147_v17 = vadd.f32 %v5448_v16, %v8202_v62  ;;  %v5449_v18 = vpop.f32.mrb[52].mxu0  ;;  %1196 = vrot.lane.b32.xlu0 %v1180_v15, %s7500_s22  ;;  %v1244_v15 = vld [vmem:[%s9406_s0 + $0x3f8] sm:$0xff]  ;;  %6827 = vmatpush3.bf16.msra.mxu0 %v8356_v6 }
 0x160   :  { %v5450_v21 = vpop.f32.mrb[53].mxu0  ;;  %1344 = vmatprep.mubr.f32.mxu1 %v1244_v15  ;;  %6842 = vmatpush3.bf16.msra.mxu1 %v8362_v12  ;;  %v842_v15 = vmax.f32 %v812_v55, 0.0 }
 0x161   :  { %v1181_v24 = vmax.f32 %v1147_v17, 0.0  ;;  %v8294_v25 = vadd.f32 %v5450_v21, %v5449_v18  ;;  %6828 = vmatprep.subr.bf16.mxu0 %v7501_v36  ;;  %v1414_v18 = vld [vmem:[%s9408_s3 + $0x60] sm:$0xff]  ;;  %v1415_v21 = vld [vmem:[%s9408_s3 + $0x68] sm:$0xff]  ;;  %6843 = vmatprep.subr.bf16.mxu1 %v7501_v36 }
 0x162   :  { %1345 = vmatmul.mubr.f32.gmra.mrb[54].mxu1 %v1243_v26 }
 0x163   :  { %v5452_v39 = vpop.f32.mrb[54].mxu0  ;;  %1198 = vrot.lane.b32.xlu1 %v1181_v24, %s7500_s22  ;;  %692 = vrot.lane.b32.xlu0 %v673_v23, %s7497_s19 }
 0x164   :  { %v5453_v32 = vpop.f32.mrb[55].mxu0  ;;  %6845 = vmatpush3.bf16.msra.mxu1 %v8391_v30 }
 0x165   :  { %v5454_v41 = vadd.f32 %v5453_v32, %v5452_v39  ;;  %v8385_v39 = vpack.c.bf16 %v1415_v21, %v1414_v18  ;;  %v7503_v32 = vmov 0.0   ;;  %6858 = vmatprep.subr.bf16.mxu1 %v7501_v36  ;;  %v1152_v18 = vadd.f32 %v8294_v25, %v8202_v62 }
 0x166   :  { %5917 = vmatprep.mubr.msk.f32.mxu1 %vm7502_vm2, %v7503_v32  ;;  %5898 = vmatprep.mubr.msk.f32.mxu0 %vm7502_vm2, %v7503_v32 }
 0x167   :  { %v5455_v27 = vpop.f32.mrb[56].mxu0  ;;  %862 = vrot.lane.b32.xlu0 %v843_v8, %s7498_s20  ;;  %v1157_v34 = vadd.f32 %v5454_v41, %v8202_v62  ;;  %6830 = vmatpush3.bf16.msra.mxu0 %v8385_v39  ;;  %v1182_v21 = vmax.f32 %v1152_v18, 0.0 }
 0x168   :  { %v5456_v28 = vpop.f32.mrb[57].mxu0  ;;  %6831 = vmatprep.subr.bf16.mxu0 %v7501_v36 }
 0x169   :  { %v8333_v46 = vadd.f32 %v5456_v28, %v5455_v27  ;;  %v1183_v43 = vmax.f32 %v1157_v34, 0.0 }
 0x16b   :  { %v5458_v42 = vpop.f32.mrb[58].mxu0  ;;  %1032 = vrot.lane.b32.xlu0 %v1013_v20, %s7499_s21  ;;  %6833 = vmatpush3.bf16.msra.mxu0 %v8404_v14 }
 0x16c   :  { %v5459_v49 = vpop.f32.mrb[59].mxu0  ;;  %6846 = vmatprep.subr.bf16.mxu0 %v7501_v36 }
 0x16d   :  { %v8339_v44 = vadd.f32 %v5459_v49, %v5458_v42 }
 0x16f   :  { %v5461_v52 = vpop.f32.mrb[60].mxu0  ;;  %1202 = vrot.lane.b32.xlu0 %v1183_v43, %s7500_s22 }
 0x170   :  { %v5462_v53 = vpop.f32.mrb[61].mxu0 }
 0x171   :  { %v8351_v63 = vadd.f32 %v5462_v53, %v5461_v52  ;;  %v347_v2 = vpop.permute.xlu1 %346 }
 0x172   :  { %371 = vst.msk [vmem:[#allocation2] sm:$0xff] %vm370_vm1, %v347_v2  ;;  %v982_v2 = vadd.f32 %v8277_v33, %v8202_v62 }
 0x173   :  { %v5464_v16 = vpop.f32.mrb[62].mxu0 }
 0x174   :  { %v5465_v17 = vpop.f32.mrb[63].mxu0 }
 0x175   :  { %v8379_v23 = vadd.f32 %v5465_v17, %v5464_v16  ;;  %v349_v24 = vpop.permute.xlu0 %348  ;;  %v1012_v17 = vmax.f32 %v982_v2, 0.0 }
 0x176   :  { %372 = vst.msk [vmem:[#allocation2 + $0x8] sm:$0xff] %vm370_vm1, %v349_v24 }
 0x177   :  { %v5499_v31 = vpop.f32.mrb[64].mxu0 }
 0x178   :  { %v5500_v38 = vpop.f32.mrb[65].mxu0 }
 0x179   :  { %v5501_v8 = vadd.f32 %v5500_v38, %v5499_v31  ;;  %v351_v41 = vpop.permute.xlu0 %350 }
 0x17a   :  { %373 = vst.msk [vmem:[#allocation2 + $0x10] sm:$0xff] %vm370_vm1, %v351_v41 }
 0x17b   :  { %v1312_v20 = vadd.f32 %v5501_v8, %v8202_v62  ;;  %v5502_v27 = vpop.f32.mrb[66].mxu0  ;;  %v5399_v8 = vpop.f32.mrb[40].mxu1 }
 0x17c   :  { %v5503_v28 = vpop.f32.mrb[67].mxu0  ;;  %v5400_v41 = vpop.f32.mrb[41].mxu1 }
 0x17d   :  { %v1350_v34 = vmax.f32 %v1312_v20, 0.0  ;;  %v5504_v42 = vadd.f32 %v5503_v28, %v5502_v27  ;;  %v353_v49 = vpop.permute.xlu0 %352  ;;  %v8437_v20 = vadd.f32 %v5400_v41, %v5399_v8  ;;  %v5402_v27 = vpop.f32.mrb[42].mxu1  ;;  %v1567_v41 = vld [vmem:[%s9408_s3 + $0x88] sm:$0xff] }
 0x17e   :  { %374 = vst.msk [vmem:[#allocation2 + $0x18] sm:$0xff] %vm370_vm1, %v353_v49  ;;  %v5403_v28 = vpop.f32.mrb[43].mxu1 }
 0x17f   :  { %v1317_v43 = vadd.f32 %v5504_v42, %v8202_v62  ;;  %1366 = vrot.lane.b32.xlu1 %v1350_v34, %s7504_s30  ;;  %v5505_v52 = vpop.f32.mrb[68].mxu0  ;;  %v8439_v34 = vadd.f32 %v5403_v28, %v5402_v27  ;;  %v5405_v42 = vpop.f32.mrb[44].mxu1  ;;  %v1651_v27 = vld [vmem:[%s9408_s3 + $0xd0] sm:$0xff]  ;;  %v1652_v28 = vld [vmem:[%s9408_s3 + $0xd8] sm:$0xff] }
 0x180   :  { %v5506_v53 = vpop.f32.mrb[69].mxu0  ;;  %v5406_v49 = vpop.f32.mrb[45].mxu1 }
 0x181   :  { %v1351_v59 = vmax.f32 %v1317_v43, 0.0  ;;  %v5507_v61 = vadd.f32 %v5506_v53, %v5505_v52  ;;  %v8441_v43 = vadd.f32 %v5406_v49, %v5405_v42  ;;  %v5408_v52 = vpop.f32.mrb[46].mxu1 }
 0x182   :  { %v5409_v53 = vpop.f32.mrb[47].mxu1 }
 0x183   :  { %1368 = vrot.lane.b32.xlu1 %v1351_v59, %s7504_s30  ;;  %v5508_v5 = vpop.f32.mrb[70].mxu0  ;;  %v1322_v35 = vadd.f32 %v5507_v61, %v8202_v62  ;;  %v8443_v55 = vadd.f32 %v5409_v53, %v5408_v52  ;;  %v5511_v59 = vpop.f32.mrb[48].mxu1  ;;  %v1568_v53 = vld [vmem:[%s9408_s3 + $0x90] sm:$0xff] }
 0x184   :  { %v5509_v9 = vpop.f32.mrb[71].mxu0  ;;  %v5512_v61 = vpop.f32.mrb[49].mxu1 }
 0x185   :  { %v5510_v16 = vadd.f32 %v5509_v9, %v5508_v5  ;;  %v1352_v22 = vmax.f32 %v1322_v35, 0.0  ;;  %v8445_v2 = vadd.f32 %v5512_v61, %v5511_v59  ;;  %v5514_v5 = vpop.f32.mrb[50].mxu1  ;;  %v8494_v59 = vpack.c.bf16 %v1652_v28, %v1651_v27  ;;  %v1569_v61 = vld [vmem:[%s9408_s3 + $0x98] sm:$0xff] }
 0x186   :  { %v5515_v9 = vpop.f32.mrb[51].mxu1 }
 0x187   :  { %860 = vrot.lane.b32.xlu1 %v842_v15, %s7498_s20  ;;  %v1327_v33 = vadd.f32 %v5510_v16, %v8202_v62  ;;  %v8447_v15 = vadd.f32 %v5515_v9, %v5514_v5  ;;  %v1653_v5 = vld [vmem:[%s9408_s3 + $0xe0] sm:$0xff]  ;;  %v1654_v9 = vld [vmem:[%s9408_s3 + $0xe8] sm:$0xff] }
 0x189   :  { %v1353_v26 = vmax.f32 %v1327_v33, 0.0 }
 0x18b   :  { %1030 = vrot.lane.b32.xlu1 %v1012_v17, %s7499_s21 }
 0x18f   :  { %1200 = vrot.lane.b32.xlu1 %v1182_v21, %s7500_s22 }
 0x191   :  { %v517_v24 = vpop.permute.xlu0 %516 }
 0x192   :  { %541 = vst.msk [vmem:[#allocation2] sm:$0xff] %vm540_vm3, %v517_v24 }
 0x193   :  { %1370 = vrot.lane.b32.xlu1 %v1352_v22, %s7504_s30 }
 0x195   :  { %v689_v29 = vpop.permute.xlu1 %688  ;;  %v687_v25 = vpop.permute.xlu0 %686 }
 0x196   :  { %711 = vst.msk [vmem:[#allocation2] sm:$0xff] %vm710_vm4, %v687_v25 }
 0x197   :  { %1372 = vrot.lane.b32.xlu1 %v1353_v26, %s7504_s30 }
 0x199   :  { %v521_v31 = vpop.permute.xlu1 %520  ;;  %v519_v38 = vpop.permute.xlu0 %518 }
 0x19a   :  { %543 = vst.msk [vmem:[#allocation2 + $0x10] sm:$0xff] %vm540_vm3, %v521_v31  ;;  %542 = vst.msk [vmem:[#allocation2 + $0x8] sm:$0xff] %vm540_vm3, %v519_v38  ;;  %v1649_v31 = vld [vmem:[%s9408_s3 + $0xc0] sm:$0xff]  ;;  %v1650_v38 = vld [vmem:[%s9408_s3 + $0xc8] sm:$0xff] }
 0x19b   :  { %712 = vst.msk [vmem:[#allocation2 + $0x8] sm:$0xff] %vm710_vm4, %v689_v29  ;;  %v8470_v8 = vpack.c.bf16 %v1650_v38, %v1649_v31  ;;  %v1572_v31 = vld [vmem:[%s9408_s3 + $0xb0] sm:$0xff]  ;;  %v1573_v38 = vld [vmem:[%s9408_s3 + $0xb8] sm:$0xff] }
 0x19d   :  { %v523_v3 = vpop.permute.xlu0 %522  ;;  %v691_v7 = vpop.permute.xlu1 %690 }
 0x19e   :  { %544 = vst.msk [vmem:[#allocation2 + $0x18] sm:$0xff] %vm540_vm3, %v523_v3 }
 0x19f   :  { %713 = vst.msk [vmem:[#allocation2 + $0x10] sm:$0xff] %vm710_vm4, %v691_v7  ;;  %v1566_v7 = vld [vmem:[%s9408_s3 + $0x80] sm:$0xff] }
 0x1a0   :  { %v8488_v52 = vpack.c.bf16 %v1567_v41, %v1566_v7  ;;  %v8550_v7 = vpack.c.bf16 %v1573_v38, %v1572_v31 }
 0x1b1   :  { %v857_v16 = vpop.permute.xlu0 %856 }
 0x1b2   :  { %881 = vst.msk [vmem:[#allocation2] sm:$0xff] %vm880_vm5, %v857_v16 }
 0x1b5   :  { %v859_v17 = vpop.permute.xlu1 %858 }
 0x1b6   :  { %882 = vst.msk [vmem:[#allocation2 + $0x8] sm:$0xff] %vm880_vm5, %v859_v17 }
 0x1b7   :  { %v1027_v18 = vpop.permute.xlu0 %1026 }
 0x1b8   :  { %1051 = vst.msk [vmem:[#allocation2] sm:$0xff] %vm1050_vm6, %v1027_v18  ;;  %v8512_v18 = vpack.c.bf16 %v1569_v61, %v1568_v53  ;;  %v482_v61 = vadd.f32 %v8250_v48, %v8202_v62  ;;  %v652_v48 = vadd.f32 %v8252_v51, %v8202_v62  ;;  %v8619_v51 = vld [vmem:[%s9407_s2] ss:$0 sm:$0xff] }
 0x1bb   :  { %v1029_v35 = vpop.permute.xlu1 %1028 }
 0x1bc   :  { %1052 = vst.msk [vmem:[#allocation2 + $0x8] sm:$0xff] %vm1050_vm6, %v1029_v35  ;;  %v1570_v35 = vld [vmem:[%s9408_s3 + $0xa0] sm:$0xff] }
 0x1d1   :  { %v1197_v21 = vpop.permute.xlu0 %1196 }
 0x1d2   :  { %1221 = vst.msk [vmem:[#allocation2] sm:$0xff] %vm1220_vm7, %v1197_v21  ;;  %v8518_v21 = vpack.c.bf16 %v1654_v9, %v1653_v5  ;;  %v504_v5 = vmax.f32 %v482_v61, 0.0 }
 0x1d5   :  { %v1199_v22 = vpop.permute.xlu1 %1198  ;;  %v693_v33 = vpop.permute.xlu0 %692 }
 0x1d6   :  { %1222 = vst.msk [vmem:[#allocation2 + $0x8] sm:$0xff] %vm1220_vm7, %v1199_v22  ;;  %v1571_v22 = vld [vmem:[%s9408_s3 + $0xa8] sm:$0xff] }
 0x1d7   :  { %714 = vst.msk [vmem:[#allocation2 + $0x18] sm:$0xff] %vm710_vm4, %v693_v33  ;;  %v1655_v33 = vld [vmem:[%s9408_s3 + $0xf0] sm:$0xff] }
 0x1d9   :  { %v863_v24 = vpop.permute.xlu0 %862 }
 0x1da   :  { %884 = vst.msk [vmem:[#allocation2 + $0x18] sm:$0xff] %vm880_vm5, %v863_v24  ;;  %v1656_v24 = vld [vmem:[%s9408_s3 + $0xf8] sm:$0xff] }
 0x1dd   :  { %v1033_v26 = vpop.permute.xlu0 %1032 }
 0x1de   :  { %1054 = vst.msk [vmem:[#allocation2 + $0x18] sm:$0xff] %vm1050_vm6, %v1033_v26 }
 0x1e1   :  { %v1203_v29 = vpop.permute.xlu0 %1202 }
 0x1e2   :  { %1224 = vst.msk [vmem:[#allocation2 + $0x18] sm:$0xff] %vm1220_vm7, %v1203_v29  ;;  %v8535_v29 = vpack.c.bf16 %v1571_v22, %v1570_v35 }
 0x1f1   :  { %v1367_v25 = vpop.permute.xlu1 %1366 }
 0x1f2   :  { %1391 = vst.msk [vmem:[#allocation2] sm:$0xff] %vm1390_vm8, %v1367_v25  ;;  %v8538_v25 = vpack.c.bf16 %v1656_v24, %v1655_v33  ;;  %v997_v33 = vadd.f32 %v8619_v51, %v8439_v34  ;;  %v1167_v34 = vadd.f32 %v8619_v51, %v8339_v44 }
 0x1f4   :  { %v1015_v31 = vmax.f32 %v997_v33, 0.0 }
 0x1f5   :  { %v1369_v3 = vpop.permute.xlu1 %1368 }
 0x1f6   :  { %1392 = vst.msk [vmem:[#allocation2 + $0x8] sm:$0xff] %vm1390_vm8, %v1369_v3 }
 0x1f9   :  { %v861_v42 = vpop.permute.xlu1 %860  ;;  %v8481_v49 = vld [vmem:[#allocation2] sm:$0xff] }
 0x1fa   :  { %883 = vst.msk [vmem:[#allocation2 + $0x10] sm:$0xff] %vm880_vm5, %v861_v42  ;;  %1825 = vrot.lane.b32.xlu1 %v8481_v49, %s7500_s22  ;;  %5918 = vmatmul.mubr.msk.f32.vlgmr.msra.gmra.mrb[56].mxu1 %vm1418_vm9, %v8481_v49  ;;  %v312_v42 = vadd.f32 %v8218_v45, %v8202_v62  ;;  %v317_v45 = vadd.f32 %v8223_v50, %v8202_v62 }
 0x1fb   :  { %6860 = vmatpush3.bf16.msra.mxu1 %v8470_v8  ;;  %5955 = vmatprep.mubr.msk.f32.mxu1 %vm7502_vm2, %v7503_v32  ;;  %v487_v50 = vadd.f32 %v8256_v56, %v8202_v62  ;;  %v657_v56 = vadd.f32 %v8258_v57, %v8202_v62 }
 0x1fc   :  { %6861 = vmatprep.subr.bf16.mxu1 %v7501_v36  ;;  %v334_v53 = vmax.f32 %v312_v42, 0.0 }
 0x1fd   :  { %v1031_v16 = vpop.permute.xlu1 %1030  ;;  %v1409_v17 = vld [vmem:[#allocation2 + $0x8] sm:$0xff]  ;;  %v505_v9 = vmax.f32 %v487_v50, 0.0  ;;  %v675_v57 = vmax.f32 %v657_v56, 0.0 }
 0x1fe   :  { %1053 = vst.msk [vmem:[#allocation2 + $0x10] sm:$0xff] %vm1050_vm6, %v1031_v16  ;;  %1751 = vrot.lane.b32.xlu0 %v1409_v17, %s7500_s22  ;;  %5899 = vmatmul.mubr.msk.f32.vlgmr.msra.gmra.mrb[72].mxu0 %vm1418_vm9, %v1409_v17  ;;  %v822_v16 = vadd.f32 %v8279_v40, %v8202_v62  ;;  %v992_v40 = vadd.f32 %v8619_v51, %v8437_v20 }
 0x1ff   :  { %6848 = vmatpush3.bf16.msra.mxu0 %v8488_v52  ;;  %6863 = vmatpush3.bf16.msra.mxu1 %v8494_v59  ;;  %v827_v62 = vadd.f32 %v8619_v51, %v8282_v47  ;;  %v1332_v47 = vadd.f32 %v8619_v51, %v8445_v2 }
 0x200   :  { %6849 = vmatprep.subr.bf16.mxu0 %v7501_v36  ;;  %6864 = vmatprep.subr.bf16.mxu1 %v7501_v36  ;;  %v844_v35 = vmax.f32 %v822_v16, 0.0  ;;  %v1014_v22 = vmax.f32 %v992_v40, 0.0 }
 0x201   :  { %v1201_v26 = vpop.permute.xlu1 %1200  ;;  %5936 = vmatprep.mubr.msk.f32.mxu0 %vm7502_vm2, %v7503_v32  ;;  %v845_v24 = vmax.f32 %v827_v62, 0.0  ;;  %v1354_v38 = vmax.f32 %v1332_v47, 0.0 }
 0x202   :  { %1223 = vst.msk [vmem:[#allocation2 + $0x10] sm:$0xff] %vm1220_vm7, %v1201_v26  ;;  %v1162_v26 = vadd.f32 %v8619_v51, %v8333_v46  ;;  %v1337_v46 = vadd.f32 %v8619_v51, %v8447_v15 }
 0x203   :  { %6851 = vmatpush3.bf16.msra.mxu0 %v8512_v18  ;;  %6866 = vmatpush3.bf16.msra.mxu1 %v8518_v21 }
 0x204   :  { %6852 = vmatprep.subr.bf16.mxu0 %v7501_v36  ;;  %6867 = vmatprep.subr.bf16.mxu1 %v7501_v36  ;;  %v1184_v20 = vmax.f32 %v1162_v26, 0.0 }
 0x205   :  { %v1371_v3 = vpop.permute.xlu1 %1370 }
 0x206   :  { %1393 = vst.msk [vmem:[#allocation2 + $0x10] sm:$0xff] %vm1390_vm8, %v1371_v3  ;;  %v1185_v3 = vmax.f32 %v1167_v34, 0.0 }
 0x207   :  { %6854 = vmatpush3.bf16.msra.mxu0 %v8535_v29  ;;  %6869 = vmatpush3.bf16.msra.mxu1 %v8538_v25 }
 0x208   :  { %6855 = vmatprep.subr.bf16.mxu0 %v7501_v36  ;;  %6882 = vmatprep.subr.bf16.mxu1 %v7501_v36 }
 0x209   :  { %v1373_v41 = vpop.permute.xlu1 %1372 }
 0x20a   :  { %1394 = vst.msk [vmem:[#allocation2 + $0x18] sm:$0xff] %vm1390_vm8, %v1373_v41  ;;  %v1355_v41 = vmax.f32 %v1337_v46, 0.0 }
 0x20b   :  { %6857 = vmatpush3.bf16.msra.mxu0 %v8550_v7 }
 0x20c   :  { %6870 = vmatprep.subr.bf16.mxu0 %v7501_v36 }
 0x20d   :  { %v8558_v27 = vld [vmem:[#allocation2 + $0x10] sm:$0xff] }
 0x20e   :  { %1899 = vrot.lane.b32.xlu0 %v8558_v27, %s7500_s22  ;;  %5937 = vmatmul.mubr.msk.f32.vlgmr.msra.gmra.mrb[74].mxu0 %vm1418_vm9, %v8558_v27 }
 0x20f   :  { %6872 = vmatpush3.bf16.msra.mxu0 %v8321_v13  ;;  %5974 = vmatprep.mubr.msk.f32.mxu0 %vm7502_vm2, %v7503_v32 }
 0x210   :  { %6873 = vmatprep.subr.bf16.mxu0 %v7501_v36 }
 0x211   :  { %v8568_v28 = vld [vmem:[#allocation2 + $0x18] sm:$0xff] }
 0x212   :  { %2212 = vrot.lane.b32.xlu0 %v1409_v17, %s7498_s20  ;;  %1974 = vrot.lane.b32.xlu1 %v8568_v28, %s7500_s22  ;;  %v674_v17 = vmax.f32 %v652_v48, 0.0 }
 0x213   :  { %5956 = vmatmul.mubr.msk.f32.vlgmr.msra.gmra.mrb[58].mxu1 %vm1418_vm9, %v8568_v28  ;;  %6875 = vmatpush3.bf16.msra.mxu0 %v8356_v6 }
 0x214   :  { %6884 = vmatpush3.bf16.msra.mxu1 %v8309_v37  ;;  %6876 = vmatprep.subr.bf16.mxu0 %v7501_v36 }
 0x215   :  { %6885 = vmatprep.subr.bf16.mxu1 %v7501_v36  ;;  %5993 = vmatprep.mubr.msk.f32.mxu1 %vm7502_vm2, %v7503_v32 }
 0x216   :  { %2360 = vrot.lane.b32.xlu0 %v8558_v27, %s7498_s20  ;;  %2286 = vrot.lane.b32.xlu1 %v8481_v49, %s7498_s20  ;;  %v335_v49 = vmax.f32 %v317_v45, 0.0 }
 0x217   :  { %6878 = vmatpush3.bf16.msra.mxu0 %v8385_v39 }
 0x218   :  { %6887 = vmatpush3.bf16.msra.mxu1 %v8327_v19  ;;  %6879 = vmatprep.subr.bf16.mxu0 %v7501_v36 }
 0x219   :  { %6888 = vmatprep.subr.bf16.mxu1 %v7501_v36 }
 0x21a   :  { %354 = vrot.lane.b32.xlu0 %v334_v53, %s7495_s17  ;;  %2435 = vrot.lane.b32.xlu1 %v8568_v28, %s7498_s20 }
 0x21b   :  { %6881 = vmatpush3.bf16.msra.mxu0 %v8404_v14 }
 0x21c   :  { %6890 = vmatpush3.bf16.msra.mxu1 %v8362_v12  ;;  %6894 = vmatprep.subr.bf16.mxu0 %v7501_v36 }
 0x21d   :  { %6891 = vmatprep.subr.bf16.mxu1 %v7501_v36 }
 0x21e   :  { %356 = vrot.lane.b32.xlu0 %v335_v49, %s7495_s17  ;;  %524 = vrot.lane.b32.xlu1 %v504_v5, %s7496_s18 }
 0x220   :  { %6893 = vmatpush3.bf16.msra.mxu1 %v8391_v30 }
 0x221   :  { %6906 = vmatprep.subr.bf16.mxu1 %v7501_v36 }
 0x222   :  { %526 = vrot.lane.b32.xlu0 %v505_v9, %s7496_s18  ;;  %694 = vrot.lane.b32.xlu1 %v674_v17, %s7497_s19 }
 0x226   :  { %696 = vrot.lane.b32.xlu0 %v675_v57, %s7497_s19  ;;  %864 = vrot.lane.b32.xlu1 %v844_v35, %s7498_s20 }
 0x22a   :  { %866 = vrot.lane.b32.xlu0 %v845_v24, %s7498_s20  ;;  %1034 = vrot.lane.b32.xlu1 %v1014_v22, %s7499_s21 }
 0x22e   :  { %1036 = vrot.lane.b32.xlu0 %v1015_v31, %s7499_s21  ;;  %1204 = vrot.lane.b32.xlu1 %v1184_v20, %s7500_s22 }
 0x231   :  { %v5517_v2 = vpop.f32.mrb[52].mxu1 }
 0x232   :  { %1206 = vrot.lane.b32.xlu0 %v1185_v3, %s7500_s22  ;;  %1374 = vrot.lane.b32.xlu1 %v1354_v38, %s7504_s30  ;;  %v5518_v42 = vpop.f32.mrb[53].mxu1  ;;  %v322_v3 = vadd.f32 %v8619_v51, %v8227_v58  ;;  %v492_v58 = vadd.f32 %v8619_v51, %v8260_v0  ;;  %v662_v0 = vadd.f32 %v8619_v51, %v8262_v1 }
 0x233   :  { %v8644_v53 = vadd.f32 %v5518_v42, %v5517_v2  ;;  %v327_v42 = vadd.f32 %v8619_v51, %v8231_v4  ;;  %v1002_v1 = vadd.f32 %v8619_v51, %v8441_v43 }
 0x234   :  { %v336_v2 = vmax.f32 %v322_v3, 0.0  ;;  %v506_v4 = vmax.f32 %v492_v58, 0.0 }
 0x235   :  { %v5520_v44 = vpop.f32.mrb[54].mxu1 }
 0x236   :  { %1376 = vrot.lane.b32.xlu1 %v1355_v41, %s7504_s30  ;;  %v5521_v45 = vpop.f32.mrb[55].mxu1 }
 0x237   :  { %v8646_v61 = vadd.f32 %v5521_v45, %v5520_v44  ;;  %v337_v44 = vmax.f32 %v327_v42, 0.0  ;;  %v497_v45 = vadd.f32 %v8619_v51, %v8264_v10  ;;  %v676_v10 = vmax.f32 %v662_v0, 0.0 }
 0x26c   :  { %v1826_v49 = vpop.permute.xlu1 %1825 }
 0x26d   :  { %5994 = vmatmul.mubr.msk.f32.vlgmr.msra.gmra.mrb[60].mxu1 %vm1418_vm9, %v1826_v49  ;;  %v667_v49 = vadd.f32 %v8619_v51, %v8266_v11 }
 0x26e   :  { %6908 = vmatpush3.bf16.msra.mxu1 %v8470_v8  ;;  %6031 = vmatprep.mubr.msk.f32.mxu1 %vm7502_vm2, %v7503_v32 }
 0x26f   :  { %6909 = vmatprep.subr.bf16.mxu1 %v7501_v36 }
 0x270   :  { %v1752_v15 = vpop.permute.xlu0 %1751 }
 0x271   :  { %5975 = vmatmul.mubr.msk.f32.vlgmr.msra.gmra.mrb[76].mxu0 %vm1418_vm9, %v1752_v15  ;;  %v832_v15 = vadd.f32 %v8619_v51, %v8284_v54  ;;  %v1016_v54 = vmax.f32 %v1002_v1, 0.0 }
 0x272   :  { %6896 = vmatpush3.bf16.msra.mxu0 %v8488_v52  ;;  %6911 = vmatpush3.bf16.msra.mxu1 %v8494_v59 }
 0x273   :  { %6897 = vmatprep.subr.bf16.mxu0 %v7501_v36  ;;  %6912 = vmatprep.subr.bf16.mxu1 %v7501_v36  ;;  %v846_v11 = vmax.f32 %v832_v15, 0.0 }
 0x274   :  { %6012 = vmatprep.mubr.msk.f32.mxu0 %vm7502_vm2, %v7503_v32 }
 0x276   :  { %6899 = vmatpush3.bf16.msra.mxu0 %v8512_v18  ;;  %6914 = vmatpush3.bf16.msra.mxu1 %v8518_v21 }
 0x277   :  { %6900 = vmatprep.subr.bf16.mxu0 %v7501_v36  ;;  %6915 = vmatprep.subr.bf16.mxu1 %v7501_v36 }
 0x27a   :  { %6902 = vmatpush3.bf16.msra.mxu0 %v8535_v29  ;;  %6917 = vmatpush3.bf16.msra.mxu1 %v8538_v25 }
 0x27b   :  { %6903 = vmatprep.subr.bf16.mxu0 %v7501_v36  ;;  %6934 = vmatprep.subr.bf16.mxu1 %v7501_v36 }
 0x27e   :  { %6905 = vmatpush3.bf16.msra.mxu0 %v8550_v7 }
 0x280   :  { %v8669_v5 = vpop.permute.xlu0 %1899 }
 0x281   :  { %6013 = vmatmul.mubr.msk.f32.vlgmr.msra.gmra.mrb[78].mxu0 %vm1418_vm9, %v8669_v5 }
 0x282   :  { %2131 = vmatprep.mubr.f32.mxu0 %v7503_v32 }
 0x284   :  { %v2213_v50 = vpop.permute.xlu0 %2212  ;;  %v8674_v48 = vpop.permute.xlu1 %1974 }
 0x285   :  { %6032 = vmatmul.mubr.msk.f32.vlgmr.msra.gmra.mrb[62].mxu1 %vm1418_vm9, %v8674_v48 }
 0x286   :  { %6936 = vmatpush3.bf16.msra.mxu1 %v8321_v13  ;;  %6050 = vmatprep.mubr.msk.f32.mxu1 %vm7502_vm2, %v7503_v32 }
 0x287   :  { %6937 = vmatprep.subr.bf16.mxu1 %v7501_v36 }
 0x288   :  { %v8682_v9 = vpop.permute.xlu0 %2360  ;;  %v8684_v16 = vpop.permute.xlu1 %2286 }
 0x28a   :  { %6939 = vmatpush3.bf16.msra.mxu1 %v8356_v6 }
 0x28b   :  { %6940 = vmatprep.subr.bf16.mxu1 %v7501_v36 }
 0x28c   :  { %v355_v17 = vpop.permute.xlu0 %354  ;;  %v8688_v56 = vpop.permute.xlu1 %2435 }
 0x28d   :  { %375 = vst.msk [vmem:[#allocation2 + $0x20] sm:$0xff] %vm370_vm1, %v355_v17  ;;  %v837_v17 = vadd.f32 %v8619_v51, %v8286_v60 }
 0x28e   :  { %6942 = vmatpush3.bf16.msra.mxu1 %v8385_v39 }
 0x28f   :  { %6943 = vmatprep.subr.bf16.mxu1 %v7501_v36  ;;  %v847_v43 = vmax.f32 %v837_v17, 0.0 }
 0x290   :  { %v357_v40 = vpop.permute.xlu0 %356  ;;  %v525_v35 = vpop.permute.xlu1 %524 }
 0x291   :  { %376 = vst.msk [vmem:[#allocation2 + $0x28] sm:$0xff] %vm370_vm1, %v357_v40  ;;  %v1007_v40 = vadd.f32 %v8619_v51, %v8443_v55  ;;  %v1342_v55 = vadd.f32 %v8619_v51, %v8644_v53 }
 0x292   :  { %545 = vst.msk [vmem:[#allocation2 + $0x20] sm:$0xff] %vm540_vm3, %v525_v35  ;;  %6945 = vmatpush3.bf16.msra.mxu1 %v8404_v14  ;;  %v1172_v35 = vadd.f32 %v8619_v51, %v8351_v63 }
 0x293   :  { %6958 = vmatprep.subr.bf16.mxu1 %v7501_v36  ;;  %v1017_v60 = vmax.f32 %v1007_v40, 0.0 }
 0x294   :  { %v527_v62 = vpop.permute.xlu0 %526  ;;  %v695_v57 = vpop.permute.xlu1 %694  ;;  %v1186_v63 = vmax.f32 %v1172_v35, 0.0 }
 0x295   :  { %546 = vst.msk [vmem:[#allocation2 + $0x28] sm:$0xff] %vm540_vm3, %v527_v62  ;;  %6051 = vmatmul.mubr.msk.f32.vlgmr.msra.gmra.mrb[64].mxu1 %vm1418_vm9, %v2213_v50  ;;  %v677_v50 = vmax.f32 %v667_v49, 0.0  ;;  %v1177_v62 = vadd.f32 %v8619_v51, %v8379_v23 }
 0x296   :  { %715 = vst.msk [vmem:[#allocation2 + $0x20] sm:$0xff] %vm710_vm4, %v695_v57  ;;  %6960 = vmatpush3.bf16.msra.mxu1 %v8488_v52  ;;  %6088 = vmatprep.mubr.msk.f32.mxu1 %vm7502_vm2, %v7503_v32  ;;  %v1347_v57 = vadd.f32 %v8619_v51, %v8646_v61  ;;  %v7436_v51 = vld [vmem:[%s9409_s5 + $0x24] ss:$8 sps:$4 sm:$0xff]   ;;  %v7438_v61 = vld [vmem:[%s9409_s5 + $0x20] ss:$8 sps:$4 sm:$0xff]  }
 0x297   :  { %6961 = vmatprep.subr.bf16.mxu1 %v7501_v36  ;;  %v1187_v53 = vmax.f32 %v1177_v62, 0.0  ;;  %6919 = vmatprep.subr.bf16.mxu0 %v7436_v51 }
 0x298   :  { %v697_v22 = vpop.permute.xlu0 %696  ;;  %v865_v33 = vpop.permute.xlu1 %864  ;;  %6921 = vmatpush1.bf16.msra.mxu0 %v7438_v61 }
 0x299   :  { %716 = vst.msk [vmem:[#allocation2 + $0x28] sm:$0xff] %vm710_vm4, %v697_v22  ;;  %v1357_v22 = vmax.f32 %v1347_v57, 0.0 }
 0x29a   :  { %885 = vst.msk [vmem:[#allocation2 + $0x20] sm:$0xff] %vm880_vm5, %v865_v33  ;;  %6963 = vmatpush3.bf16.msra.mxu1 %v8512_v18 }
 0x29b   :  { %6964 = vmatprep.subr.bf16.mxu1 %v7501_v36 }
 0x29c   :  { %v867_v24 = vpop.permute.xlu0 %866  ;;  %v1035_v26 = vpop.permute.xlu1 %1034 }
 0x29d   :  { %886 = vst.msk [vmem:[#allocation2 + $0x28] sm:$0xff] %vm880_vm5, %v867_v24 }
 0x29e   :  { %1055 = vst.msk [vmem:[#allocation2 + $0x20] sm:$0xff] %vm1050_vm6, %v1035_v26  ;;  %6966 = vmatpush3.bf16.msra.mxu1 %v8535_v29 }
 0x29f   :  { %6967 = vmatprep.subr.bf16.mxu1 %v7501_v36 }
 0x2a0   :  { %v1037_v31 = vpop.permute.xlu0 %1036  ;;  %v1205_v47 = vpop.permute.xlu1 %1204 }
 0x2a1   :  { %1056 = vst.msk [vmem:[#allocation2 + $0x28] sm:$0xff] %vm1050_vm6, %v1037_v31 }
 0x2a2   :  { %1225 = vst.msk [vmem:[#allocation2 + $0x20] sm:$0xff] %vm1220_vm7, %v1205_v47  ;;  %6969 = vmatpush3.bf16.msra.mxu1 %v8550_v7  ;;  %v7439_v47 = vld [vmem:[%s9409_s5 + $0x34] ss:$8 sps:$4 sm:$0xff]  }
 0x2a3   :  { %6990 = vmatprep.subr.bf16.mxu1 %v7501_v36  ;;  %6923 = vmatprep.subr.bf16.mxu0 %v7439_v47  ;;  %v8926_v47 = vld [vmem:[%s9410_s4] ss:$0 sm:$0xff] }
 0x2a4   :  { %v1207_v20 = vpop.permute.xlu0 %1206  ;;  %v1375_v34 = vpop.permute.xlu1 %1374 }
 0x2a5   :  { %1226 = vst.msk [vmem:[#allocation2 + $0x28] sm:$0xff] %vm1220_vm7, %v1207_v20  ;;  %6089 = vmatmul.mubr.msk.f32.vlgmr.msra.gmra.mrb[66].mxu1 %vm1418_vm9, %v8682_v9  ;;  %v7441_v20 = vld [vmem:[%s9409_s5 + $0x30] ss:$8 sps:$4 sm:$0xff]  }
 0x2a6   :  { %1395 = vst.msk [vmem:[#allocation2 + $0x20] sm:$0xff] %vm1390_vm8, %v1375_v34  ;;  %6992 = vmatpush3.bf16.msra.mxu1 %v8321_v13  ;;  %6126 = vmatprep.mubr.msk.f32.mxu1 %vm7502_vm2, %v7503_v32  ;;  %v7442_v34 = vld [vmem:[%s9409_s5 + $0x4] ss:$8 sps:$4 sm:$0xff]  }
 0x2a7   :  { %6993 = vmatprep.subr.bf16.mxu1 %v7501_v36  ;;  %6925 = vmatpush1.bf16.msra.mxu0 %v7441_v20  ;;  %v7444_v20 = vld [vmem:[%s9409_s5] ss:$8 sps:$4 sm:$0xff]  }
 0x2a8   :  { %v1377_v38 = vpop.permute.xlu1 %1376  ;;  %6927 = vmatprep.subr.bf16.mxu0 %v7442_v34 }
 0x2a9   :  { %1396 = vst.msk [vmem:[#allocation2 + $0x28] sm:$0xff] %vm1390_vm8, %v1377_v38 }
 0x2aa   :  { %6995 = vmatpush3.bf16.msra.mxu1 %v8356_v6 }
 0x2ab   :  { %6996 = vmatprep.subr.bf16.mxu1 %v7501_v36 }
 0x2ad   :  { %v8727_v46 = vld [vmem:[#allocation2 + $0x20] sm:$0xff] }
 0x2ae   :  { %3120 = vrot.lane.b32.xlu0 %v8727_v46, %s7500_s22  ;;  %6998 = vmatpush3.bf16.msra.mxu1 %v8385_v39 }
 0x2af   :  { %6999 = vmatprep.subr.bf16.mxu1 %v7501_v36 }
 0x2b0   :  { %v8735_v41 = vld [vmem:[#allocation2 + $0x28] sm:$0xff] }
 0x2b1   :  { %3195 = vrot.lane.b32.xlu1 %v8735_v41, %s7500_s22 }
 0x2b2   :  { %3500 = vrot.lane.b32.xlu0 %v8727_v46, %s7498_s20  ;;  %7001 = vmatpush3.bf16.msra.mxu1 %v8404_v14 }
 0x2b3   :  { %7002 = vmatprep.subr.bf16.mxu1 %v7501_v36 }
 0x2b5   :  { %6127 = vmatmul.mubr.msk.f32.vlgmr.msra.gmra.mrb[68].mxu1 %vm1418_vm9, %v8568_v28  ;;  %3575 = vrot.lane.b32.xlu1 %v8735_v41, %s7498_s20  ;;  %v507_v28 = vmax.f32 %v497_v45, 0.0 }
 0x2b6   :  { %358 = vrot.lane.b32.xlu0 %v336_v2, %s7495_s17  ;;  %7004 = vmatpush3.bf16.msra.mxu1 %v8309_v37 }
 0x2b7   :  { %7005 = vmatprep.subr.bf16.mxu1 %v7501_v36  ;;  %6145 = vmatprep.mubr.msk.f32.mxu1 %vm7502_vm2, %v7503_v32 }
 0x2b9   :  { %528 = vrot.lane.b32.xlu1 %v506_v4, %s7496_s18 }
 0x2ba   :  { %360 = vrot.lane.b32.xlu0 %v337_v44, %s7495_s17  ;;  %7007 = vmatpush3.bf16.msra.mxu1 %v8327_v19 }
 0x2bb   :  { %7008 = vmatprep.subr.bf16.mxu1 %v7501_v36 }
 0x2bd   :  { %698 = vrot.lane.b32.xlu1 %v676_v10, %s7497_s19 }
 0x2be   :  { %530 = vrot.lane.b32.xlu0 %v507_v28, %s7496_s18  ;;  %7010 = vmatpush3.bf16.msra.mxu1 %v8362_v12 }
 0x2bf   :  { %7011 = vmatprep.subr.bf16.mxu1 %v7501_v36 }
 0x2c1   :  { %868 = vrot.lane.b32.xlu1 %v846_v11, %s7498_s20 }
 0x2c2   :  { %700 = vrot.lane.b32.xlu0 %v677_v50, %s7497_s19  ;;  %7013 = vmatpush3.bf16.msra.mxu1 %v8391_v30 }
 0x2c3   :  { %7026 = vmatprep.subr.bf16.mxu1 %v7501_v36 }
 0x2c5   :  { %6146 = vmatmul.mubr.msk.f32.vlgmr.msra.gmra.mrb[70].mxu1 %vm1418_vm9, %v8558_v27  ;;  %1038 = vrot.lane.b32.xlu1 %v1016_v54, %s7499_s21  ;;  %v1356_v27 = vmax.f32 %v1342_v55, 0.0 }
 0x2c6   :  { %870 = vrot.lane.b32.xlu0 %v847_v43, %s7498_s20  ;;  %7028 = vmatpush3.bf16.msra.mxu1 %v8470_v8 }
 0x2c7   :  { %7029 = vmatprep.subr.bf16.mxu1 %v7501_v36  ;;  %6183 = vmatprep.mubr.msk.f32.mxu1 %vm7502_vm2, %v7503_v32 }
 0x2c9   :  { %1208 = vrot.lane.b32.xlu1 %v1186_v63, %s7500_s22 }
 0x2ca   :  { %1040 = vrot.lane.b32.xlu0 %v1017_v60, %s7499_s21  ;;  %7031 = vmatpush3.bf16.msra.mxu1 %v8494_v59 }
 0x2cb   :  { %7032 = vmatprep.subr.bf16.mxu1 %v7501_v36 }
 0x2cd   :  { %v1561_v23 = vpop.f32.mrb[56].mxu1  ;;  %1378 = vrot.lane.b32.xlu1 %v1356_v27, %s7504_s30 }
 0x2ce   :  { %1210 = vrot.lane.b32.xlu0 %v1187_v53, %s7500_s22  ;;  %7034 = vmatpush3.bf16.msra.mxu1 %v8518_v21  ;;  %v5919_v33 = vpop.f32.mrb[57].mxu1 }
 0x2cf   :  { %7035 = vmatprep.subr.bf16.mxu1 %v7501_v36 }
 0x2d1   :  { %v1488_v24 = vpop.f32.mrb[72].mxu0  ;;  %1380 = vrot.lane.b32.xlu1 %v1357_v22, %s7504_s30 }
 0x2d2   :  { %v1562_v26 = vadd.f32 %v1561_v23, %v1488_v24  ;;  %7037 = vmatpush3.bf16.msra.mxu1 %v8538_v25  ;;  %v5900_v31 = vpop.f32.mrb[73].mxu0 }
 0x2d3   :  { %7058 = vmatprep.subr.bf16.mxu1 %v7501_v36 }
 0x2d5   :  { %6184 = vmatmul.mubr.msk.f32.vlgmr.msra.gmra.mrb[72].mxu1 %vm1418_vm9, %v8735_v41 }
 0x2d6   :  { %7060 = vmatpush3.bf16.msra.mxu1 %v8309_v37  ;;  %6221 = vmatprep.mubr.msk.f32.mxu1 %vm7502_vm2, %v7503_v32 }
 0x2d7   :  { %7061 = vmatprep.subr.bf16.mxu1 %v7501_v36 }
 0x2da   :  { %7063 = vmatpush3.bf16.msra.mxu1 %v8327_v19 }
 0x2db   :  { %7064 = vmatprep.subr.bf16.mxu1 %v7501_v36 }
 0x2de   :  { %7066 = vmatpush3.bf16.msra.mxu1 %v8362_v12 }
 0x2df   :  { %7067 = vmatprep.subr.bf16.mxu1 %v7501_v36 }
 0x2e1   :  { %v1643_v38 = vpop.f32.mrb[74].mxu0 }
 0x2e2   :  { %v1647_v3 = vadd.f32 %v1643_v38, %v1562_v26  ;;  %7069 = vmatpush3.bf16.msra.mxu1 %v8391_v30  ;;  %v5938_v2 = vpop.f32.mrb[75].mxu0  ;;  %v7445_v38 = vld [vmem:[%s9409_s5 + $0x14] ss:$8 sps:$4 sm:$0xff]  }
 0x2e3   :  { %7082 = vmatprep.subr.bf16.mxu1 %v7501_v36 }
 0x2e5   :  { %6222 = vmatmul.mubr.msk.f32.vlgmr.msra.gmra.mrb[74].mxu1 %vm1418_vm9, %v8669_v5 }
 0x2e6   :  { %v1726_v42 = vpop.f32.mrb[58].mxu1  ;;  %7084 = vmatpush3.bf16.msra.mxu1 %v8470_v8  ;;  %6259 = vmatprep.mubr.msk.f32.mxu1 %vm7502_vm2, %v7503_v32 }
 0x2e7   :  { %v8841_v58 = vadd.f32 %v1726_v42, %v1647_v3  ;;  %v5957_v44 = vpop.f32.mrb[59].mxu1  ;;  %7085 = vmatprep.subr.bf16.mxu1 %v7501_v36  ;;  %v7447_v3 = vld [vmem:[%s9409_s5 + $0x10] ss:$8 sps:$4 sm:$0xff]  }
 0x2e9   :  { %v1737_v2 = vadd.f32 %v8926_v47, %v8841_v58 }
 0x2ea   :  { %7087 = vmatpush3.bf16.msra.mxu1 %v8494_v59 }
 0x2eb   :  { %7088 = vmatprep.subr.bf16.mxu1 %v7501_v36  ;;  %v1738_v42 = vmax.f32 %v1737_v2, 0.0 }
 0x2ee   :  { %7090 = vmatpush3.bf16.msra.mxu1 %v8518_v21 }
 0x2ef   :  { %7091 = vmatprep.subr.bf16.mxu1 %v7501_v36 }
 0x2f2   :  { %7093 = vmatpush3.bf16.msra.mxu1 %v8538_v25 }
 0x2f3   :  { %7102 = vmatprep.subr.bf16.mxu1 %v7501_v36 }
 0x320   :  { %v8850_v5 = vpop.permute.xlu0 %3120 }
 0x323   :  { %v8854_v4 = vpop.permute.xlu1 %3195 }
 0x324   :  { %v8852_v45 = vpop.permute.xlu0 %3500  ;;  %6260 = vmatmul.mubr.msk.f32.vlgmr.msra.gmra.mrb[76].mxu1 %vm1418_vm9, %v8854_v4 }
 0x325   :  { %7104 = vmatpush3.bf16.msra.mxu1 %v8321_v13  ;;  %6278 = vmatprep.mubr.msk.f32.mxu1 %vm7502_vm2, %v7503_v32 }
 0x326   :  { %7105 = vmatprep.subr.bf16.mxu1 %v7501_v36 }
 0x327   :  { %v8863_v28 = vpop.permute.xlu1 %3575 }
 0x328   :  { %v359_v0 = vpop.permute.xlu0 %358 }
 0x329   :  { %377 = vst.msk [vmem:[#allocation2 + $0x30] sm:$0xff] %vm370_vm1, %v359_v0  ;;  %7107 = vmatpush3.bf16.msra.mxu1 %v8356_v6 }
 0x32a   :  { %7108 = vmatprep.subr.bf16.mxu1 %v7501_v36 }
 0x32b   :  { %v529_v10 = vpop.permute.xlu1 %528 }
 0x32c   :  { %v361_v49 = vpop.permute.xlu0 %360  ;;  %547 = vst.msk [vmem:[#allocation2 + $0x30] sm:$0xff] %vm540_vm3, %v529_v10 }
 0x32d   :  { %378 = vst.msk [vmem:[#allocation2 + $0x38] sm:$0xff] %vm370_vm1, %v361_v49  ;;  %7110 = vmatpush3.bf16.msra.mxu1 %v8385_v39 }
 0x32e   :  { %7111 = vmatprep.subr.bf16.mxu1 %v7501_v36 }
 0x32f   :  { %v699_v1 = vpop.permute.xlu1 %698 }
 0x330   :  { %v531_v15 = vpop.permute.xlu0 %530  ;;  %717 = vst.msk [vmem:[#allocation2 + $0x30] sm:$0xff] %vm710_vm4, %v699_v1 }
 0x331   :  { %548 = vst.msk [vmem:[#allocation2 + $0x38] sm:$0xff] %vm540_vm3, %v531_v15  ;;  %7113 = vmatpush3.bf16.msra.mxu1 %v8404_v14 }
 0x332   :  { %7126 = vmatprep.subr.bf16.mxu1 %v7501_v36 }
 0x333   :  { %v869_v17 = vpop.permute.xlu1 %868 }
 0x334   :  { %v701_v50 = vpop.permute.xlu0 %700  ;;  %6279 = vmatmul.mubr.msk.f32.vlgmr.msra.gmra.mrb[78].mxu1 %vm1418_vm9, %v8688_v56  ;;  %887 = vst.msk [vmem:[#allocation2 + $0x30] sm:$0xff] %vm880_vm5, %v869_v17 }
 0x335   :  { %718 = vst.msk [vmem:[#allocation2 + $0x38] sm:$0xff] %vm710_vm4, %v701_v50  ;;  %7128 = vmatpush3.bf16.msra.mxu1 %v8488_v52  ;;  %6316 = vmatprep.mubr.msk.f32.mxu1 %vm7502_vm2, %v7503_v32 }
 0x336   :  { %7129 = vmatprep.subr.bf16.mxu1 %v7501_v36 }
 0x337   :  { %v1039_v40 = vpop.permute.xlu1 %1038 }
 0x338   :  { %v871_v11 = vpop.permute.xlu0 %870  ;;  %1057 = vst.msk [vmem:[#allocation2 + $0x30] sm:$0xff] %vm1050_vm6, %v1039_v40 }
 0x339   :  { %888 = vst.msk [vmem:[#allocation2 + $0x38] sm:$0xff] %vm880_vm5, %v871_v11  ;;  %7131 = vmatpush3.bf16.msra.mxu1 %v8512_v18 }
 0x33a   :  { %7132 = vmatprep.subr.bf16.mxu1 %v7501_v36 }
 0x33b   :  { %v1209_v43 = vpop.permute.xlu1 %1208 }
 0x33c   :  { %v1041_v54 = vpop.permute.xlu0 %1040  ;;  %1227 = vst.msk [vmem:[#allocation2 + $0x30] sm:$0xff] %vm1220_vm7, %v1209_v43  ;;  %v7450_v43 = vld [vmem:[%s9409_s5 + $0x40] ss:$8 sps:$4 sm:$0xff]  }
 0x33d   :  { %1058 = vst.msk [vmem:[#allocation2 + $0x38] sm:$0xff] %vm1050_vm6, %v1041_v54  ;;  %7134 = vmatpush3.bf16.msra.mxu1 %v8535_v29  ;;  %v7448_v54 = vld [vmem:[%s9409_s5 + $0x44] ss:$8 sps:$4 sm:$0xff]  }
 0x33e   :  { %7135 = vmatprep.subr.bf16.mxu1 %v7501_v36 }
 0x33f   :  { %v1379_v55 = vpop.permute.xlu1 %1378 }
 0x340   :  { %v1211_v35 = vpop.permute.xlu0 %1210  ;;  %v1895_v60 = vpop.f32.mrb[60].mxu1  ;;  %1397 = vst.msk [vmem:[#allocation2 + $0x30] sm:$0xff] %vm1390_vm8, %v1379_v55 }
 0x341   :  { %1228 = vst.msk [vmem:[#allocation2 + $0x38] sm:$0xff] %vm1220_vm7, %v1211_v35  ;;  %v5995_v62 = vpop.f32.mrb[61].mxu1  ;;  %7137 = vmatpush3.bf16.msra.mxu1 %v8550_v7  ;;  %v7451_v35 = vld [vmem:[%s9409_s5 + $0x54] ss:$8 sps:$4 sm:$0xff]  }
 0x342   :  { %7158 = vmatprep.subr.bf16.mxu1 %v7501_v36 }
 0x343   :  { %v1381_v27 = vpop.permute.xlu1 %1380 }
 0x344   :  { %v1821_v63 = vpop.f32.mrb[76].mxu0  ;;  %6317 = vmatmul.mubr.msk.f32.vlgmr.msra.gmra.mrb[80].mxu1 %vm1418_vm9, %v8852_v45  ;;  %1398 = vst.msk [vmem:[#allocation2 + $0x38] sm:$0xff] %vm1390_vm8, %v1381_v27 }
 0x345   :  { %v1896_v57 = vadd.f32 %v1895_v60, %v1821_v63  ;;  %v5976_v53 = vpop.f32.mrb[77].mxu0  ;;  %7160 = vmatpush3.bf16.msra.mxu1 %v8321_v13  ;;  %6354 = vmatprep.mubr.msk.f32.mxu1 %vm7502_vm2, %v7503_v32 }
 0x346   :  { %7161 = vmatprep.subr.bf16.mxu1 %v7501_v36 }
 0x347   :  { %v3880_v23 = vld [vmem:[#allocation2 + $0x30] sm:$0xff] }
 0x348   :  { %4260 = vrot.lane.b32.xlu0 %v3880_v23, %s7500_s22 }
 0x349   :  { %7163 = vmatpush3.bf16.msra.mxu1 %v8356_v6 }
 0x34a   :  { %7164 = vmatprep.subr.bf16.mxu1 %v7501_v36 }
 0x34b   :  { %v8905_v22 = vld [vmem:[#allocation2 + $0x38] sm:$0xff] }
 0x34c   :  { %4335 = vrot.lane.b32.xlu1 %v8905_v22, %s7500_s22  ;;  %4640 = vrot.lane.b32.xlu0 %v3880_v23, %s7498_s20 }
 0x34d   :  { %7166 = vmatpush3.bf16.msra.mxu1 %v8385_v39 }
 0x34e   :  { %7167 = vmatprep.subr.bf16.mxu1 %v7501_v36 }
 0x350   :  { %4715 = vrot.lane.b32.xlu1 %v8905_v22, %s7498_s20 }
 0x351   :  { %7169 = vmatpush3.bf16.msra.mxu1 %v8404_v14 }
 0x352   :  { %7182 = vmatprep.subr.bf16.mxu1 %v7501_v36 }
 0x354   :  { %v1969_v33 = vpop.f32.mrb[78].mxu0  ;;  %6355 = vmatmul.mubr.msk.f32.vlgmr.msra.gmra.mrb[82].mxu1 %vm1418_vm9, %v8735_v41 }
 0x355   :  { %v1973_v24 = vadd.f32 %v1969_v33, %v1896_v57  ;;  %v6014_v26 = vpop.f32.mrb[79].mxu0  ;;  %7184 = vmatpush3.bf16.msra.mxu1 %v8488_v52  ;;  %6392 = vmatprep.mubr.msk.f32.mxu1 %vm7502_vm2, %v7503_v32 }
 0x356   :  { %7185 = vmatprep.subr.bf16.mxu1 %v7501_v36 }
 0x358   :  { %v2044_v31 = vpop.f32.mrb[62].mxu1 }
 0x359   :  { %v2048_v51 = vadd.f32 %v2044_v31, %v1973_v24  ;;  %v6033_v61 = vpop.f32.mrb[63].mxu1  ;;  %7187 = vmatpush3.bf16.msra.mxu1 %v8512_v18 }
 0x35a   :  { %7188 = vmatprep.subr.bf16.mxu1 %v7501_v36 }
 0x35b   :  { %v2049_v41 = vadd.f32 %v8926_v47, %v2048_v51 }
 0x35d   :  { %v2050_v34 = vmax.f32 %v2049_v41, 0.0  ;;  %7190 = vmatpush3.bf16.msra.mxu1 %v8535_v29 }
 0x35e   :  { %7191 = vmatprep.subr.bf16.mxu1 %v7501_v36 }
 0x35f   :  { %5037 = vmatmul.mubr.msk.f32.vlgmr.msra.gmra.mrb[80].mxu0 %vm2063_vm10, %v2050_v34 }
 0x360   :  { %6929 = vmatpush1.bf16.msra.mxu0 %v7444_v20  ;;  %2205 = vmatprep.mubr.f32.mxu0 %v7503_v32 }
 0x361   :  { %6931 = vmatprep.subr.bf16.mxu0 %v7445_v38  ;;  %7193 = vmatpush3.bf16.msra.mxu1 %v8550_v7 }
 0x362   :  { %7214 = vmatprep.subr.bf16.mxu1 %v7501_v36 }
 0x364   :  { %6933 = vmatpush1.bf16.msra.mxu0 %v7447_v3  ;;  %6393 = vmatmul.mubr.msk.f32.vlgmr.msra.gmra.mrb[84].mxu1 %vm1418_vm9, %v3880_v23 }
 0x365   :  { %6946 = vmatprep.subr.bf16.mxu0 %v7501_v36  ;;  %7216 = vmatpush3.bf16.msra.mxu1 %v8321_v13 }
 0x366   :  { %7217 = vmatprep.subr.bf16.mxu1 %v7501_v36  ;;  %6430 = vmatprep.mubr.msk.f32.mxu1 %vm7502_vm2, %v7503_v32 }
 0x367   :  { %5038 = vmatmul.mubr.msk.f32.vlgmr.msra.gmra.mrb[80].mxu0 %vm2063_vm10, %v1738_v42 }
 0x368   :  { %v8954_v58 = vpop.f32.mrb[64].mxu1  ;;  %6948 = vmatpush3.bf16.msra.mxu0 %v8309_v37  ;;  %6069 = vmatprep.mubr.msk.f32.mxu0 %vm7502_vm2, %v7503_v32 }
 0x369   :  { %v6052_v44 = vpop.f32.mrb[65].mxu1  ;;  %6949 = vmatprep.subr.bf16.mxu0 %v7501_v36  ;;  %7219 = vmatpush3.bf16.msra.mxu1 %v8356_v6 }
 0x36a   :  { %7220 = vmatprep.subr.bf16.mxu1 %v7501_v36 }
 0x36c   :  { %6951 = vmatpush3.bf16.msra.mxu0 %v8327_v19 }
 0x36d   :  { %6952 = vmatprep.subr.bf16.mxu0 %v7501_v36  ;;  %7222 = vmatpush3.bf16.msra.mxu1 %v8385_v39 }
 0x36e   :  { %7223 = vmatprep.subr.bf16.mxu1 %v7501_v36 }
 0x370   :  { %6954 = vmatpush3.bf16.msra.mxu0 %v8362_v12 }
 0x371   :  { %6955 = vmatprep.subr.bf16.mxu0 %v7501_v36  ;;  %7225 = vmatpush3.bf16.msra.mxu1 %v8404_v14 }
 0x372   :  { %7226 = vmatprep.subr.bf16.mxu1 %v7501_v36 }
 0x374   :  { %6957 = vmatpush3.bf16.msra.mxu0 %v8391_v30  ;;  %6431 = vmatmul.mubr.msk.f32.vlgmr.msra.gmra.mrb[86].mxu1 %vm1418_vm9, %v8854_v4 }
 0x375   :  { %6970 = vmatprep.subr.bf16.mxu0 %v7501_v36  ;;  %7228 = vmatpush3.bf16.msra.mxu1 %v8309_v37 }
 0x376   :  { %7229 = vmatprep.subr.bf16.mxu1 %v7501_v36  ;;  %6449 = vmatprep.mubr.msk.f32.mxu1 %vm7502_vm2, %v7503_v32 }
 0x377   :  { %6070 = vmatmul.mubr.msk.f32.vlgmr.msra.gmra.mrb[82].mxu0 %vm1418_vm9, %v8684_v16 }
 0x378   :  { %v8980_v0 = vpop.f32.mrb[66].mxu1  ;;  %6972 = vmatpush3.bf16.msra.mxu0 %v8470_v8  ;;  %6107 = vmatprep.mubr.msk.f32.mxu0 %vm7502_vm2, %v7503_v32 }
 0x379   :  { %v6090_v4 = vpop.f32.mrb[67].mxu1  ;;  %6973 = vmatprep.subr.bf16.mxu0 %v7501_v36  ;;  %7231 = vmatpush3.bf16.msra.mxu1 %v8327_v19 }
 0x37a   :  { %7232 = vmatprep.subr.bf16.mxu1 %v7501_v36 }
 0x37c   :  { %6975 = vmatpush3.bf16.msra.mxu0 %v8494_v59 }
 0x37d   :  { %6976 = vmatprep.subr.bf16.mxu0 %v7501_v36  ;;  %7234 = vmatpush3.bf16.msra.mxu1 %v8362_v12 }
 0x37e   :  { %7235 = vmatprep.subr.bf16.mxu1 %v7501_v36 }
 0x380   :  { %6978 = vmatpush3.bf16.msra.mxu0 %v8518_v21 }
 0x381   :  { %6979 = vmatprep.subr.bf16.mxu0 %v7501_v36  ;;  %7237 = vmatpush3.bf16.msra.mxu1 %v8391_v30 }
 0x382   :  { %7250 = vmatprep.subr.bf16.mxu1 %v7501_v36 }
 0x384   :  { %6981 = vmatpush3.bf16.msra.mxu0 %v8538_v25  ;;  %6450 = vmatmul.mubr.msk.f32.vlgmr.msra.gmra.mrb[88].mxu1 %vm1418_vm9, %v8850_v5 }
 0x385   :  { %7252 = vmatpush3.bf16.msra.mxu1 %v8470_v8  ;;  %6487 = vmatprep.mubr.msk.f32.mxu1 %vm7502_vm2, %v7503_v32 }
 0x386   :  { %7253 = vmatprep.subr.bf16.mxu1 %v7501_v36  ;;  %6983 = vmatprep.subr.bf16.mxu0 %v7448_v54  ;;  %v7456_v54 = vld [vmem:[%s9409_s5 + $0x60] ss:$8 sps:$4 sm:$0xff]  }
 0x387   :  { %6108 = vmatmul.mubr.msk.f32.vlgmr.msra.gmra.mrb[84].mxu0 %vm1418_vm9, %v8688_v56 }
 0x388   :  { %v2666_v16 = vpop.f32.mrb[68].mxu1  ;;  %2591 = vmatprep.mubr.f32.mxu0 %v7503_v32  ;;  %6985 = vmatpush1.bf16.msra.mxu0 %v7450_v43  ;;  %v7457_v43 = vld [vmem:[%s9409_s5 + $0x74] ss:$8 sps:$4 sm:$0xff]  }
 0x389   :  { %v6128_v49 = vpop.f32.mrb[69].mxu1  ;;  %7255 = vmatpush3.bf16.msra.mxu1 %v8494_v59  ;;  %6987 = vmatprep.subr.bf16.mxu0 %v7451_v35  ;;  %v7459_v35 = vld [vmem:[%s9409_s5 + $0x70] ss:$8 sps:$4 sm:$0xff]  }
 0x38a   :  { %7256 = vmatprep.subr.bf16.mxu1 %v7501_v36 }
 0x38d   :  { %7258 = vmatpush3.bf16.msra.mxu1 %v8518_v21 }
 0x38e   :  { %7259 = vmatprep.subr.bf16.mxu1 %v7501_v36 }
 0x391   :  { %7261 = vmatpush3.bf16.msra.mxu1 %v8538_v25 }
 0x392   :  { %7282 = vmatprep.subr.bf16.mxu1 %v7501_v36 }
 0x398   :  { %v2736_v10 = vpop.f32.mrb[70].mxu1 }
 0x399   :  { %v9012_v15 = vadd.f32 %v2736_v10, %v2666_v16  ;;  %v6147_v56 = vpop.f32.mrb[71].mxu1 }
 0x3a8   :  { %v9014_v1 = vpop.f32.mrb[72].mxu1 }
 0x3a9   :  { %v6185_v50 = vpop.f32.mrb[73].mxu1 }
 0x3b8   :  { %v9016_v17 = vpop.f32.mrb[74].mxu1 }
 0x3b9   :  { %v6223_v11 = vpop.f32.mrb[75].mxu1 }
 0x3be   :  { %v4336_v40 = vpop.permute.xlu1 %4335 }
 0x3bf   :  { %6488 = vmatmul.mubr.msk.f32.vlgmr.msra.gmra.mrb[90].mxu1 %vm1418_vm9, %v4336_v40  ;;  %v7454_v40 = vld [vmem:[%s9409_s5 + $0x64] ss:$8 sps:$4 sm:$0xff]  }
 0x3c0   :  { %7284 = vmatpush3.bf16.msra.mxu1 %v8309_v37  ;;  %6525 = vmatprep.mubr.msk.f32.mxu1 %vm7502_vm2, %v7503_v32 }
 0x3c1   :  { %7285 = vmatprep.subr.bf16.mxu1 %v7501_v36 }
 0x3c2   :  { %v4716_v60 = vpop.permute.xlu1 %4715 }
 0x3c4   :  { %7287 = vmatpush3.bf16.msra.mxu1 %v8327_v19 }
 0x3c5   :  { %7288 = vmatprep.subr.bf16.mxu1 %v7501_v36 }
 0x3c8   :  { %7290 = vmatpush3.bf16.msra.mxu1 %v8362_v12 }
 0x3c9   :  { %7291 = vmatprep.subr.bf16.mxu1 %v7501_v36 }
 0x3cc   :  { %7293 = vmatpush3.bf16.msra.mxu1 %v8391_v30 }
 0x3cd   :  { %7306 = vmatprep.subr.bf16.mxu1 %v7501_v36 }
 0x3cf   :  { %6526 = vmatmul.mubr.msk.f32.vlgmr.msra.gmra.mrb[92].mxu1 %vm1418_vm9, %v8852_v45  ;;  %v7453_v45 = vld [vmem:[%s9409_s5 + $0x50] ss:$8 sps:$4 sm:$0xff]  }
 0x3d0   :  { %7308 = vmatpush3.bf16.msra.mxu1 %v8470_v8  ;;  %6563 = vmatprep.mubr.msk.f32.mxu1 %vm7502_vm2, %v7503_v32 }
 0x3d1   :  { %7309 = vmatprep.subr.bf16.mxu1 %v7501_v36  ;;  %6989 = vmatpush1.bf16.msra.mxu0 %v7453_v45 }
 0x3d2   :  { %7014 = vmatprep.subr.bf16.mxu0 %v7501_v36 }
 0x3d4   :  { %7311 = vmatpush3.bf16.msra.mxu1 %v8494_v59 }
 0x3d5   :  { %7312 = vmatprep.subr.bf16.mxu1 %v7501_v36 }
 0x3d8   :  { %7314 = vmatpush3.bf16.msra.mxu1 %v8518_v21 }
 0x3d9   :  { %7315 = vmatprep.subr.bf16.mxu1 %v7501_v36 }
 0x3dc   :  { %7317 = vmatpush3.bf16.msra.mxu1 %v8538_v25 }
 0x3df   :  { %6564 = vmatmul.mubr.msk.f32.vlgmr.msra.gmra.mrb[94].mxu1 %vm1418_vm9, %v4716_v60 }
 0x3f7   :  { %v9054_v55 = vpop.f32.mrb[76].mxu1 }
 0x3f8   :  { %v6261_v62 = vpop.f32.mrb[77].mxu1 }
 0x407   :  { %v9056_v63 = vpop.f32.mrb[78].mxu1 }
 0x408   :  { %v6280_v27 = vpop.f32.mrb[79].mxu1 }
 0x417   :  { %v9058_v57 = vpop.f32.mrb[80].mxu1 }
 0x418   :  { %v6318_v53 = vpop.f32.mrb[81].mxu1 }
 0x427   :  { %v9060_v23 = vpop.f32.mrb[82].mxu1 }
 0x428   :  { %v6356_v33 = vpop.f32.mrb[83].mxu1 }
 0x437   :  { %v9062_v24 = vpop.f32.mrb[84].mxu1 }
 0x438   :  { %v6394_v26 = vpop.f32.mrb[85].mxu1 }
 0x447   :  { %v4186_v31 = vpop.f32.mrb[86].mxu1 }
 0x448   :  { %v6432_v51 = vpop.f32.mrb[87].mxu1 }
 0x44a   :  { %v2356_v61 = vpop.f32.mrb[82].mxu0 }
 0x44b   :  { %v2357_v41 = vadd.f32 %v2356_v61, %v8954_v58  ;;  %v6071_v20 = vpop.f32.mrb[83].mxu0 }
 0x44d   :  { %v2434_v34 = vadd.f32 %v8980_v0, %v2357_v41 }
 0x457   :  { %v4256_v38 = vpop.f32.mrb[88].mxu1 }
 0x458   :  { %v9066_v3 = vadd.f32 %v4256_v38, %v4186_v31  ;;  %v6451_v2 = vpop.f32.mrb[89].mxu1 }
 0x45a   :  { %v2505_v42 = vpop.f32.mrb[84].mxu0 }
 0x45b   :  { %v2509_v44 = vadd.f32 %v2505_v42, %v2434_v34  ;;  %v6109_v4 = vpop.f32.mrb[85].mxu0  ;;  %v7471_v42 = vld [vmem:[%s9409_s5 + $0xb0] ss:$8 sps:$4 sm:$0xff]  }
 0x45d   :  { %v2510_v16 = vadd.f32 %v8926_v47, %v2509_v44 }
 0x45f   :  { %v2511_v49 = vmax.f32 %v2510_v16, 0.0 }
 0x461   :  { %5043 = vmatmul.mubr.msk.f32.vlgmr.msra.gmra.mrb[80].mxu0 %vm2063_vm10, %v2511_v49 }
 0x462   :  { %7016 = vmatpush3.bf16.msra.mxu0 %v8488_v52  ;;  %6164 = vmatprep.mubr.msk.f32.mxu0 %vm7502_vm2, %v7503_v32 }
 0x463   :  { %7017 = vmatprep.subr.bf16.mxu0 %v7501_v36 }
 0x466   :  { %7019 = vmatpush3.bf16.msra.mxu0 %v8512_v18 }
 0x467   :  { %7020 = vmatprep.subr.bf16.mxu0 %v7501_v36 }
 0x46a   :  { %7022 = vmatpush3.bf16.msra.mxu0 %v8535_v29 }
 0x46b   :  { %7023 = vmatprep.subr.bf16.mxu0 %v7501_v36 }
 0x46e   :  { %7025 = vmatpush3.bf16.msra.mxu0 %v8550_v7 }
 0x46f   :  { %7039 = vmatprep.subr.bf16.mxu0 %v7454_v40 }
 0x471   :  { %6165 = vmatmul.mubr.msk.f32.vlgmr.msra.gmra.mrb[86].mxu0 %vm1418_vm9, %v8727_v46 }
 0x472   :  { %2971 = vmatprep.mubr.f32.mxu0 %v7503_v32  ;;  %7041 = vmatpush1.bf16.msra.mxu0 %v7456_v54 }
 0x473   :  { %7043 = vmatprep.subr.bf16.mxu0 %v7457_v43 }
 0x476   :  { %7045 = vmatpush1.bf16.msra.mxu0 %v7459_v35  ;;  %v7480_v35 = vld [vmem:[%s9409_s5 + $0xe0] ss:$8 sps:$4 sm:$0xff]  }
 0x477   :  { %7046 = vmatprep.subr.bf16.mxu0 %v7501_v36 }
 0x492   :  { %v9082_v58 = vpop.f32.mrb[90].mxu1 }
 0x493   :  { %v6489_v0 = vpop.f32.mrb[91].mxu1 }
 0x4a2   :  { %v9084_v10 = vpop.f32.mrb[92].mxu1 }
 0x4a3   :  { %v6527_v56 = vpop.f32.mrb[93].mxu1 }
 0x4b2   :  { %v9086_v50 = vpop.f32.mrb[94].mxu1 }
 0x4b3   :  { %v6565_v11 = vpop.f32.mrb[95].mxu1 }
 0x544   :  { %v2810_v45 = vpop.f32.mrb[86].mxu0 }
 0x545   :  { %v2814_v60 = vadd.f32 %v2810_v45, %v9012_v15  ;;  %v6166_v62 = vpop.f32.mrb[87].mxu0  ;;  %v7462_v15 = vld [vmem:[%s9409_s5 + $0x80] ss:$8 sps:$4 sm:$0xff]   ;;  %v7481_v45 = vld [vmem:[%s9409_s5 + $0xf4] ss:$8 sps:$4 sm:$0xff]  }
 0x547   :  { %v2889_v27 = vadd.f32 %v9014_v1, %v2814_v60  ;;  %v7463_v1 = vld [vmem:[%s9409_s5 + $0x94] ss:$8 sps:$4 sm:$0xff]   ;;  %v7483_v60 = vld [vmem:[%s9409_s5 + $0xf0] ss:$8 sps:$4 sm:$0xff]  }
 0x549   :  { %v2890_v53 = vadd.f32 %v8926_v47, %v2889_v27 }
 0x54b   :  { %v2891_v33 = vmax.f32 %v2890_v53, 0.0 }
 0x54d   :  { %5048 = vmatmul.mubr.msk.f32.vlgmr.msra.gmra.mrb[80].mxu0 %vm2063_vm10, %v2891_v33 }
 0x54e   :  { %7048 = vmatpush3.bf16.msra.mxu0 %v8321_v13  ;;  %6202 = vmatprep.mubr.msk.f32.mxu0 %vm7502_vm2, %v7503_v32 }
 0x54f   :  { %7049 = vmatprep.subr.bf16.mxu0 %v7501_v36 }
 0x552   :  { %7051 = vmatpush3.bf16.msra.mxu0 %v8356_v6 }
 0x553   :  { %7052 = vmatprep.subr.bf16.mxu0 %v7501_v36 }
 0x556   :  { %7054 = vmatpush3.bf16.msra.mxu0 %v8385_v39 }
 0x557   :  { %7055 = vmatprep.subr.bf16.mxu0 %v7501_v36 }
 0x55a   :  { %7057 = vmatpush3.bf16.msra.mxu0 %v8404_v14 }
 0x55b   :  { %7070 = vmatprep.subr.bf16.mxu0 %v7501_v36 }
 0x55d   :  { %6203 = vmatmul.mubr.msk.f32.vlgmr.msra.gmra.mrb[88].mxu0 %vm1418_vm9, %v8674_v48  ;;  %v7460_v48 = vld [vmem:[%s9409_s5 + $0x84] ss:$8 sps:$4 sm:$0xff]  }
 0x55e   :  { %7072 = vmatpush3.bf16.msra.mxu0 %v8488_v52  ;;  %6240 = vmatprep.mubr.msk.f32.mxu0 %vm7502_vm2, %v7503_v32 }
 0x55f   :  { %7073 = vmatprep.subr.bf16.mxu0 %v7501_v36 }
 0x562   :  { %7075 = vmatpush3.bf16.msra.mxu0 %v8512_v18 }
 0x563   :  { %7076 = vmatprep.subr.bf16.mxu0 %v7501_v36 }
 0x566   :  { %7078 = vmatpush3.bf16.msra.mxu0 %v8535_v29 }
 0x567   :  { %7079 = vmatprep.subr.bf16.mxu0 %v7501_v36 }
 0x56a   :  { %7081 = vmatpush3.bf16.msra.mxu0 %v8550_v7 }
 0x56b   :  { %7095 = vmatprep.subr.bf16.mxu0 %v7460_v48 }
 0x56d   :  { %6241 = vmatmul.mubr.msk.f32.vlgmr.msra.gmra.mrb[90].mxu0 %vm1418_vm9, %v8850_v5  ;;  %v7465_v5 = vld [vmem:[%s9409_s5 + $0x90] ss:$8 sps:$4 sm:$0xff]  }
 0x56e   :  { %3351 = vmatprep.mubr.f32.mxu0 %v7503_v32  ;;  %7097 = vmatpush1.bf16.msra.mxu0 %v7462_v15 }
 0x56f   :  { %7099 = vmatprep.subr.bf16.mxu0 %v7463_v1 }
 0x572   :  { %7101 = vmatpush1.bf16.msra.mxu0 %v7465_v5  ;;  %v4898_v5 = vld [vmem:[%s9411_s7 + $0x10] sm:$0xff] }
 0x573   :  { %7114 = vmatprep.subr.bf16.mxu0 %v7501_v36 }
 0x630   :  { %v3046_v26 = vpop.f32.mrb[88].mxu0 }
 0x631   :  { %v3117_v31 = vadd.f32 %v9016_v17, %v3046_v26  ;;  %v6204_v51 = vpop.f32.mrb[89].mxu0  ;;  %v7468_v17 = vld [vmem:[%s9409_s5 + $0xa0] ss:$8 sps:$4 sm:$0xff]   ;;  %v4899_v26 = vld [vmem:[%s9411_s7 + $0x18] sm:$0xff] }
 0x632   :  { %v4917_v51 = vld [vmem:[%s9411_s7 + $0xa8] sm:$0xff] }
 0x640   :  { %v3190_v61 = vpop.f32.mrb[90].mxu0 }
 0x641   :  { %v3194_v41 = vadd.f32 %v3190_v61, %v3117_v31  ;;  %v6242_v20 = vpop.f32.mrb[91].mxu0  ;;  %v4916_v31 = vld [vmem:[%s9411_s7 + $0xa0] sm:$0xff]  ;;  %v7332_v61 = vpack.c.bf16 %v4899_v26, %v4898_v5 }
 0x642   :  { %v4900_v20 = vld [vmem:[%s9411_s7 + $0x20] sm:$0xff] }
 0x643   :  { %v3269_v34 = vadd.f32 %v9054_v55, %v3194_v41  ;;  %v7469_v55 = vld [vmem:[%s9409_s5 + $0xb4] ss:$8 sps:$4 sm:$0xff]   ;;  %v7334_v41 = vpack.c.bf16 %v4917_v51, %v4916_v31 }
 0x645   :  { %v3270_v38 = vadd.f32 %v8926_v47, %v3269_v34  ;;  %v4901_v34 = vld [vmem:[%s9411_s7 + $0x28] sm:$0xff] }
 0x647   :  { %v3271_v2 = vmax.f32 %v3270_v38, 0.0  ;;  %v4918_v38 = vld [vmem:[%s9411_s7 + $0xb0] sm:$0xff] }
 0x649   :  { %5053 = vmatmul.mubr.msk.f32.vlgmr.msra.gmra.mrb[80].mxu0 %vm2063_vm10, %v3271_v2  ;;  %v4919_v2 = vld [vmem:[%s9411_s7 + $0xb8] sm:$0xff] }
 0x64a   :  { %7116 = vmatpush3.bf16.msra.mxu0 %v8309_v37  ;;  %6297 = vmatprep.mubr.msk.f32.mxu0 %vm7502_vm2, %v7503_v32 }
 0x64b   :  { %7117 = vmatprep.subr.bf16.mxu0 %v7501_v36 }
 0x64e   :  { %7119 = vmatpush3.bf16.msra.mxu0 %v8327_v19 }
 0x64f   :  { %7120 = vmatprep.subr.bf16.mxu0 %v7501_v36 }
 0x652   :  { %7122 = vmatpush3.bf16.msra.mxu0 %v8362_v12 }
 0x653   :  { %7123 = vmatprep.subr.bf16.mxu0 %v7501_v36 }
 0x656   :  { %7125 = vmatpush3.bf16.msra.mxu0 %v8391_v30 }
 0x657   :  { %7138 = vmatprep.subr.bf16.mxu0 %v7501_v36 }
 0x659   :  { %6298 = vmatmul.mubr.msk.f32.vlgmr.msra.gmra.mrb[92].mxu0 %vm1418_vm9, %v8682_v9  ;;  %v7466_v9 = vld [vmem:[%s9409_s5 + $0xa4] ss:$8 sps:$4 sm:$0xff]  }
 0x65a   :  { %7140 = vmatpush3.bf16.msra.mxu0 %v8470_v8  ;;  %6335 = vmatprep.mubr.msk.f32.mxu0 %vm7502_vm2, %v7503_v32 }
 0x65b   :  { %7141 = vmatprep.subr.bf16.mxu0 %v7501_v36 }
 0x65e   :  { %7143 = vmatpush3.bf16.msra.mxu0 %v8494_v59 }
 0x65f   :  { %7144 = vmatprep.subr.bf16.mxu0 %v7501_v36 }
 0x662   :  { %7146 = vmatpush3.bf16.msra.mxu0 %v8518_v21 }
 0x663   :  { %7147 = vmatprep.subr.bf16.mxu0 %v7501_v36 }
 0x666   :  { %7149 = vmatpush3.bf16.msra.mxu0 %v8538_v25 }
 0x667   :  { %7151 = vmatprep.subr.bf16.mxu0 %v7466_v9  ;;  %v7336_v9 = vpack.c.bf16 %v4901_v34, %v4900_v20 }
 0x669   :  { %6336 = vmatmul.mubr.msk.f32.vlgmr.msra.gmra.mrb[94].mxu0 %vm1418_vm9, %v8863_v28 }
 0x66a   :  { %3731 = vmatprep.mubr.f32.mxu0 %v7503_v32  ;;  %7153 = vmatpush1.bf16.msra.mxu0 %v7468_v17  ;;  %v7338_v17 = vpack.c.bf16 %v4919_v2, %v4918_v38 }
 0x66b   :  { %7155 = vmatprep.subr.bf16.mxu0 %v7469_v55  ;;  %v4902_v55 = vld [vmem:[%s9411_s7 + $0x30] sm:$0xff] }
 0x66e   :  { %7157 = vmatpush1.bf16.msra.mxu0 %v7471_v42  ;;  %v4903_v42 = vld [vmem:[%s9411_s7 + $0x38] sm:$0xff] }
 0x66f   :  { %7170 = vmatprep.subr.bf16.mxu0 %v7501_v36 }
 0x72c   :  { %v3496_v44 = vpop.f32.mrb[92].mxu0 }
 0x72d   :  { %v3497_v4 = vadd.f32 %v3496_v44, %v9056_v63  ;;  %v6299_v16 = vpop.f32.mrb[93].mxu0  ;;  %v4920_v44 = vld [vmem:[%s9411_s7 + $0xc0] sm:$0xff] }
 0x72e   :  { %v7340_v16 = vpack.c.bf16 %v4903_v42, %v4902_v55 }
 0x72f   :  { %v3574_v49 = vadd.f32 %v9058_v57, %v3497_v4  ;;  %v4921_v4 = vld [vmem:[%s9411_s7 + $0xc8] sm:$0xff] }
 0x73c   :  { %v3645_v0 = vpop.f32.mrb[94].mxu0 }
 0x73d   :  { %v3649_v56 = vadd.f32 %v3645_v0, %v3574_v49  ;;  %v6337_v11 = vpop.f32.mrb[95].mxu0  ;;  %v7342_v49 = vpack.c.bf16 %v4921_v4, %v4920_v44  ;;  %v4904_v0 = vld [vmem:[%s9411_s7 + $0x40] sm:$0xff] }
 0x73e   :  { %v4922_v11 = vld [vmem:[%s9411_s7 + $0xd0] sm:$0xff] }
 0x73f   :  { %v3650_v40 = vadd.f32 %v8926_v47, %v3649_v56  ;;  %v4905_v56 = vld [vmem:[%s9411_s7 + $0x48] sm:$0xff] }
 0x741   :  { %v3651_v54 = vmax.f32 %v3650_v40, 0.0  ;;  %v4923_v40 = vld [vmem:[%s9411_s7 + $0xd8] sm:$0xff] }
 0x743   :  { %5058 = vmatmul.mubr.msk.f32.vlgmr.msra.gmra.mrb[80].mxu0 %vm2063_vm10, %v3651_v54  ;;  %v7344_v54 = vpack.c.bf16 %v4905_v56, %v4904_v0 }
 0x744   :  { %7172 = vmatpush3.bf16.msra.mxu0 %v8309_v37  ;;  %6373 = vmatprep.mubr.msk.f32.mxu0 %vm7502_vm2, %v7503_v32  ;;  %v7472_v37 = vld [vmem:[%s9409_s5 + $0xc4] ss:$8 sps:$4 sm:$0xff]  }
 0x745   :  { %7173 = vmatprep.subr.bf16.mxu0 %v7501_v36 }
 0x748   :  { %7175 = vmatpush3.bf16.msra.mxu0 %v8327_v19  ;;  %v7474_v19 = vld [vmem:[%s9409_s5 + $0xc0] ss:$8 sps:$4 sm:$0xff]  }
 0x749   :  { %7176 = vmatprep.subr.bf16.mxu0 %v7501_v36 }
 0x74c   :  { %7178 = vmatpush3.bf16.msra.mxu0 %v8362_v12  ;;  %v7475_v12 = vld [vmem:[%s9409_s5 + $0xd4] ss:$8 sps:$4 sm:$0xff]  }
 0x74d   :  { %7179 = vmatprep.subr.bf16.mxu0 %v7501_v36 }
 0x750   :  { %7181 = vmatpush3.bf16.msra.mxu0 %v8391_v30  ;;  %v7477_v30 = vld [vmem:[%s9409_s5 + $0xd0] ss:$8 sps:$4 sm:$0xff]  }
 0x751   :  { %7194 = vmatprep.subr.bf16.mxu0 %v7501_v36 }
 0x753   :  { %6374 = vmatmul.mubr.msk.f32.vlgmr.msra.gmra.mrb[96].mxu0 %vm1418_vm9, %v8727_v46 }
 0x754   :  { %7196 = vmatpush3.bf16.msra.mxu0 %v8470_v8  ;;  %6411 = vmatprep.mubr.msk.f32.mxu0 %vm7502_vm2, %v7503_v32 }
 0x755   :  { %7197 = vmatprep.subr.bf16.mxu0 %v7501_v36 }
 0x758   :  { %7199 = vmatpush3.bf16.msra.mxu0 %v8494_v59 }
 0x759   :  { %7200 = vmatprep.subr.bf16.mxu0 %v7501_v36 }
 0x75c   :  { %7202 = vmatpush3.bf16.msra.mxu0 %v8518_v21 }
 0x75d   :  { %7203 = vmatprep.subr.bf16.mxu0 %v7501_v36 }
 0x760   :  { %7205 = vmatpush3.bf16.msra.mxu0 %v8538_v25 }
 0x761   :  { %7207 = vmatprep.subr.bf16.mxu0 %v7472_v37  ;;  %v7346_v37 = vpack.c.bf16 %v4923_v40, %v4922_v11 }
 0x763   :  { %6412 = vmatmul.mubr.msk.f32.vlgmr.msra.gmra.mrb[98].mxu0 %vm1418_vm9, %v8905_v22 }
 0x764   :  { %4111 = vmatprep.mubr.f32.mxu0 %v7503_v32  ;;  %7209 = vmatpush1.bf16.msra.mxu0 %v7474_v19  ;;  %v4906_v19 = vld [vmem:[%s9411_s7 + $0x50] sm:$0xff] }
 0x765   :  { %7211 = vmatprep.subr.bf16.mxu0 %v7475_v12  ;;  %v4907_v12 = vld [vmem:[%s9411_s7 + $0x58] sm:$0xff] }
 0x768   :  { %7213 = vmatpush1.bf16.msra.mxu0 %v7477_v30  ;;  %v4924_v30 = vld [vmem:[%s9411_s7 + $0xe0] sm:$0xff] }
 0x769   :  { %7238 = vmatprep.subr.bf16.mxu0 %v7501_v36 }
 0x826   :  { %v3876_v8 = vpop.f32.mrb[96].mxu0 }
 0x827   :  { %v3877_v59 = vadd.f32 %v3876_v8, %v9060_v23  ;;  %v6375_v21 = vpop.f32.mrb[97].mxu0  ;;  %v4261_v23 = vpop.permute.xlu0 %4260  ;;  %v4925_v8 = vld [vmem:[%s9411_s7 + $0xe8] sm:$0xff] }
 0x828   :  { %v7350_v21 = vpack.c.bf16 %v4925_v8, %v4924_v30 }
 0x829   :  { %v3954_v25 = vadd.f32 %v9062_v24, %v3877_v59  ;;  %v7478_v24 = vld [vmem:[%s9409_s5 + $0xe4] ss:$8 sps:$4 sm:$0xff]   ;;  %v7348_v59 = vpack.c.bf16 %v4907_v12, %v4906_v19 }
 0x836   :  { %v4025_v46 = vpop.f32.mrb[98].mxu0 }
 0x837   :  { %v4029_v22 = vadd.f32 %v4025_v46, %v3954_v25  ;;  %v6413_v63 = vpop.f32.mrb[99].mxu0 }
 0x839   :  { %v4030_v57 = vadd.f32 %v8926_v47, %v4029_v22 }
 0x83b   :  { %v4031_v43 = vmax.f32 %v4030_v57, 0.0 }
 0x83d   :  { %5063 = vmatmul.mubr.msk.f32.vlgmr.msra.gmra.mrb[80].mxu0 %vm2063_vm10, %v4031_v43 }
 0x83e   :  { %7240 = vmatpush3.bf16.msra.mxu0 %v8488_v52  ;;  %6468 = vmatprep.mubr.msk.f32.mxu0 %vm7502_vm2, %v7503_v32 }
 0x83f   :  { %7241 = vmatprep.subr.bf16.mxu0 %v7501_v36 }
 0x842   :  { %7243 = vmatpush3.bf16.msra.mxu0 %v8512_v18 }
 0x843   :  { %7244 = vmatprep.subr.bf16.mxu0 %v7501_v36 }
 0x846   :  { %7246 = vmatpush3.bf16.msra.mxu0 %v8535_v29 }
 0x847   :  { %7247 = vmatprep.subr.bf16.mxu0 %v7501_v36 }
 0x84a   :  { %7249 = vmatpush3.bf16.msra.mxu0 %v8550_v7 }
 0x84b   :  { %7263 = vmatprep.subr.bf16.mxu0 %v7478_v24 }
 0x84d   :  { %6469 = vmatmul.mubr.msk.f32.vlgmr.msra.gmra.mrb[100].mxu0 %vm1418_vm9, %v4261_v23 }
 0x84e   :  { %4491 = vmatprep.mubr.f32.mxu0 %v7503_v32  ;;  %7265 = vmatpush1.bf16.msra.mxu0 %v7480_v35 }
 0x84f   :  { %7267 = vmatprep.subr.bf16.mxu0 %v7481_v45  ;;  %v4908_v45 = vld [vmem:[%s9411_s7 + $0x60] sm:$0xff] }
 0x852   :  { %7269 = vmatpush1.bf16.msra.mxu0 %v7483_v60  ;;  %v4909_v60 = vld [vmem:[%s9411_s7 + $0x68] sm:$0xff] }
 0x853   :  { %7270 = vmatprep.subr.bf16.mxu0 %v7501_v36 }
 0x920   :  { %v4330_v62 = vpop.f32.mrb[100].mxu0 }
 0x921   :  { %v4334_v27 = vadd.f32 %v4330_v62, %v9066_v3  ;;  %v6470_v53 = vpop.f32.mrb[101].mxu0  ;;  %v4915_v3 = vld [vmem:[%s9411_s7 + $0x98] sm:$0xff]  ;;  %v4926_v62 = vld [vmem:[%s9411_s7 + $0xf0] sm:$0xff] }
 0x922   :  { %v4911_v53 = vld [vmem:[%s9411_s7 + $0x78] sm:$0xff] }
 0x923   :  { %v4409_v33 = vadd.f32 %v9082_v58, %v4334_v27  ;;  %v4910_v27 = vld [vmem:[%s9411_s7 + $0x70] sm:$0xff] }
 0x925   :  { %v4410_v48 = vadd.f32 %v8926_v47, %v4409_v33  ;;  %v7356_v33 = vpack.c.bf16 %v4911_v53, %v4910_v27 }
 0x927   :  { %v4411_v15 = vmax.f32 %v4410_v48, 0.0  ;;  %v4882_v48 = vlaneseq }
 0x929   :  { %5068 = vmatmul.mubr.msk.f32.vlgmr.msra.gmra.mrb[80].mxu0 %vm2063_vm10, %v4411_v15  ;;  %v4883_v15 = vshrl.u32 %v4882_v48, 7 }
 0x92a   :  { %7272 = vmatpush3.bf16.msra.mxu0 %v8321_v13  ;;  %6506 = vmatprep.mubr.msk.f32.mxu0 %vm7502_vm2, %v7503_v32  ;;  %v4641_v13 = vpop.permute.xlu0 %4640 }
 0x92b   :  { %7273 = vmatprep.subr.bf16.mxu0 %v7501_v36 }
 0x92e   :  { %7275 = vmatpush3.bf16.msra.mxu0 %v8356_v6  ;;  %v7484_v6 = vld [vmem:[%s9409_s5 + $0x104] ss:$8 sps:$4 sm:$0xff]  }
 0x92f   :  { %7276 = vmatprep.subr.bf16.mxu0 %v7501_v36 }
 0x932   :  { %7278 = vmatpush3.bf16.msra.mxu0 %v8385_v39  ;;  %v7486_v39 = vld [vmem:[%s9409_s5 + $0x100] ss:$8 sps:$4 sm:$0xff]  }
 0x933   :  { %7279 = vmatprep.subr.bf16.mxu0 %v7501_v36 }
 0x936   :  { %7281 = vmatpush3.bf16.msra.mxu0 %v8404_v14  ;;  %v7489_v14 = vld [vmem:[%s9409_s5 + $0x110] ss:$8 sps:$4 sm:$0xff]  }
 0x937   :  { %7294 = vmatprep.subr.bf16.mxu0 %v7501_v36 }
 0x939   :  { %6507 = vmatmul.mubr.msk.f32.vlgmr.msra.gmra.mrb[102].mxu0 %vm1418_vm9, %v8863_v28  ;;  %v4914_v28 = vld [vmem:[%s9411_s7 + $0x90] sm:$0xff] }
 0x93a   :  { %7296 = vmatpush3.bf16.msra.mxu0 %v8488_v52  ;;  %6544 = vmatprep.mubr.msk.f32.mxu0 %vm7502_vm2, %v7503_v32  ;;  %v4913_v52 = vld [vmem:[%s9411_s7 + $0x88] sm:$0xff]  ;;  %v7330_v1 = vpack.c.bf16 %v4915_v3, %v4914_v28  ;;  %v5006_v3 = vand.u32 127, %v4882_v48 }
 0x93b   :  { %7297 = vmatprep.subr.bf16.mxu0 %v7501_v36 }
 0x93c   :  { %vm5007_vm11 = vcmp.lt.s32.totalorder %v5006_v3, 6 }
 0x93e   :  { %7299 = vmatpush3.bf16.msra.mxu0 %v8512_v18  ;;  %v4896_v18 = vld [vmem:[%s9411_s7] sm:$0xff] }
 0x93f   :  { %7300 = vmatprep.subr.bf16.mxu0 %v7501_v36 }
 0x942   :  { %7302 = vmatpush3.bf16.msra.mxu0 %v8535_v29 }
 0x943   :  { %7303 = vmatprep.subr.bf16.mxu0 %v7501_v36  ;;  %v7487_v36 = vld [vmem:[%s9409_s5 + $0x114] ss:$8 sps:$4 sm:$0xff]  }
 0x946   :  { %7305 = vmatpush3.bf16.msra.mxu0 %v8550_v7  ;;  %v4897_v7 = vld [vmem:[%s9411_s7 + $0x8] sm:$0xff] }
 0x947   :  { %7319 = vmatprep.subr.bf16.mxu0 %v7484_v6  ;;  %v7328_v58 = vpack.c.bf16 %v4897_v7, %v4896_v18  ;;  %v4880_v6 = vld [vmem:[%s9412_s6] sm:$0x3] }
 0x949   :  { %6545 = vmatmul.mubr.msk.f32.vlgmr.msra.gmra.mrb[104].mxu0 %vm1418_vm9, %v4641_v13  ;;  %v4884_v13 = vsub.s32 0, %v4883_v15 }
 0x94a   :  { %4871 = vmatprep.mubr.f32.mxu0 %v7503_v32  ;;  %7321 = vmatpush1.bf16.msra.mxu0 %v7486_v39  ;;  %v4912_v32 = vld [vmem:[%s9411_s7 + $0x80] sm:$0xff]  ;;  %v4888_v39 = vsub.s32 1, %v4883_v15 }
 0x94b   :  { %7323 = vmatprep.subr.bf16.mxu0 %v7487_v36  ;;  %v7326_v29 = vpack.c.bf16 %v4913_v52, %v4912_v32  ;;  %v4885_v36 = vrot.slane %v4880_v6, %v4884_v13 }
 0x94d   :  { %7327 = vmatprep.subr.bf16.mxu1 %v7326_v29 }
 0x94e   :  { %7325 = vmatpush1.bf16.msra.mxu0 %v7489_v14  ;;  %7329 = vmatpush3.bf16.msra.mxu1 %v7328_v58  ;;  %v4889_v14 = vrot.slane %v4880_v6, %v4888_v39 }
 0x94f   :  { %7331 = vmatprep.subr.bf16.mxu1 %v7330_v1  ;;  %v5074_v1 = vld [vmem:[%s9413_s8] ss:$0 sm:$0xff] }
 0x952   :  { %7333 = vmatpush3.bf16.msra.mxu1 %v7332_v61 }
 0x953   :  { %7335 = vmatprep.subr.bf16.mxu1 %v7334_v41 }
 0x956   :  { %7337 = vmatpush3.bf16.msra.mxu1 %v7336_v9 }
 0x957   :  { %7339 = vmatprep.subr.bf16.mxu1 %v7338_v17 }
 0x95a   :  { %7341 = vmatpush3.bf16.msra.mxu1 %v7340_v16 }
 0x95b   :  { %7343 = vmatprep.subr.bf16.mxu1 %v7342_v49 }
 0x95e   :  { %7345 = vmatpush3.bf16.msra.mxu1 %v7344_v54 }
 0x95f   :  { %7347 = vmatprep.subr.bf16.mxu1 %v7346_v37 }
 0x962   :  { %7349 = vmatpush3.bf16.msra.mxu1 %v7348_v59 }
 0x963   :  { %7351 = vmatprep.subr.bf16.mxu1 %v7350_v21 }
 0xa0c   :  { %v4566_v25 = vpop.f32.mrb[102].mxu0 }
 0xa0d   :  { %v4637_v46 = vadd.f32 %v9084_v10, %v4566_v25  ;;  %v6508_v22 = vpop.f32.mrb[103].mxu0  ;;  %v7352_v10 = vpack.c.bf16 %v4909_v60, %v4908_v45 }
 0xa0f   :  { %7353 = vmatpush3.bf16.msra.mxu1 %v7352_v10 }
 0xa1c   :  { %v4710_v63 = vpop.f32.mrb[104].mxu0 }
 0xa1d   :  { %v4714_v57 = vadd.f32 %v4710_v63, %v4637_v46  ;;  %v6546_v43 = vpop.f32.mrb[105].mxu0 }
 0xa1f   :  { %v4789_v23 = vadd.f32 %v9086_v50, %v4714_v57 }
 0xa21   :  { %v4790_v24 = vadd.f32 %v8926_v47, %v4789_v23  ;;  %v4927_v47 = vld [vmem:[%s9411_s7 + $0xf8] sm:$0xff] }
 0xa22   :  { %v7354_v50 = vpack.c.bf16 %v4927_v47, %v4926_v62 }
 0xa23   :  { %v4791_v35 = vmax.f32 %v4790_v24, 0.0 }
 0xa24   :  { %7355 = vmatprep.subr.bf16.mxu1 %v7354_v50 }
 0xa25   :  { %5073 = vmatmul.mubr.msk.f32.vlgmr.msra.gmra.mrb[80].mxu0 %vm2063_vm10, %v4791_v35  ;;  %7357 = vmatpush3.bf16.msra.mxu1 %v7356_v33 }
 0xaf8   :  { %v4873_v32 = vpop.f32.mrb[80].mxu0 }
 0xaf9   :  { %v4892_v52 = vadd.f32 %v4885_v36, %v4873_v32  ;;  %v4875_v18 = vpop.f32.mrb[81].mxu0 }
 0xafa   :  { %v4893_v29 = vadd.f32 %v4889_v14, %v4875_v18 }
 0xafb   :  { %v4894_v28 = vmax.f32 %v4892_v52, 0.0 }
 0xafc   :  { %v4895_v7 = vmax.f32 %v4893_v29, 0.0 }
 0xafe   :  { %4999 = vmatprep.mubr.f32.mxu1 %v4895_v7 }
 0xaff   :  { %5000 = vmatmul.mubr.f32.vlgmr.msra.gmra.mrb[96].mxu1 %v4894_v28 }
 0xbd2   :  { %v5879_v58 = vpop.f32.mrb[96].mxu1 }
 0xbd3   :  { %v5880_v5 = vpop.f32.mrb[97].mxu1 }
 0xbd4   :  { %v5881_v26 = vadd.f32 %v5880_v5, %v5879_v58 }
 0xbd6   :  { %v5002_v31 = vadd.f32 %v5881_v26, %v5074_v1 }
 0xbd8   :  { %v5008_v51 = vsel %vm5007_vm11, %v5002_v31, -inf }
 0xbd9   :  { %v5010_v61 = vsel %vm5009_vm12, %v5008_v51, -inf }
 0xbda   :  { %5011 = vmax.xlane.f32.xlu0 %v5010_v61 }
 0xc67   :  { %v5012_v41 = vpop.xlane.xlu0 %5011 }
 0xc68   :  { %v5013_v20 = vsub.f32 %v5008_v51, %v5012_v41 }
 0xc6a   :  { %v5014_v34 = vmul.f32 1.442695, %v5013_v20 }
 0xc6c   :  { %7490 = vpow2.f32 %v5014_v34 }
 0xc76   :  { %v7491_v38 = vpop.eup %7490 }
 0xc77   :  { %v5016_v2 = vsel %vm5009_vm12, %v7491_v38, 0.0 }
 0xc78   :  { %5017 = vadd.xlane.f32.xlu1 %v5016_v2 }
 0xd05   :  { %v5018_v9 = vpop.xlane.xlu1 %5017 }
 0xd06   :  { %7492 = vrcp.f32 %v5018_v9 }
 0xd10   :  { %v7493_v17 = vpop.eup %7492 }
 0xd11   :  { %v5020_v55 = vmul.f32 %v7493_v17, %v7491_v38 }
 0xd13   :  { %v5021_v42 = vsel %vm5007_vm11, %v5020_v55, %v5002_v31 }
 0xd14   :  { %5022 = vst.msk [vmem:[%s9414_s9] sm:$0xff] %vm5009_vm12, %v5021_v42 }

</bundles_post_ra>
